<compile_context>
chip_gen: v7x
topology: tpu7x:2x2x1
jax: 0.10.0
libtpu: 0.0.40
codegen_flags: <defaults>
</compile_context>

<pallas_src>
import functools

import numpy as np

import jax
import jax.numpy as jnp
from jax.experimental import pallas as pl
from jax.experimental.pallas import tpu as pltpu

CP = 128  # lane-dense channel padding (one full vreg lane width)

# kernel offset di (or dj) in {0,1,2}  ->  (parity plane, shift within plane)
_TAP = ((1, -1), (0, 0), (1, 0))

_COMPILER_PARAMS = pltpu.CompilerParams(
    dimension_semantics=("parallel",),
    vmem_limit_bytes=32 * 1024 * 1024,
)


# ----------------------------------------------------------------------------
# In-kernel helper: 3x3 / stride-2 / pad-1 conv as a single K=9*CP matmul
# ----------------------------------------------------------------------------
def _conv3x3s2_im2col(pad_ref, col_ref, b, wb_ref, hh, wh, left_mask):
    """pad_ref : Ref[bt, 4, pp+m, CP]  parity planes with zero prefix (len pp).
    col_ref : Ref[m, 9*CP]            VMEM-only im2col staging buffer.
    wb_ref  : Ref[9*CP, CP]           tap-major packed (block-diag grouped) weights.
    returns : [m, CP] float32, rows in row-major output (i, j) order."""
    m = hh * wh
    pp = wh + 1
    cp = pad_ref.shape[-1]
    t = 0
    for di in range(3):
        ph, oi = _TAP[di]
        for dj in range(3):
            pw, oj = _TAP[dj]
            shift = -(oi * wh + oj)                      # 0, 1, wh or wh+1
            tap = pad_ref[b, 2 * ph + pw, pp - shift:pp - shift + m, :]
            if oj == -1:                                 # left-edge wrap of flat layout
                tap = jnp.where(left_mask, jnp.zeros_like(tap), tap)
            col_ref[:, t * cp:(t + 1) * cp] = tap
            t += 1
    return jnp.dot(col_ref[...], wb_ref[...], preferred_element_type=jnp.float32)


# ----------------------------------------------------------------------------
# Pallas kernels
# ----------------------------------------------------------------------------
def _stem_kernel(x_ref, wb_ref, bn_ref, perm_ref, o_ref, xpad_ref, col_ref,
                 *, hh, wh, bt):
    # Stem: 3x3 stride-2 conv + folded BN + ReLU; emits parity-ordered rows.
    m = hh * wh
    pp = wh + 1
    cp = x_ref.shape[-1]
    # Zero prefix every step: batch axis is "parallel" so a program_id==0 guard
    # would be unsafe under a megacore split (scratch is per-core).
    xpad_ref[:, :, 0:pp, :] = jnp.zeros((bt, 4, pp, cp), xpad_ref.dtype)
    left_mask = (jax.lax.broadcasted_iota(jnp.int32, (m, cp), 0) % wh) == 0
    for b in range(bt):
        for p in range(4):
            xpad_ref[b, p, pp:pp + m, :] = x_ref[b, p * m:(p + 1) * m, :]
    scale = bn_ref[0:1, :]
    bias = bn_ref[1:2, :]
    for b in range(bt):
        acc = _conv3x3s2_im2col(xpad_ref, col_ref, b, wb_ref, hh, wh, left_mask)
        y = jnp.maximum(acc * scale + bias, 0.0).astype(jnp.bfloat16)
        # one-hot permutation matmul: rows -> next block's parity-major order
        o_ref[b, :, :] = jnp.dot(
            perm_ref[...], y, preferred_element_type=jnp.float32
        ).astype(o_ref.dtype)


def _block_kernel(x_ref, w1_ref, wb_ref, bn_ref, *rest, hh, wh, bt, pool):
    # Fully fused residual bottleneck block (a 1x1, b 3x3 grouped/s2, c 1x1,
    # proj 1x1/s2, folded BN, residual add, ReLU, optional fused global pool).
    if pool:
        o_ref, apad_ref, col_ref = rest
        perm_ref = None
    else:
        perm_ref, o_ref, apad_ref, col_ref = rest
    m = hh * wh
    pp = wh + 1
    cp = x_ref.shape[-1]
    apad_ref[:, :, 0:pp, :] = jnp.zeros((bt, 4, pp, cp), apad_ref.dtype)
    left_mask = (jax.lax.broadcasted_iota(jnp.int32, (m, cp), 0) % wh) == 0
    x = x_ref[...]                                       # (bt, 4m, CP) bf16, parity-major
    # ---- a: 1x1 conv + BN + ReLU on all rows / images at once ---------------
    a = jnp.dot(x.reshape(bt * 4 * m, cp), w1_ref[0],
                preferred_element_type=jnp.float32)
    a = jnp.maximum(a * bn_ref[0:1, :] + bn_ref[1:2, :], 0.0).astype(jnp.bfloat16)
    for b in range(bt):
        for p in range(4):
            r0 = (b * 4 + p) * m
            apad_ref[b, p, pp:pp + m, :] = a[r0:r0 + m, :]
    for b in range(bt):
        # ---- projection shortcut: 1x1 stride-2 == 1x1 on parity-(0,0) rows --
        proj = jnp.dot(x[b, 0:m, :], w1_ref[1], preferred_element_type=jnp.float32)
        proj = proj * bn_ref[2:3, :] + bn_ref[3:4, :]
        # ---- b: 3x3 stride-2 grouped conv as a single K=9*CP matmul ---------
        # TODO(synk): for groups > 2 contract per group instead of block-diag.
        bacc = _conv3x3s2_im2col(apad_ref, col_ref, b, wb_ref, hh, wh, left_mask)
        bv = jnp.maximum(bacc * bn_ref[4:5, :] + bn_ref[5:6, :], 0.0).astype(jnp.bfloat16)
        # ---- c: 1x1 conv + BN, fused residual add + ReLU --------------------
        c = jnp.dot(bv, w1_ref[2], preferred_element_type=jnp.float32)
        y = jnp.maximum(c * bn_ref[6:7, :] + bn_ref[7:8, :] + proj, 0.0)
        if pool:
            # fused global average pool over this block's output positions
            o_ref[b, :, :] = jnp.mean(y, axis=0, keepdims=True).astype(o_ref.dtype)
        else:
            o_ref[b, :, :] = jnp.dot(
                perm_ref[...], y.astype(jnp.bfloat16),
                preferred_element_type=jnp.float32
            ).astype(o_ref.dtype)


# ----------------------------------------------------------------------------
# Wrapper-side plumbing (layout / packing only; all compute is in Pallas)
# ----------------------------------------------------------------------------
def _parity_rows(x_nhwc):
    """[N,H,W,C] -> [N, H*W, C] with rows ordered (h%2, w%2, h//2, w//2)."""
    n, h, w, c = x_nhwc.shape
    assert h % 2 == 0 and w % 2 == 0, "parity decomposition needs even H, W"
    hh, wh = h // 2, w // 2
    xr = x_nhwc.reshape(n, hh, 2, wh, 2, c).transpose(0, 2, 4, 1, 3, 5)
    return xr.reshape(n, 4 * hh * wh, c)


def _perm_matrix(hh, wh):
    """One-hot [m, m]: row-major (i, j) rows of an (hh, wh) grid -> parity order."""
    assert hh % 2 == 0 and wh % 2 == 0, "parity decomposition needs even extents"
    m = hh * wh
    p = np.zeros((m, m), np.float32)
    r = 0
    for pi in range(2):
        for pj in range(2):
            for i2 in range(hh // 2):
                for j2 in range(wh // 2):
                    p[r, (2 * i2 + pi) * wh + (2 * j2 + pj)] = 1.0
                    r += 1
    return jnp.asarray(p, jnp.bfloat16)


def _pad2(w, cp=CP):
    k, n = w.shape
    return jnp.pad(w, ((0, cp - k), (0, cp - n)))


def _w1x1_p(w, cp=CP):
    """PyTorch [Cout, Cin, 1, 1] -> lane-padded [CP, CP] bf16."""
    return _pad2(jnp.transpose(w[:, :, 0, 0]), cp).astype(jnp.bfloat16)


def _block_diag(blocks):
    if len(blocks) == 1:
        return blocks[0]
    rows = sum(b.shape[0] for b in blocks)
    cols = sum(b.shape[1] for b in blocks)
    out = jnp.zeros((rows, cols), blocks[0].dtype)
    i = j = 0
    for b in blocks:
        out = out.at[i:i + b.shape[0], j:j + b.shape[1]].set(b)
        i += b.shape[0]
        j += b.shape[1]
    return out


def _pack_taps_p(w, groups=1, cp=CP):
    """PyTorch [Cout, Cin_g, 3, 3] -> [9*CP, CP] bf16, tap-major, block-diag groups."""
    cout = w.shape[0]
    cout_g = cout // groups
    taps = []
    for di in range(3):
        for dj in range(3):
            blocks = [jnp.transpose(w[g * cout_g:(g + 1) * cout_g, :, di, dj])
                      for g in range(groups)]
            taps.append(_pad2(_block_diag(blocks), cp))
    return jnp.concatenate(taps, axis=0).astype(jnp.bfloat16)


def _bn_rows(vecs, cp=CP):
    """Pack folded-BN scale/bias vectors into a single [len(vecs), CP] f32 operand."""
    return jnp.stack([jnp.pad(v.astype(jnp.float32), (0, cp - v.shape[0]))
                      for v in vecs], axis=0)


def _pick_btile(n):
    """Batch-block size: amortize per-step overhead while keeping >=2 grid steps
    (pipelining, v7x megacore) whenever the batch allows it."""
    if n <= 2:
        return 1
    for bt in (8, 4, 2):
        if n % bt == 0 and n // bt >= 2:
            return bt
    return 1


def stem_forward(x_nhwc, w, scale, bias, *, b_tile, cp=CP):
    n, hgt, wid, cin = x_nhwc.shape
    hh, wh = hgt // 2, wid // 2
    m = hh * wh
    pp = wh + 1
    x = jnp.pad(x_nhwc.astype(jnp.bfloat16), ((0, 0), (0, 0), (0, 0), (0, cp - cin)))
    x_par = _parity_rows(x)                                       # (n, 4m, CP)
    wb = _pack_taps_p(w, 1, cp)                                   # (9*CP, CP)
    bn = _bn_rows([scale, bias], cp)                              # (2, CP)
    perm = _perm_matrix(hh, wh)                                   # (m, m)
    assert n % b_tile == 0
    return pl.pallas_call(
        functools.partial(_stem_kernel, hh=hh, wh=wh, bt=b_tile),
        out_shape=jax.ShapeDtypeStruct((n, m, cp), jnp.bfloat16),
        grid=(n // b_tile,),
        in_specs=[
            pl.BlockSpec((b_tile, 4 * m, cp), lambda i: (i, 0, 0)),
            pl.BlockSpec((9 * cp, cp), lambda i: (0, 0)),         # resident weights
            pl.BlockSpec((2, cp), lambda i: (0, 0)),
            pl.BlockSpec((m, m), lambda i: (0, 0)),
        ],
        out_specs=pl.BlockSpec((b_tile, m, cp), lambda i: (i, 0, 0)),
        scratch_shapes=[pltpu.VMEM((b_tile, 4, pp + m, cp), jnp.bfloat16),
                        pltpu.VMEM((m, 9 * cp), jnp.bfloat16)],
        compiler_params=_COMPILER_PARAMS,
    )(x_par, wb, bn, perm)


def block_forward(x_rows, h, w, blk, groups, pool, *, b_tile, cp=CP):
    n = x_rows.shape[0]
    hh, wh = h // 2, w // 2
    m = hh * wh
    pp = wh + 1
    assert n % b_tile == 0

    w1 = jnp.stack([_w1x1_p(blk["a_w"], cp),
                    _w1x1_p(blk["proj_w"], cp),
                    _w1x1_p(blk["c_w"], cp)], axis=0)             # (3, CP, CP)
    wb = _pack_taps_p(blk["b_w"], groups, cp)                     # (9*CP, CP)
    bn = _bn_rows([blk["a_s"], blk["a_b"], blk["proj_s"], blk["proj_b"],
                   blk["b_s"], blk["b_b"], blk["c_s"], blk["c_b"]], cp)  # (8, CP)

    operands = [x_rows, w1, wb, bn]
    in_specs = [
        pl.BlockSpec((b_tile, 4 * m, cp), lambda i: (i, 0, 0)),
        pl.BlockSpec((3, cp, cp), lambda i: (0, 0, 0)),
        pl.BlockSpec((9 * cp, cp), lambda i: (0, 0)),
        pl.BlockSpec((8, cp), lambda i: (0, 0)),
    ]
    if pool:
        out_shape = jax.ShapeDtypeStruct((n, 1, cp), jnp.float32)
        out_spec = pl.BlockSpec((b_tile, 1, cp), lambda i: (i, 0, 0))
    else:
        operands.append(_perm_matrix(hh, wh))
        in_specs.append(pl.BlockSpec((m, m), lambda i: (0, 0)))
        out_shape = jax.ShapeDtypeStruct((n, m, cp), jnp.bfloat16)
        out_spec = pl.BlockSpec((b_tile, m, cp), lambda i: (i, 0, 0))

    return pl.pallas_call(
        functools.partial(_block_kernel, hh=hh, wh=wh, bt=b_tile, pool=pool),
        out_shape=out_shape,
        grid=(n // b_tile,),
        in_specs=in_specs,
        out_specs=out_spec,
        scratch_shapes=[pltpu.VMEM((b_tile, 4, pp + m, cp), jnp.bfloat16),
                        pltpu.VMEM((m, 9 * cp), jnp.bfloat16)],
        compiler_params=_COMPILER_PARAMS,
    )(*operands)


def regnet_forward(x_nchw, params):
    # transform_model_input_data_type(x, 'rgb') is the identity.
    x = jnp.transpose(x_nchw, (0, 2, 3, 1)).astype(jnp.float32)   # NCHW -> NHWC
    n, h, w, _ = x.shape
    bt = _pick_btile(n)
    st = params["stem"]
    act = stem_forward(x, st["w"], st["s"], st["b"], b_tile=bt)   # conv1 (stem)
    h, w = h // 2, w // 2
    blocks, groups = params["blocks"], params["block_groups"]
    for bi, (blk, g) in enumerate(zip(blocks, groups)):
        last = bi == len(blocks) - 1
        act = block_forward(act, h, w, blk, g, pool=last, b_tile=bt)  # res2, res3, ...
        h, w = h // 2, w // 2
    cout = blocks[-1]["c_w"].shape[0]
    # avgpool + flatten fused into the last block; strip lane padding here.
    return act.reshape(n, -1)[:, :cout].astype(jnp.float32)


# ----------------------------------------------------------------------------
# Pure-JAX (XLA) reference of the same forward pass, for a numerics self-check
# ----------------------------------------------------------------------------
def _ref_conv_bn(x, w, s, b, stride, pad, groups=1, relu=True):
    y = jax.lax.conv_general_dilated(
        x, jnp.transpose(w, (2, 3, 1, 0)),
        window_strides=(stride, stride),
        padding=((pad, pad), (pad, pad)),
        dimension_numbers=("NHWC", "HWIO", "NHWC"),
        feature_group_count=groups)
    y = y * s.reshape(1, 1, 1, -1) + b.reshape(1, 1, 1, -1)
    return jnp.maximum(y, 0.0) if relu else y


def regnet_reference(x_nchw, params):
    x = jnp.transpose(x_nchw, (0, 2, 3, 1)).astype(jnp.float32)
    st = params["stem"]
    x = _ref_conv_bn(x, st["w"], st["s"], st["b"], 2, 1)
    for blk, g in zip(params["blocks"], params["block_groups"]):
        sc = _ref_conv_bn(x, blk["proj_w"], blk["proj_s"], blk["proj_b"], 2, 0, relu=False)
        a = _ref_conv_bn(x, blk["a_w"], blk["a_s"], blk["a_b"], 1, 0)
        b = _ref_conv_bn(a, blk["b_w"], blk["b_s"], blk["b_b"], 2, 1, groups=g)
        c = _ref_conv_bn(b, blk["c_w"], blk["c_s"], blk["c_b"], 1, 0, relu=False)
        x = jnp.maximum(c + sc, 0.0)
    return jnp.mean(x, axis=(1, 2))


# ----------------------------------------------------------------------------
# Deterministic parameter construction (small RegNetX-style config)
# ----------------------------------------------------------------------------
def _conv_w(key, cout, cin, k):
    fan_in = cin * k * k
    return (jax.random.normal(key, (cout, cin, k, k), jnp.float32)
            * (2.0 / fan_in) ** 0.5)


def _bn(key, c):
    k1, k2, k3, k4 = jax.random.split(key, 4)
    gamma = 1.0 + 0.1 * jax.random.normal(k1, (c,), jnp.float32)
    beta = 0.1 * jax.random.normal(k2, (c,), jnp.float32)
    mean = 0.1 * jax.random.normal(k3, (c,), jnp.float32)
    var = 1.0 + 0.1 * jnp.abs(jax.random.normal(k4, (c,), jnp.float32))
    scale = gamma / jnp.sqrt(var + 1e-5)
    bias = beta - mean * scale
    return scale, bias


def make_params(key):
    ks = jax.random.split(key, 32)
    it = iter(ks)
    stem_w = _conv_w(next(it), 8, 3, 3)
    stem_s, stem_b = _bn(next(it), 8)
    params = {"stem": {"w": stem_w, "s": stem_s, "b": stem_b},
              "blocks": [], "block_groups": []}
    # (width_in, width_out, group_width) -> groups = width_out // group_width
    stage_cfg = [(8, 16, 8), (16, 32, 16)]
    for win, wout, gw in stage_cfg:
        groups = wout // gw
        blk = {
            "proj_w": _conv_w(next(it), wout, win, 1),
            "a_w": _conv_w(next(it), wout, win, 1),
            "b_w": _conv_w(next(it), wout, wout // groups, 3),
            "c_w": _conv_w(next(it), wout, wout, 1),
        }
        blk["proj_s"], blk["proj_b"] = _bn(next(it), wout)
        blk["a_s"], blk["a_b"] = _bn(next(it), wout)
        blk["b_s"], blk["b_b"] = _bn(next(it), wout)
        blk["c_s"], blk["c_b"] = _bn(next(it), wout)
        params["blocks"].append(blk)
        params["block_groups"].append(groups)
    return params


if __name__ == "__main__":
    key = jax.random.PRNGKey(0)
    k_params, k_x = jax.random.split(key)
    params = make_params(k_params)
    x = jax.random.normal(k_x, (2, 3, 16, 16), jnp.float32)       # NCHW RGB input

    fwd = jax.jit(functools.partial(regnet_forward, params=params))
    out = jax.block_until_ready(fwd(x))
    assert out.shape == (2, 32) and out.dtype == jnp.float32

    # numerics self-check vs a pure-JAX reference (loose tolerance: bf16 activations)
    ref = regnet_reference(x, params)
    if not jnp.allclose(out, ref, rtol=1e-1, atol=1e-1):
        raise AssertionError(
            f"mismatch vs reference: max|err|={float(jnp.max(jnp.abs(out - ref)))}")
    print("KERNEL_OK")
</pallas_src>

<mosaic_0001>
module attributes {stable_mosaic.version = 11 : i64} {
  func.func @_block_kernel(%arg0: i32, %arg1: memref<1x64x128xbf16, #tpu.memory_space<vmem>>, %arg2: memref<3x128x128xbf16, #tpu.memory_space<vmem>>, %arg3: memref<1152x128xbf16, #tpu.memory_space<vmem>>, %arg4: memref<8x128xf32, #tpu.memory_space<vmem>>, %arg5: memref<16x16xbf16, #tpu.memory_space<vmem>>, %arg6: memref<1x16x128xbf16, #tpu.memory_space<vmem>>, %arg7: memref<1x4x21x128xbf16, #tpu.memory_space<vmem>>, %arg8: memref<16x1152xbf16, #tpu.memory_space<vmem>>) attributes {dimension_semantics = [#tpu.dimension_semantics<parallel>], iteration_bounds = array<i64: 2>, scalar_prefetch = 0 : i64, scratch_operands = 2 : i64, tpu.core_type = #tpu.core_type<tc>, window_params = [{transform_indices = @transform_0, window_bounds = array<i64: 1, 64, 128>}, {pipeline_mode = #tpu.pipeline_mode<synchronous>, transform_indices = @transform_1, window_bounds = array<i64: 3, 128, 128>}, {pipeline_mode = #tpu.pipeline_mode<synchronous>, transform_indices = @transform_2, window_bounds = array<i64: 1152, 128>}, {pipeline_mode = #tpu.pipeline_mode<synchronous>, transform_indices = @transform_3, window_bounds = array<i64: 8, 128>}, {pipeline_mode = #tpu.pipeline_mode<synchronous>, transform_indices = @transform_4, window_bounds = array<i64: 16, 16>}, {transform_indices = @transform_5, window_bounds = array<i64: 1, 16, 128>}]} {
    %cst = arith.constant 0.000000e+00 : bf16
    %0 = vector.broadcast %cst : bf16 to vector<1x4x5x128xbf16>
    %c0 = arith.constant 0 : index
    %c0_0 = arith.constant 0 : index
    %c0_1 = arith.constant 0 : index
    %c0_2 = arith.constant 0 : index
    %1 = vector.load %arg7[%c0, %c0_0, %c0_1, %c0_2] : memref<1x4x21x128xbf16, #tpu.memory_space<vmem>>, vector<1x4x5x128xbf16>
    tpu.vector_store %arg7[%c0, %c0_0, %c0_1, %c0_2], %0 {strides = array<i32>} : memref<1x4x21x128xbf16, #tpu.memory_space<vmem>>, vector<1x4x5x128xbf16>,
    %2 = tpu.iota {dimensions = array<i32: 0>} : vector<16x128xi32>
    %c4_i32 = arith.constant 4 : i32
    %c0_i32 = arith.constant 0 : i32
    %3 = arith.cmpi eq, %c4_i32, %c0_i32 : i32
    %c1_i32 = arith.constant 1 : i32
    %4 = arith.select %3, %c1_i32, %c4_i32 : i32
    %5 = vector.broadcast %4 : i32 to vector<16x128xi32>
    %6 = arith.remsi %2, %5 : vector<16x128xi32>
    %c0_i32_3 = arith.constant 0 : i32
    %7 = vector.broadcast %c0_i32_3 : i32 to vector<16x128xi32>
    %8 = arith.cmpi ne, %6, %7 : vector<16x128xi32>
    %c0_i32_4 = arith.constant 0 : i32
    %9 = vector.broadcast %c0_i32_4 : i32 to vector<16x128xi32>
    %10 = arith.cmpi slt, %6, %9 : vector<16x128xi32>
    %c0_i32_5 = arith.constant 0 : i32
    %11 = arith.cmpi slt, %4, %c0_i32_5 : i32
    %12 = vector.broadcast %11 : i1 to vector<16x128xi1>
    %13 = vector.broadcast %12 : vector<16x128xi1> to vector<16x128xi1>
    %14 = arith.xori %10, %13 : vector<16x128xi1>
    %15 = arith.andi %14, %8 : vector<16x128xi1>
    %16 = vector.broadcast %4 : i32 to vector<16x128xi32>
    %17 = arith.addi %6, %16 : vector<16x128xi32>
    %18 = arith.select %15, %17, %6 : vector<16x128xi1>, vector<16x128xi32>
    %c0_i32_6 = arith.constant 0 : i32
    %19 = vector.broadcast %c0_i32_6 : i32 to vector<16x128xi32>
    %20 = arith.cmpi eq, %18, %19 : vector<16x128xi32>
    %c0_7 = arith.constant 0 : index
    %c0_8 = arith.constant 0 : index
    %c0_9 = arith.constant 0 : index
    %21 = vector.load %arg1[%c0_7, %c0_8, %c0_9] : memref<1x64x128xbf16, #tpu.memory_space<vmem>>, vector<1x64x128xbf16>
    %22 = vector.shape_cast %21 : vector<1x64x128xbf16> to vector<64x128xbf16>
    %c0_10 = arith.constant 0 : index
    %c0_11 = arith.constant 0 : index
    %c0_12 = arith.constant 0 : index
    %23 = vector.load %arg2[%c0_10, %c0_11, %c0_12] : memref<3x128x128xbf16, #tpu.memory_space<vmem>>, vector<1x128x128xbf16>
    %24 = vector.shape_cast %23 : vector<1x128x128xbf16> to vector<128x128xbf16>
    %cst_13 = arith.constant dense<0.000000e+00> : vector<64x128xf32>
    %25 = tpu.matmul %22, %24, %cst_13 {dimension_numbers = #tpu.dot_dimension_numbers<[1], [0], [0], [1], [0, 0, 1, 1], [], []>} : vector<64x128xbf16>, vector<128x128xbf16>, vector<64x128xf32> -> vector<64x128xf32>
    %c0_14 = arith.constant 0 : index
    %c0_15 = arith.constant 0 : index
    %26 = vector.load %arg4[%c0_14, %c0_15] : memref<8x128xf32, #tpu.memory_space<vmem>>, vector<1x128xf32>
    %27 = vector.broadcast %26 : vector<1x128xf32> to vector<64x128xf32>
    %28 = arith.mulf %25, %27 : vector<64x128xf32>
    %c1 = arith.constant 1 : index
    %c0_16 = arith.constant 0 : index
    %29 = vector.load %arg4[%c1, %c0_16] : memref<8x128xf32, #tpu.memory_space<vmem>>, vector<1x128xf32>
    %30 = vector.broadcast %29 : vector<1x128xf32> to vector<64x128xf32>
    %31 = arith.addf %28, %30 : vector<64x128xf32>
    %cst_17 = arith.constant 0.000000e+00 : f32
    %32 = vector.broadcast %cst_17 : f32 to vector<64x128xf32>
    %33 = arith.maximumf %31, %32 : vector<64x128xf32>
    %34 = arith.truncf %33 : vector<64x128xf32> to vector<64x128xbf16>
    %35 = vector.extract_strided_slice %34 {offsets = [0, 0], sizes = [16, 128], strides = [1, 1]} : vector<64x128xbf16> to vector<16x128xbf16>
    %c0_18 = arith.constant 0 : index
    %c0_19 = arith.constant 0 : index
    %c5 = arith.constant 5 : index
    %c0_20 = arith.constant 0 : index
    %36 = vector.load %arg7[%c0_18, %c0_19, %c5, %c0_20] : memref<1x4x21x128xbf16, #tpu.memory_space<vmem>>, vector<1x1x16x128xbf16>
    %37 = vector.shape_cast %36 : vector<1x1x16x128xbf16> to vector<16x128xbf16>
    %38 = vector.shape_cast %35 : vector<16x128xbf16> to vector<1x1x16x128xbf16>
    tpu.vector_store %arg7[%c0_18, %c0_19, %c5, %c0_20], %38 {strides = array<i32>} : memref<1x4x21x128xbf16, #tpu.memory_space<vmem>>, vector<1x1x16x128xbf16>,
    %39 = vector.extract_strided_slice %34 {offsets = [16, 0], sizes = [16, 128], strides = [1, 1]} : vector<64x128xbf16> to vector<16x128xbf16>
    %c0_21 = arith.constant 0 : index
    %c1_22 = arith.constant 1 : index
    %c5_23 = arith.constant 5 : index
    %c0_24 = arith.constant 0 : index
    %40 = vector.load %arg7[%c0_21, %c1_22, %c5_23, %c0_24] : memref<1x4x21x128xbf16, #tpu.memory_space<vmem>>, vector<1x1x16x128xbf16>
    %41 = vector.shape_cast %40 : vector<1x1x16x128xbf16> to vector<16x128xbf16>
    %42 = vector.shape_cast %39 : vector<16x128xbf16> to vector<1x1x16x128xbf16>
    tpu.vector_store %arg7[%c0_21, %c1_22, %c5_23, %c0_24], %42 {strides = array<i32>} : memref<1x4x21x128xbf16, #tpu.memory_space<vmem>>, vector<1x1x16x128xbf16>,
    %43 = vector.extract_strided_slice %34 {offsets = [32, 0], sizes = [16, 128], strides = [1, 1]} : vector<64x128xbf16> to vector<16x128xbf16>
    %c0_25 = arith.constant 0 : index
    %c2 = arith.constant 2 : index
    %c5_26 = arith.constant 5 : index
    %c0_27 = arith.constant 0 : index
    %44 = vector.load %arg7[%c0_25, %c2, %c5_26, %c0_27] : memref<1x4x21x128xbf16, #tpu.memory_space<vmem>>, vector<1x1x16x128xbf16>
    %45 = vector.shape_cast %44 : vector<1x1x16x128xbf16> to vector<16x128xbf16>
    %46 = vector.shape_cast %43 : vector<16x128xbf16> to vector<1x1x16x128xbf16>
    tpu.vector_store %arg7[%c0_25, %c2, %c5_26, %c0_27], %46 {strides = array<i32>} : memref<1x4x21x128xbf16, #tpu.memory_space<vmem>>, vector<1x1x16x128xbf16>,
    %47 = vector.extract_strided_slice %34 {offsets = [48, 0], sizes = [16, 128], strides = [1, 1]} : vector<64x128xbf16> to vector<16x128xbf16>
    %c0_28 = arith.constant 0 : index
    %c3 = arith.constant 3 : index
    %c5_29 = arith.constant 5 : index
    %c0_30 = arith.constant 0 : index
    %48 = vector.load %arg7[%c0_28, %c3, %c5_29, %c0_30] : memref<1x4x21x128xbf16, #tpu.memory_space<vmem>>, vector<1x1x16x128xbf16>
    %49 = vector.shape_cast %48 : vector<1x1x16x128xbf16> to vector<16x128xbf16>
    %50 = vector.shape_cast %47 : vector<16x128xbf16> to vector<1x1x16x128xbf16>
    tpu.vector_store %arg7[%c0_28, %c3, %c5_29, %c0_30], %50 {strides = array<i32>} : memref<1x4x21x128xbf16, #tpu.memory_space<vmem>>, vector<1x1x16x128xbf16>,
    %51 = vector.extract_strided_slice %21 {offsets = [0, 0, 0], sizes = [1, 16, 128], strides = [1, 1, 1]} : vector<1x64x128xbf16> to vector<1x16x128xbf16>
    %52 = vector.shape_cast %51 : vector<1x16x128xbf16> to vector<16x128xbf16>
    %c1_31 = arith.constant 1 : index
    %c0_32 = arith.constant 0 : index
    %c0_33 = arith.constant 0 : index
    %53 = vector.load %arg2[%c1_31, %c0_32, %c0_33] : memref<3x128x128xbf16, #tpu.memory_space<vmem>>, vector<1x128x128xbf16>
    %54 = vector.shape_cast %53 : vector<1x128x128xbf16> to vector<128x128xbf16>
    %cst_34 = arith.constant dense<0.000000e+00> : vector<16x128xf32>
    %55 = tpu.matmul %52, %54, %cst_34 {dimension_numbers = #tpu.dot_dimension_numbers<[1], [0], [0], [1], [0, 0, 1, 1], [], []>} : vector<16x128xbf16>, vector<128x128xbf16>, vector<16x128xf32> -> vector<16x128xf32>
    %c2_35 = arith.constant 2 : index
    %c0_36 = arith.constant 0 : index
    %56 = vector.load %arg4[%c2_35, %c0_36] : memref<8x128xf32, #tpu.memory_space<vmem>>, vector<1x128xf32>
    %57 = vector.broadcast %56 : vector<1x128xf32> to vector<16x128xf32>
    %58 = arith.mulf %55, %57 : vector<16x128xf32>
    %c3_37 = arith.constant 3 : index
    %c0_38 = arith.constant 0 : index
    %59 = vector.load %arg4[%c3_37, %c0_38] : memref<8x128xf32, #tpu.memory_space<vmem>>, vector<1x128xf32>
    %60 = vector.broadcast %59 : vector<1x128xf32> to vector<16x128xf32>
    %61 = arith.addf %58, %60 : vector<16x128xf32>
    %c0_39 = arith.constant 0 : index
    %c3_40 = arith.constant 3 : index
    %c0_41 = arith.constant 0 : index
    %c0_42 = arith.constant 0 : index
    %62 = vector.load %arg7[%c0_39, %c3_40, %c0_41, %c0_42] : memref<1x4x21x128xbf16, #tpu.memory_space<vmem>>, vector<1x1x16x128xbf16>
    %63 = vector.shape_cast %62 : vector<1x1x16x128xbf16> to vector<16x128xbf16>
    %cst_43 = arith.constant 0.000000e+00 : bf16
    %64 = vector.broadcast %cst_43 : bf16 to vector<16x128xbf16>
    %65 = arith.select %20, %64, %63 : vector<16x128xi1>, vector<16x128xbf16>
    %c0_44 = arith.constant 0 : index
    %c0_45 = arith.constant 0 : index
    %66 = vector.load %arg8[%c0_44, %c0_45] : memref<16x1152xbf16, #tpu.memory_space<vmem>>, vector<16x128xbf16>
    tpu.vector_store %arg8[%c0_44, %c0_45], %65 {strides = array<i32>} : memref<16x1152xbf16, #tpu.memory_space<vmem>>, vector<16x128xbf16>,
    %c0_46 = arith.constant 0 : index
    %c2_47 = arith.constant 2 : index
    %c1_48 = arith.constant 1 : index
    %c0_49 = arith.constant 0 : index
    %67 = vector.load %arg7[%c0_46, %c2_47, %c1_48, %c0_49] : memref<1x4x21x128xbf16, #tpu.memory_space<vmem>>, vector<1x1x16x128xbf16>
    %68 = vector.shape_cast %67 : vector<1x1x16x128xbf16> to vector<16x128xbf16>
    %c0_50 = arith.constant 0 : index
    %c128 = arith.constant 128 : index
    %69 = vector.load %arg8[%c0_50, %c128] : memref<16x1152xbf16, #tpu.memory_space<vmem>>, vector<16x128xbf16>
    tpu.vector_store %arg8[%c0_50, %c128], %68 {strides = array<i32>} : memref<16x1152xbf16, #tpu.memory_space<vmem>>, vector<16x128xbf16>,
    %c0_51 = arith.constant 0 : index
    %c3_52 = arith.constant 3 : index
    %c1_53 = arith.constant 1 : index
    %c0_54 = arith.constant 0 : index
    %70 = vector.load %arg7[%c0_51, %c3_52, %c1_53, %c0_54] : memref<1x4x21x128xbf16, #tpu.memory_space<vmem>>, vector<1x1x16x128xbf16>
    %71 = vector.shape_cast %70 : vector<1x1x16x128xbf16> to vector<16x128xbf16>
    %c0_55 = arith.constant 0 : index
    %c256 = arith.constant 256 : index
    %72 = vector.load %arg8[%c0_55, %c256] : memref<16x1152xbf16, #tpu.memory_space<vmem>>, vector<16x128xbf16>
    tpu.vector_store %arg8[%c0_55, %c256], %71 {strides = array<i32>} : memref<16x1152xbf16, #tpu.memory_space<vmem>>, vector<16x128xbf16>,
    %c0_56 = arith.constant 0 : index
    %c1_57 = arith.constant 1 : index
    %c4 = arith.constant 4 : index
    %c0_58 = arith.constant 0 : index
    %73 = vector.load %arg7[%c0_56, %c1_57, %c4, %c0_58] : memref<1x4x21x128xbf16, #tpu.memory_space<vmem>>, vector<1x1x16x128xbf16>
    %74 = vector.shape_cast %73 : vector<1x1x16x128xbf16> to vector<16x128xbf16>
    %cst_59 = arith.constant 0.000000e+00 : bf16
    %75 = vector.broadcast %cst_59 : bf16 to vector<16x128xbf16>
    %76 = arith.select %20, %75, %74 : vector<16x128xi1>, vector<16x128xbf16>
    %c0_60 = arith.constant 0 : index
    %c384 = arith.constant 384 : index
    %77 = vector.load %arg8[%c0_60, %c384] : memref<16x1152xbf16, #tpu.memory_space<vmem>>, vector<16x128xbf16>
    tpu.vector_store %arg8[%c0_60, %c384], %76 {strides = array<i32>} : memref<16x1152xbf16, #tpu.memory_space<vmem>>, vector<16x128xbf16>,
    %c0_61 = arith.constant 0 : index
    %c0_62 = arith.constant 0 : index
    %c5_63 = arith.constant 5 : index
    %c0_64 = arith.constant 0 : index
    %78 = vector.load %arg7[%c0_61, %c0_62, %c5_63, %c0_64] : memref<1x4x21x128xbf16, #tpu.memory_space<vmem>>, vector<1x1x16x128xbf16>
    %79 = vector.shape_cast %78 : vector<1x1x16x128xbf16> to vector<16x128xbf16>
    %c0_65 = arith.constant 0 : index
    %c512 = arith.constant 512 : index
    %80 = vector.load %arg8[%c0_65, %c512] : memref<16x1152xbf16, #tpu.memory_space<vmem>>, vector<16x128xbf16>
    tpu.vector_store %arg8[%c0_65, %c512], %79 {strides = array<i32>} : memref<16x1152xbf16, #tpu.memory_space<vmem>>, vector<16x128xbf16>,
    %c0_66 = arith.constant 0 : index
    %c1_67 = arith.constant 1 : index
    %c5_68 = arith.constant 5 : index
    %c0_69 = arith.constant 0 : index
    %81 = vector.load %arg7[%c0_66, %c1_67, %c5_68, %c0_69] : memref<1x4x21x128xbf16, #tpu.memory_space<vmem>>, vector<1x1x16x128xbf16>
    %82 = vector.shape_cast %81 : vector<1x1x16x128xbf16> to vector<16x128xbf16>
    %c0_70 = arith.constant 0 : index
    %c640 = arith.constant 640 : index
    %83 = vector.load %arg8[%c0_70, %c640] : memref<16x1152xbf16, #tpu.memory_space<vmem>>, vector<16x128xbf16>
    tpu.vector_store %arg8[%c0_70, %c640], %82 {strides = array<i32>} : memref<16x1152xbf16, #tpu.memory_space<vmem>>, vector<16x128xbf16>,
    %c0_71 = arith.constant 0 : index
    %c3_72 = arith.constant 3 : index
    %c4_73 = arith.constant 4 : index
    %c0_74 = arith.constant 0 : index
    %84 = vector.load %arg7[%c0_71, %c3_72, %c4_73, %c0_74] : memref<1x4x21x128xbf16, #tpu.memory_space<vmem>>, vector<1x1x16x128xbf16>
    %85 = vector.shape_cast %84 : vector<1x1x16x128xbf16> to vector<16x128xbf16>
    %cst_75 = arith.constant 0.000000e+00 : bf16
    %86 = vector.broadcast %cst_75 : bf16 to vector<16x128xbf16>
    %87 = arith.select %20, %86, %85 : vector<16x128xi1>, vector<16x128xbf16>
    %c0_76 = arith.constant 0 : index
    %c768 = arith.constant 768 : index
    %88 = vector.load %arg8[%c0_76, %c768] : memref<16x1152xbf16, #tpu.memory_space<vmem>>, vector<16x128xbf16>
    tpu.vector_store %arg8[%c0_76, %c768], %87 {strides = array<i32>} : memref<16x1152xbf16, #tpu.memory_space<vmem>>, vector<16x128xbf16>,
    %c0_77 = arith.constant 0 : index
    %c2_78 = arith.constant 2 : index
    %c5_79 = arith.constant 5 : index
    %c0_80 = arith.constant 0 : index
    %89 = vector.load %arg7[%c0_77, %c2_78, %c5_79, %c0_80] : memref<1x4x21x128xbf16, #tpu.memory_space<vmem>>, vector<1x1x16x128xbf16>
    %90 = vector.shape_cast %89 : vector<1x1x16x128xbf16> to vector<16x128xbf16>
    %c0_81 = arith.constant 0 : index
    %c896 = arith.constant 896 : index
    %91 = vector.load %arg8[%c0_81, %c896] : memref<16x1152xbf16, #tpu.memory_space<vmem>>, vector<16x128xbf16>
    tpu.vector_store %arg8[%c0_81, %c896], %90 {strides = array<i32>} : memref<16x1152xbf16, #tpu.memory_space<vmem>>, vector<16x128xbf16>,
    %c0_82 = arith.constant 0 : index
    %c3_83 = arith.constant 3 : index
    %c5_84 = arith.constant 5 : index
    %c0_85 = arith.constant 0 : index
    %92 = vector.load %arg7[%c0_82, %c3_83, %c5_84, %c0_85] : memref<1x4x21x128xbf16, #tpu.memory_space<vmem>>, vector<1x1x16x128xbf16>
    %93 = vector.shape_cast %92 : vector<1x1x16x128xbf16> to vector<16x128xbf16>
    %c0_86 = arith.constant 0 : index
    %c1024 = arith.constant 1024 : index
    %94 = vector.load %arg8[%c0_86, %c1024] : memref<16x1152xbf16, #tpu.memory_space<vmem>>, vector<16x128xbf16>
    tpu.vector_store %arg8[%c0_86, %c1024], %93 {strides = array<i32>} : memref<16x1152xbf16, #tpu.memory_space<vmem>>, vector<16x128xbf16>,
    %c0_87 = arith.constant 0 : index
    %c0_88 = arith.constant 0 : index
    %95 = vector.load %arg8[%c0_87, %c0_88] : memref<16x1152xbf16, #tpu.memory_space<vmem>>, vector<16x1152xbf16>
    %c0_89 = arith.constant 0 : index
    %c0_90 = arith.constant 0 : index
    %96 = vector.load %arg3[%c0_89, %c0_90] : memref<1152x128xbf16, #tpu.memory_space<vmem>>, vector<1152x128xbf16>
    %cst_91 = arith.constant dense<0.000000e+00> : vector<16x128xf32>
    %97 = tpu.matmul %95, %96, %cst_91 {dimension_numbers = #tpu.dot_dimension_numbers<[1], [0], [0], [1], [0, 0, 1, 1], [], []>} : vector<16x1152xbf16>, vector<1152x128xbf16>, vector<16x128xf32> -> vector<16x128xf32>
    %c4_92 = arith.constant 4 : index
    %c0_93 = arith.constant 0 : index
    %98 = vector.load %arg4[%c4_92, %c0_93] : memref<8x128xf32, #tpu.memory_space<vmem>>, vector<1x128xf32>
    %99 = vector.broadcast %98 : vector<1x128xf32> to vector<16x128xf32>
    %100 = arith.mulf %97, %99 : vector<16x128xf32>
    %c5_94 = arith.constant 5 : index
    %c0_95 = arith.constant 0 : index
    %101 = vector.load %arg4[%c5_94, %c0_95] : memref<8x128xf32, #tpu.memory_space<vmem>>, vector<1x128xf32>
    %102 = vector.broadcast %101 : vector<1x128xf32> to vector<16x128xf32>
    %103 = arith.addf %100, %102 : vector<16x128xf32>
    %cst_96 = arith.constant 0.000000e+00 : f32
    %104 = vector.broadcast %cst_96 : f32 to vector<16x128xf32>
    %105 = arith.maximumf %103, %104 : vector<16x128xf32>
    %106 = arith.truncf %105 : vector<16x128xf32> to vector<16x128xbf16>
    %c2_97 = arith.constant 2 : index
    %c0_98 = arith.constant 0 : index
    %c0_99 = arith.constant 0 : index
    %107 = vector.load %arg2[%c2_97, %c0_98, %c0_99] : memref<3x128x128xbf16, #tpu.memory_space<vmem>>, vector<1x128x128xbf16>
    %108 = vector.shape_cast %107 : vector<1x128x128xbf16> to vector<128x128xbf16>
    %cst_100 = arith.constant dense<0.000000e+00> : vector<16x128xf32>
    %109 = tpu.matmul %106, %108, %cst_100 {dimension_numbers = #tpu.dot_dimension_numbers<[1], [0], [0], [1], [0, 0, 1, 1], [], []>} : vector<16x128xbf16>, vector<128x128xbf16>, vector<16x128xf32> -> vector<16x128xf32>
    %c6 = arith.constant 6 : index
    %c0_101 = arith.constant 0 : index
    %110 = vector.load %arg4[%c6, %c0_101] : memref<8x128xf32, #tpu.memory_space<vmem>>, vector<1x128xf32>
    %111 = vector.broadcast %110 : vector<1x128xf32> to vector<16x128xf32>
    %112 = arith.mulf %109, %111 : vector<16x128xf32>
    %c7 = arith.constant 7 : index
    %c0_102 = arith.constant 0 : index
    %113 = vector.load %arg4[%c7, %c0_102] : memref<8x128xf32, #tpu.memory_space<vmem>>, vector<1x128xf32>
    %114 = vector.broadcast %113 : vector<1x128xf32> to vector<16x128xf32>
    %115 = arith.addf %112, %114 : vector<16x128xf32>
    %116 = arith.addf %115, %61 : vector<16x128xf32>
    %cst_103 = arith.constant 0.000000e+00 : f32
    %117 = vector.broadcast %cst_103 : f32 to vector<16x128xf32>
    %118 = arith.maximumf %116, %117 : vector<16x128xf32>
    %c0_104 = arith.constant 0 : index
    %c0_105 = arith.constant 0 : index
    %119 = vector.load %arg5[%c0_104, %c0_105] : memref<16x16xbf16, #tpu.memory_space<vmem>>, vector<16x16xbf16>
    %120 = arith.truncf %118 : vector<16x128xf32> to vector<16x128xbf16>
    %cst_106 = arith.constant dense<0.000000e+00> : vector<16x128xf32>
    %121 = tpu.matmul %119, %120, %cst_106 {dimension_numbers = #tpu.dot_dimension_numbers<[1], [0], [0], [1], [0, 0, 1, 1], [], []>} : vector<16x16xbf16>, vector<16x128xbf16>, vector<16x128xf32> -> vector<16x128xf32>
    %122 = arith.truncf %121 : vector<16x128xf32> to vector<16x128xbf16>
    %c0_107 = arith.constant 0 : index
    %c0_108 = arith.constant 0 : index
    %c0_109 = arith.constant 0 : index
    %123 = vector.load %arg6[%c0_107, %c0_108, %c0_109] : memref<1x16x128xbf16, #tpu.memory_space<vmem>>, vector<1x16x128xbf16>
    %124 = vector.shape_cast %123 : vector<1x16x128xbf16> to vector<16x128xbf16>
    %125 = vector.shape_cast %122 : vector<16x128xbf16> to vector<1x16x128xbf16>
    tpu.vector_store %arg6[%c0_107, %c0_108, %c0_109], %125 {strides = array<i32>} : memref<1x16x128xbf16, #tpu.memory_space<vmem>>, vector<1x16x128xbf16>,
    return
  }
  func.func @transform_0(%arg0: i32) -> (i32, i32, i32) {
    %c0_i32 = arith.constant 0 : i32
    %c0_i32_0 = arith.constant 0 : i32
    %c0_i32_1 = arith.constant 0 : i32
    return %arg0, %c0_i32, %c0_i32_0 : i32, i32, i32
  }
  func.func @transform_1(%arg0: i32) -> (i32, i32, i32) {
    %c0_i32 = arith.constant 0 : i32
    %c0_i32_0 = arith.constant 0 : i32
    %c0_i32_1 = arith.constant 0 : i32
    %c0_i32_2 = arith.constant 0 : i32
    return %c0_i32, %c0_i32_0, %c0_i32_1 : i32, i32, i32
  }
  func.func @transform_2(%arg0: i32) -> (i32, i32) {
    %c0_i32 = arith.constant 0 : i32
    %c0_i32_0 = arith.constant 0 : i32
    %c0_i32_1 = arith.constant 0 : i32
    return %c0_i32, %c0_i32_0 : i32, i32
  }
  func.func @transform_3(%arg0: i32) -> (i32, i32) {
    %c0_i32 = arith.constant 0 : i32
    %c0_i32_0 = arith.constant 0 : i32
    %c0_i32_1 = arith.constant 0 : i32
    return %c0_i32, %c0_i32_0 : i32, i32
  }
  func.func @transform_4(%arg0: i32) -> (i32, i32) {
    %c0_i32 = arith.constant 0 : i32
    %c0_i32_0 = arith.constant 0 : i32
    %c0_i32_1 = arith.constant 0 : i32
    return %c0_i32, %c0_i32_0 : i32, i32
  }
  func.func @transform_5(%arg0: i32) -> (i32, i32, i32) {
    %c0_i32 = arith.constant 0 : i32
    %c0_i32_0 = arith.constant 0 : i32
    %c0_i32_1 = arith.constant 0 : i32
    return %arg0, %c0_i32, %c0_i32_0 : i32, i32, i32
  }
}

module attributes {stable_mosaic.version = 11 : i64} {
  func.func @_stem_kernel(%arg0: i32, %arg1: memref<1x256x128xbf16, #tpu.memory_space<vmem>>, %arg2: memref<1152x128xbf16, #tpu.memory_space<vmem>>, %arg3: memref<2x128xf32, #tpu.memory_space<vmem>>, %arg4: memref<64x64xbf16, #tpu.memory_space<vmem>>, %arg5: memref<1x64x128xbf16, #tpu.memory_space<vmem>>, %arg6: memref<1x4x73x128xbf16, #tpu.memory_space<vmem>>, %arg7: memref<64x1152xbf16, #tpu.memory_space<vmem>>) attributes {dimension_semantics = [#tpu.dimension_semantics<parallel>], iteration_bounds = array<i64: 2>, scalar_prefetch = 0 : i64, scratch_operands = 2 : i64, tpu.core_type = #tpu.core_type<tc>, window_params = [{transform_indices = @transform_0, window_bounds = array<i64: 1, 256, 128>}, {pipeline_mode = #tpu.pipeline_mode<synchronous>, transform_indices = @transform_1, window_bounds = array<i64: 1152, 128>}, {pipeline_mode = #tpu.pipeline_mode<synchronous>, transform_indices = @transform_2, window_bounds = array<i64: 2, 128>}, {pipeline_mode = #tpu.pipeline_mode<synchronous>, transform_indices = @transform_3, window_bounds = array<i64: 64, 64>}, {transform_indices = @transform_4, window_bounds = array<i64: 1, 64, 128>}]} {
    %cst = arith.constant 0.000000e+00 : bf16
    %0 = vector.broadcast %cst : bf16 to vector<1x4x9x128xbf16>
    %c0 = arith.constant 0 : index
    %c0_0 = arith.constant 0 : index
    %c0_1 = arith.constant 0 : index
    %c0_2 = arith.constant 0 : index
    %1 = vector.load %arg6[%c0, %c0_0, %c0_1, %c0_2] : memref<1x4x73x128xbf16, #tpu.memory_space<vmem>>, vector<1x4x9x128xbf16>
    tpu.vector_store %arg6[%c0, %c0_0, %c0_1, %c0_2], %0 {strides = array<i32>} : memref<1x4x73x128xbf16, #tpu.memory_space<vmem>>, vector<1x4x9x128xbf16>,
    %2 = tpu.iota {dimensions = array<i32: 0>} : vector<64x128xi32>
    %c8_i32 = arith.constant 8 : i32
    %c0_i32 = arith.constant 0 : i32
    %3 = arith.cmpi eq, %c8_i32, %c0_i32 : i32
    %c1_i32 = arith.constant 1 : i32
    %4 = arith.select %3, %c1_i32, %c8_i32 : i32
    %5 = vector.broadcast %4 : i32 to vector<64x128xi32>
    %6 = arith.remsi %2, %5 : vector<64x128xi32>
    %c0_i32_3 = arith.constant 0 : i32
    %7 = vector.broadcast %c0_i32_3 : i32 to vector<64x128xi32>
    %8 = arith.cmpi ne, %6, %7 : vector<64x128xi32>
    %c0_i32_4 = arith.constant 0 : i32
    %9 = vector.broadcast %c0_i32_4 : i32 to vector<64x128xi32>
    %10 = arith.cmpi slt, %6, %9 : vector<64x128xi32>
    %c0_i32_5 = arith.constant 0 : i32
    %11 = arith.cmpi slt, %4, %c0_i32_5 : i32
    %12 = vector.broadcast %11 : i1 to vector<64x128xi1>
    %13 = vector.broadcast %12 : vector<64x128xi1> to vector<64x128xi1>
    %14 = arith.xori %10, %13 : vector<64x128xi1>
    %15 = arith.andi %14, %8 : vector<64x128xi1>
    %16 = vector.broadcast %4 : i32 to vector<64x128xi32>
    %17 = arith.addi %6, %16 : vector<64x128xi32>
    %18 = arith.select %15, %17, %6 : vector<64x128xi1>, vector<64x128xi32>
    %c0_i32_6 = arith.constant 0 : i32
    %19 = vector.broadcast %c0_i32_6 : i32 to vector<64x128xi32>
    %20 = arith.cmpi eq, %18, %19 : vector<64x128xi32>
    %c0_7 = arith.constant 0 : index
    %c0_8 = arith.constant 0 : index
    %c0_9 = arith.constant 0 : index
    %21 = vector.load %arg1[%c0_7, %c0_8, %c0_9] : memref<1x256x128xbf16, #tpu.memory_space<vmem>>, vector<1x64x128xbf16>
    %22 = vector.shape_cast %21 : vector<1x64x128xbf16> to vector<64x128xbf16>
    %c0_10 = arith.constant 0 : index
    %c0_11 = arith.constant 0 : index
    %c9 = arith.constant 9 : index
    %c0_12 = arith.constant 0 : index
    %23 = vector.load %arg6[%c0_10, %c0_11, %c9, %c0_12] : memref<1x4x73x128xbf16, #tpu.memory_space<vmem>>, vector<1x1x64x128xbf16>
    %24 = vector.shape_cast %23 : vector<1x1x64x128xbf16> to vector<64x128xbf16>
    %25 = vector.shape_cast %22 : vector<64x128xbf16> to vector<1x1x64x128xbf16>
    tpu.vector_store %arg6[%c0_10, %c0_11, %c9, %c0_12], %25 {strides = array<i32>} : memref<1x4x73x128xbf16, #tpu.memory_space<vmem>>, vector<1x1x64x128xbf16>,
    %c0_13 = arith.constant 0 : index
    %c64 = arith.constant 64 : index
    %c0_14 = arith.constant 0 : index
    %26 = vector.load %arg1[%c0_13, %c64, %c0_14] : memref<1x256x128xbf16, #tpu.memory_space<vmem>>, vector<1x64x128xbf16>
    %27 = vector.shape_cast %26 : vector<1x64x128xbf16> to vector<64x128xbf16>
    %c0_15 = arith.constant 0 : index
    %c1 = arith.constant 1 : index
    %c9_16 = arith.constant 9 : index
    %c0_17 = arith.constant 0 : index
    %28 = vector.load %arg6[%c0_15, %c1, %c9_16, %c0_17] : memref<1x4x73x128xbf16, #tpu.memory_space<vmem>>, vector<1x1x64x128xbf16>
    %29 = vector.shape_cast %28 : vector<1x1x64x128xbf16> to vector<64x128xbf16>
    %30 = vector.shape_cast %27 : vector<64x128xbf16> to vector<1x1x64x128xbf16>
    tpu.vector_store %arg6[%c0_15, %c1, %c9_16, %c0_17], %30 {strides = array<i32>} : memref<1x4x73x128xbf16, #tpu.memory_space<vmem>>, vector<1x1x64x128xbf16>,
    %c0_18 = arith.constant 0 : index
    %c128 = arith.constant 128 : index
    %c0_19 = arith.constant 0 : index
    %31 = vector.load %arg1[%c0_18, %c128, %c0_19] : memref<1x256x128xbf16, #tpu.memory_space<vmem>>, vector<1x64x128xbf16>
    %32 = vector.shape_cast %31 : vector<1x64x128xbf16> to vector<64x128xbf16>
    %c0_20 = arith.constant 0 : index
    %c2 = arith.constant 2 : index
    %c9_21 = arith.constant 9 : index
    %c0_22 = arith.constant 0 : index
    %33 = vector.load %arg6[%c0_20, %c2, %c9_21, %c0_22] : memref<1x4x73x128xbf16, #tpu.memory_space<vmem>>, vector<1x1x64x128xbf16>
    %34 = vector.shape_cast %33 : vector<1x1x64x128xbf16> to vector<64x128xbf16>
    %35 = vector.shape_cast %32 : vector<64x128xbf16> to vector<1x1x64x128xbf16>
    tpu.vector_store %arg6[%c0_20, %c2, %c9_21, %c0_22], %35 {strides = array<i32>} : memref<1x4x73x128xbf16, #tpu.memory_space<vmem>>, vector<1x1x64x128xbf16>,
    %c0_23 = arith.constant 0 : index
    %c192 = arith.constant 192 : index
    %c0_24 = arith.constant 0 : index
    %36 = vector.load %arg1[%c0_23, %c192, %c0_24] : memref<1x256x128xbf16, #tpu.memory_space<vmem>>, vector<1x64x128xbf16>
    %37 = vector.shape_cast %36 : vector<1x64x128xbf16> to vector<64x128xbf16>
    %c0_25 = arith.constant 0 : index
    %c3 = arith.constant 3 : index
    %c9_26 = arith.constant 9 : index
    %c0_27 = arith.constant 0 : index
    %38 = vector.load %arg6[%c0_25, %c3, %c9_26, %c0_27] : memref<1x4x73x128xbf16, #tpu.memory_space<vmem>>, vector<1x1x64x128xbf16>
    %39 = vector.shape_cast %38 : vector<1x1x64x128xbf16> to vector<64x128xbf16>
    %40 = vector.shape_cast %37 : vector<64x128xbf16> to vector<1x1x64x128xbf16>
    tpu.vector_store %arg6[%c0_25, %c3, %c9_26, %c0_27], %40 {strides = array<i32>} : memref<1x4x73x128xbf16, #tpu.memory_space<vmem>>, vector<1x1x64x128xbf16>,
    %c0_28 = arith.constant 0 : index
    %c0_29 = arith.constant 0 : index
    %41 = vector.load %arg3[%c0_28, %c0_29] : memref<2x128xf32, #tpu.memory_space<vmem>>, vector<1x128xf32>
    %c1_30 = arith.constant 1 : index
    %c0_31 = arith.constant 0 : index
    %42 = vector.load %arg3[%c1_30, %c0_31] : memref<2x128xf32, #tpu.memory_space<vmem>>, vector<1x128xf32>
    %c0_32 = arith.constant 0 : index
    %c3_33 = arith.constant 3 : index
    %c0_34 = arith.constant 0 : index
    %c0_35 = arith.constant 0 : index
    %43 = vector.load %arg6[%c0_32, %c3_33, %c0_34, %c0_35] : memref<1x4x73x128xbf16, #tpu.memory_space<vmem>>, vector<1x1x64x128xbf16>
    %44 = vector.shape_cast %43 : vector<1x1x64x128xbf16> to vector<64x128xbf16>
    %cst_36 = arith.constant 0.000000e+00 : bf16
    %45 = vector.broadcast %cst_36 : bf16 to vector<64x128xbf16>
    %46 = arith.select %20, %45, %44 : vector<64x128xi1>, vector<64x128xbf16>
    %c0_37 = arith.constant 0 : index
    %c0_38 = arith.constant 0 : index
    %47 = vector.load %arg7[%c0_37, %c0_38] : memref<64x1152xbf16, #tpu.memory_space<vmem>>, vector<64x128xbf16>
    tpu.vector_store %arg7[%c0_37, %c0_38], %46 {strides = array<i32>} : memref<64x1152xbf16, #tpu.memory_space<vmem>>, vector<64x128xbf16>,
    %c0_39 = arith.constant 0 : index
    %c2_40 = arith.constant 2 : index
    %c1_41 = arith.constant 1 : index
    %c0_42 = arith.constant 0 : index
    %48 = vector.load %arg6[%c0_39, %c2_40, %c1_41, %c0_42] : memref<1x4x73x128xbf16, #tpu.memory_space<vmem>>, vector<1x1x64x128xbf16>
    %49 = vector.shape_cast %48 : vector<1x1x64x128xbf16> to vector<64x128xbf16>
    %c0_43 = arith.constant 0 : index
    %c128_44 = arith.constant 128 : index
    %50 = vector.load %arg7[%c0_43, %c128_44] : memref<64x1152xbf16, #tpu.memory_space<vmem>>, vector<64x128xbf16>
    tpu.vector_store %arg7[%c0_43, %c128_44], %49 {strides = array<i32>} : memref<64x1152xbf16, #tpu.memory_space<vmem>>, vector<64x128xbf16>,
    %c0_45 = arith.constant 0 : index
    %c3_46 = arith.constant 3 : index
    %c1_47 = arith.constant 1 : index
    %c0_48 = arith.constant 0 : index
    %51 = vector.load %arg6[%c0_45, %c3_46, %c1_47, %c0_48] : memref<1x4x73x128xbf16, #tpu.memory_space<vmem>>, vector<1x1x64x128xbf16>
    %52 = vector.shape_cast %51 : vector<1x1x64x128xbf16> to vector<64x128xbf16>
    %c0_49 = arith.constant 0 : index
    %c256 = arith.constant 256 : index
    %53 = vector.load %arg7[%c0_49, %c256] : memref<64x1152xbf16, #tpu.memory_space<vmem>>, vector<64x128xbf16>
    tpu.vector_store %arg7[%c0_49, %c256], %52 {strides = array<i32>} : memref<64x1152xbf16, #tpu.memory_space<vmem>>, vector<64x128xbf16>,
    %c0_50 = arith.constant 0 : index
    %c1_51 = arith.constant 1 : index
    %c8 = arith.constant 8 : index
    %c0_52 = arith.constant 0 : index
    %54 = vector.load %arg6[%c0_50, %c1_51, %c8, %c0_52] : memref<1x4x73x128xbf16, #tpu.memory_space<vmem>>, vector<1x1x64x128xbf16>
    %55 = vector.shape_cast %54 : vector<1x1x64x128xbf16> to vector<64x128xbf16>
    %cst_53 = arith.constant 0.000000e+00 : bf16
    %56 = vector.broadcast %cst_53 : bf16 to vector<64x128xbf16>
    %57 = arith.select %20, %56, %55 : vector<64x128xi1>, vector<64x128xbf16>
    %c0_54 = arith.constant 0 : index
    %c384 = arith.constant 384 : index
    %58 = vector.load %arg7[%c0_54, %c384] : memref<64x1152xbf16, #tpu.memory_space<vmem>>, vector<64x128xbf16>
    tpu.vector_store %arg7[%c0_54, %c384], %57 {strides = array<i32>} : memref<64x1152xbf16, #tpu.memory_space<vmem>>, vector<64x128xbf16>,
    %c0_55 = arith.constant 0 : index
    %c0_56 = arith.constant 0 : index
    %c9_57 = arith.constant 9 : index
    %c0_58 = arith.constant 0 : index
    %59 = vector.load %arg6[%c0_55, %c0_56, %c9_57, %c0_58] : memref<1x4x73x128xbf16, #tpu.memory_space<vmem>>, vector<1x1x64x128xbf16>
    %60 = vector.shape_cast %59 : vector<1x1x64x128xbf16> to vector<64x128xbf16>
    %c0_59 = arith.constant 0 : index
    %c512 = arith.constant 512 : index
    %61 = vector.load %arg7[%c0_59, %c512] : memref<64x1152xbf16, #tpu.memory_space<vmem>>, vector<64x128xbf16>
    tpu.vector_store %arg7[%c0_59, %c512], %60 {strides = array<i32>} : memref<64x1152xbf16, #tpu.memory_space<vmem>>, vector<64x128xbf16>,
    %c0_60 = arith.constant 0 : index
    %c1_61 = arith.constant 1 : index
    %c9_62 = arith.constant 9 : index
    %c0_63 = arith.constant 0 : index
    %62 = vector.load %arg6[%c0_60, %c1_61, %c9_62, %c0_63] : memref<1x4x73x128xbf16, #tpu.memory_space<vmem>>, vector<1x1x64x128xbf16>
    %63 = vector.shape_cast %62 : vector<1x1x64x128xbf16> to vector<64x128xbf16>
    %c0_64 = arith.constant 0 : index
    %c640 = arith.constant 640 : index
    %64 = vector.load %arg7[%c0_64, %c640] : memref<64x1152xbf16, #tpu.memory_space<vmem>>, vector<64x128xbf16>
    tpu.vector_store %arg7[%c0_64, %c640], %63 {strides = array<i32>} : memref<64x1152xbf16, #tpu.memory_space<vmem>>, vector<64x128xbf16>,
    %c0_65 = arith.constant 0 : index
    %c3_66 = arith.constant 3 : index
    %c8_67 = arith.constant 8 : index
    %c0_68 = arith.constant 0 : index
    %65 = vector.load %arg6[%c0_65, %c3_66, %c8_67, %c0_68] : memref<1x4x73x128xbf16, #tpu.memory_space<vmem>>, vector<1x1x64x128xbf16>
    %66 = vector.shape_cast %65 : vector<1x1x64x128xbf16> to vector<64x128xbf16>
    %cst_69 = arith.constant 0.000000e+00 : bf16
    %67 = vector.broadcast %cst_69 : bf16 to vector<64x128xbf16>
    %68 = arith.select %20, %67, %66 : vector<64x128xi1>, vector<64x128xbf16>
    %c0_70 = arith.constant 0 : index
    %c768 = arith.constant 768 : index
    %69 = vector.load %arg7[%c0_70, %c768] : memref<64x1152xbf16, #tpu.memory_space<vmem>>, vector<64x128xbf16>
    tpu.vector_store %arg7[%c0_70, %c768], %68 {strides = array<i32>} : memref<64x1152xbf16, #tpu.memory_space<vmem>>, vector<64x128xbf16>,
    %c0_71 = arith.constant 0 : index
    %c2_72 = arith.constant 2 : index
    %c9_73 = arith.constant 9 : index
    %c0_74 = arith.constant 0 : index
    %70 = vector.load %arg6[%c0_71, %c2_72, %c9_73, %c0_74] : memref<1x4x73x128xbf16, #tpu.memory_space<vmem>>, vector<1x1x64x128xbf16>
    %71 = vector.shape_cast %70 : vector<1x1x64x128xbf16> to vector<64x128xbf16>
    %c0_75 = arith.constant 0 : index
    %c896 = arith.constant 896 : index
    %72 = vector.load %arg7[%c0_75, %c896] : memref<64x1152xbf16, #tpu.memory_space<vmem>>, vector<64x128xbf16>
    tpu.vector_store %arg7[%c0_75, %c896], %71 {strides = array<i32>} : memref<64x1152xbf16, #tpu.memory_space<vmem>>, vector<64x128xbf16>,
    %c0_76 = arith.constant 0 : index
    %c3_77 = arith.constant 3 : index
    %c9_78 = arith.constant 9 : index
    %c0_79 = arith.constant 0 : index
    %73 = vector.load %arg6[%c0_76, %c3_77, %c9_78, %c0_79] : memref<1x4x73x128xbf16, #tpu.memory_space<vmem>>, vector<1x1x64x128xbf16>
    %74 = vector.shape_cast %73 : vector<1x1x64x128xbf16> to vector<64x128xbf16>
    %c0_80 = arith.constant 0 : index
    %c1024 = arith.constant 1024 : index
    %75 = vector.load %arg7[%c0_80, %c1024] : memref<64x1152xbf16, #tpu.memory_space<vmem>>, vector<64x128xbf16>
    tpu.vector_store %arg7[%c0_80, %c1024], %74 {strides = array<i32>} : memref<64x1152xbf16, #tpu.memory_space<vmem>>, vector<64x128xbf16>,
    %c0_81 = arith.constant 0 : index
    %c0_82 = arith.constant 0 : index
    %76 = vector.load %arg7[%c0_81, %c0_82] : memref<64x1152xbf16, #tpu.memory_space<vmem>>, vector<64x1152xbf16>
    %c0_83 = arith.constant 0 : index
    %c0_84 = arith.constant 0 : index
    %77 = vector.load %arg2[%c0_83, %c0_84] : memref<1152x128xbf16, #tpu.memory_space<vmem>>, vector<1152x128xbf16>
    %cst_85 = arith.constant dense<0.000000e+00> : vector<64x128xf32>
    %78 = tpu.matmul %76, %77, %cst_85 {dimension_numbers = #tpu.dot_dimension_numbers<[1], [0], [0], [1], [0, 0, 1, 1], [], []>} : vector<64x1152xbf16>, vector<1152x128xbf16>, vector<64x128xf32> -> vector<64x128xf32>
    %79 = vector.broadcast %41 : vector<1x128xf32> to vector<64x128xf32>
    %80 = arith.mulf %78, %79 : vector<64x128xf32>
    %81 = vector.broadcast %42 : vector<1x128xf32> to vector<64x128xf32>
    %82 = arith.addf %80, %81 : vector<64x128xf32>
    %cst_86 = arith.constant 0.000000e+00 : f32
    %83 = vector.broadcast %cst_86 : f32 to vector<64x128xf32>
    %84 = arith.maximumf %82, %83 : vector<64x128xf32>
    %85 = arith.truncf %84 : vector<64x128xf32> to vector<64x128xbf16>
    %c0_87 = arith.constant 0 : index
    %c0_88 = arith.constant 0 : index
    %86 = vector.load %arg4[%c0_87, %c0_88] : memref<64x64xbf16, #tpu.memory_space<vmem>>, vector<64x64xbf16>
    %cst_89 = arith.constant dense<0.000000e+00> : vector<64x128xf32>
    %87 = tpu.matmul %86, %85, %cst_89 {dimension_numbers = #tpu.dot_dimension_numbers<[1], [0], [0], [1], [0, 0, 1, 1], [], []>} : vector<64x64xbf16>, vector<64x128xbf16>, vector<64x128xf32> -> vector<64x128xf32>
    %88 = arith.truncf %87 : vector<64x128xf32> to vector<64x128xbf16>
    %c0_90 = arith.constant 0 : index
    %c0_91 = arith.constant 0 : index
    %c0_92 = arith.constant 0 : index
    %89 = vector.load %arg5[%c0_90, %c0_91, %c0_92] : memref<1x64x128xbf16, #tpu.memory_space<vmem>>, vector<1x64x128xbf16>
    %90 = vector.shape_cast %89 : vector<1x64x128xbf16> to vector<64x128xbf16>
    %91 = vector.shape_cast %88 : vector<64x128xbf16> to vector<1x64x128xbf16>
    tpu.vector_store %arg5[%c0_90, %c0_91, %c0_92], %91 {strides = array<i32>} : memref<1x64x128xbf16, #tpu.memory_space<vmem>>, vector<1x64x128xbf16>,
    return
  }
  func.func @transform_0(%arg0: i32) -> (i32, i32, i32) {
    %c0_i32 = arith.constant 0 : i32
    %c0_i32_0 = arith.constant 0 : i32
    %c0_i32_1 = arith.constant 0 : i32
    return %arg0, %c0_i32, %c0_i32_0 : i32, i32, i32
  }
  func.func @transform_1(%arg0: i32) -> (i32, i32) {
    %c0_i32 = arith.constant 0 : i32
    %c0_i32_0 = arith.constant 0 : i32
    %c0_i32_1 = arith.constant 0 : i32
    return %c0_i32, %c0_i32_0 : i32, i32
  }
  func.func @transform_2(%arg0: i32) -> (i32, i32) {
    %c0_i32 = arith.constant 0 : i32
    %c0_i32_0 = arith.constant 0 : i32
    %c0_i32_1 = arith.constant 0 : i32
    return %c0_i32, %c0_i32_0 : i32, i32
  }
  func.func @transform_3(%arg0: i32) -> (i32, i32) {
    %c0_i32 = arith.constant 0 : i32
    %c0_i32_0 = arith.constant 0 : i32
    %c0_i32_1 = arith.constant 0 : i32
    return %c0_i32, %c0_i32_0 : i32, i32
  }
  func.func @transform_4(%arg0: i32) -> (i32, i32, i32) {
    %c0_i32 = arith.constant 0 : i32
    %c0_i32_0 = arith.constant 0 : i32
    %c0_i32_1 = arith.constant 0 : i32
    return %arg0, %c0_i32, %c0_i32_0 : i32, i32, i32
  }
}

module attributes {stable_mosaic.version = 11 : i64} {
  func.func @_block_kernel(%arg0: i32, %arg1: memref<1x16x128xbf16, #tpu.memory_space<vmem>>, %arg2: memref<3x128x128xbf16, #tpu.memory_space<vmem>>, %arg3: memref<1152x128xbf16, #tpu.memory_space<vmem>>, %arg4: memref<8x128xf32, #tpu.memory_space<vmem>>, %arg5: memref<1x1x128xf32, #tpu.memory_space<vmem>>, %arg6: memref<1x4x7x128xbf16, #tpu.memory_space<vmem>>, %arg7: memref<4x1152xbf16, #tpu.memory_space<vmem>>) attributes {dimension_semantics = [#tpu.dimension_semantics<parallel>], iteration_bounds = array<i64: 2>, scalar_prefetch = 0 : i64, scratch_operands = 2 : i64, tpu.core_type = #tpu.core_type<tc>, window_params = [{transform_indices = @transform_0, window_bounds = array<i64: 1, 16, 128>}, {pipeline_mode = #tpu.pipeline_mode<synchronous>, transform_indices = @transform_1, window_bounds = array<i64: 3, 128, 128>}, {pipeline_mode = #tpu.pipeline_mode<synchronous>, transform_indices = @transform_2, window_bounds = array<i64: 1152, 128>}, {pipeline_mode = #tpu.pipeline_mode<synchronous>, transform_indices = @transform_3, window_bounds = array<i64: 8, 128>}, {transform_indices = @transform_4, window_bounds = array<i64: 1, 1, 128>}]} {
    %cst = arith.constant 0.000000e+00 : bf16
    %0 = vector.broadcast %cst : bf16 to vector<1x4x3x128xbf16>
    %c0 = arith.constant 0 : index
    %c0_0 = arith.constant 0 : index
    %c0_1 = arith.constant 0 : index
    %c0_2 = arith.constant 0 : index
    %1 = vector.load %arg6[%c0, %c0_0, %c0_1, %c0_2] : memref<1x4x7x128xbf16, #tpu.memory_space<vmem>>, vector<1x4x3x128xbf16>
    tpu.vector_store %arg6[%c0, %c0_0, %c0_1, %c0_2], %0 {strides = array<i32>} : memref<1x4x7x128xbf16, #tpu.memory_space<vmem>>, vector<1x4x3x128xbf16>,
    %2 = tpu.iota {dimensions = array<i32: 0>} : vector<4x128xi32>
    %c2_i32 = arith.constant 2 : i32
    %c0_i32 = arith.constant 0 : i32
    %3 = arith.cmpi eq, %c2_i32, %c0_i32 : i32
    %c1_i32 = arith.constant 1 : i32
    %4 = arith.select %3, %c1_i32, %c2_i32 : i32
    %5 = vector.broadcast %4 : i32 to vector<4x128xi32>
    %6 = arith.remsi %2, %5 : vector<4x128xi32>
    %c0_i32_3 = arith.constant 0 : i32
    %7 = vector.broadcast %c0_i32_3 : i32 to vector<4x128xi32>
    %8 = arith.cmpi ne, %6, %7 : vector<4x128xi32>
    %c0_i32_4 = arith.constant 0 : i32
    %9 = vector.broadcast %c0_i32_4 : i32 to vector<4x128xi32>
    %10 = arith.cmpi slt, %6, %9 : vector<4x128xi32>
    %c0_i32_5 = arith.constant 0 : i32
    %11 = arith.cmpi slt, %4, %c0_i32_5 : i32
    %12 = vector.broadcast %11 : i1 to vector<4x128xi1>
    %13 = vector.broadcast %12 : vector<4x128xi1> to vector<4x128xi1>
    %14 = arith.xori %10, %13 : vector<4x128xi1>
    %15 = arith.andi %14, %8 : vector<4x128xi1>
    %16 = vector.broadcast %4 : i32 to vector<4x128xi32>
    %17 = arith.addi %6, %16 : vector<4x128xi32>
    %18 = arith.select %15, %17, %6 : vector<4x128xi1>, vector<4x128xi32>
    %c0_i32_6 = arith.constant 0 : i32
    %19 = vector.broadcast %c0_i32_6 : i32 to vector<4x128xi32>
    %20 = arith.cmpi eq, %18, %19 : vector<4x128xi32>
    %c0_7 = arith.constant 0 : index
    %c0_8 = arith.constant 0 : index
    %c0_9 = arith.constant 0 : index
    %21 = vector.load %arg1[%c0_7, %c0_8, %c0_9] : memref<1x16x128xbf16, #tpu.memory_space<vmem>>, vector<1x16x128xbf16>
    %22 = vector.shape_cast %21 : vector<1x16x128xbf16> to vector<16x128xbf16>
    %c0_10 = arith.constant 0 : index
    %c0_11 = arith.constant 0 : index
    %c0_12 = arith.constant 0 : index
    %23 = vector.load %arg2[%c0_10, %c0_11, %c0_12] : memref<3x128x128xbf16, #tpu.memory_space<vmem>>, vector<1x128x128xbf16>
    %24 = vector.shape_cast %23 : vector<1x128x128xbf16> to vector<128x128xbf16>
    %cst_13 = arith.constant dense<0.000000e+00> : vector<16x128xf32>
    %25 = tpu.matmul %22, %24, %cst_13 {dimension_numbers = #tpu.dot_dimension_numbers<[1], [0], [0], [1], [0, 0, 1, 1], [], []>} : vector<16x128xbf16>, vector<128x128xbf16>, vector<16x128xf32> -> vector<16x128xf32>
    %c0_14 = arith.constant 0 : index
    %c0_15 = arith.constant 0 : index
    %26 = vector.load %arg4[%c0_14, %c0_15] : memref<8x128xf32, #tpu.memory_space<vmem>>, vector<1x128xf32>
    %27 = vector.broadcast %26 : vector<1x128xf32> to vector<16x128xf32>
    %28 = arith.mulf %25, %27 : vector<16x128xf32>
    %c1 = arith.constant 1 : index
    %c0_16 = arith.constant 0 : index
    %29 = vector.load %arg4[%c1, %c0_16] : memref<8x128xf32, #tpu.memory_space<vmem>>, vector<1x128xf32>
    %30 = vector.broadcast %29 : vector<1x128xf32> to vector<16x128xf32>
    %31 = arith.addf %28, %30 : vector<16x128xf32>
    %cst_17 = arith.constant 0.000000e+00 : f32
    %32 = vector.broadcast %cst_17 : f32 to vector<16x128xf32>
    %33 = arith.maximumf %31, %32 : vector<16x128xf32>
    %34 = arith.truncf %33 : vector<16x128xf32> to vector<16x128xbf16>
    %35 = vector.extract_strided_slice %34 {offsets = [0, 0], sizes = [4, 128], strides = [1, 1]} : vector<16x128xbf16> to vector<4x128xbf16>
    %c0_18 = arith.constant 0 : index
    %c0_19 = arith.constant 0 : index
    %c3 = arith.constant 3 : index
    %c0_20 = arith.constant 0 : index
    %36 = vector.load %arg6[%c0_18, %c0_19, %c3, %c0_20] : memref<1x4x7x128xbf16, #tpu.memory_space<vmem>>, vector<1x1x4x128xbf16>
    %37 = vector.shape_cast %36 : vector<1x1x4x128xbf16> to vector<4x128xbf16>
    %38 = vector.shape_cast %35 : vector<4x128xbf16> to vector<1x1x4x128xbf16>
    tpu.vector_store %arg6[%c0_18, %c0_19, %c3, %c0_20], %38 {strides = array<i32>} : memref<1x4x7x128xbf16, #tpu.memory_space<vmem>>, vector<1x1x4x128xbf16>,
    %39 = vector.extract_strided_slice %34 {offsets = [4, 0], sizes = [4, 128], strides = [1, 1]} : vector<16x128xbf16> to vector<4x128xbf16>
    %c0_21 = arith.constant 0 : index
    %c1_22 = arith.constant 1 : index
    %c3_23 = arith.constant 3 : index
    %c0_24 = arith.constant 0 : index
    %40 = vector.load %arg6[%c0_21, %c1_22, %c3_23, %c0_24] : memref<1x4x7x128xbf16, #tpu.memory_space<vmem>>, vector<1x1x4x128xbf16>
    %41 = vector.shape_cast %40 : vector<1x1x4x128xbf16> to vector<4x128xbf16>
    %42 = vector.shape_cast %39 : vector<4x128xbf16> to vector<1x1x4x128xbf16>
    tpu.vector_store %arg6[%c0_21, %c1_22, %c3_23, %c0_24], %42 {strides = array<i32>} : memref<1x4x7x128xbf16, #tpu.memory_space<vmem>>, vector<1x1x4x128xbf16>,
    %43 = vector.extract_strided_slice %34 {offsets = [8, 0], sizes = [4, 128], strides = [1, 1]} : vector<16x128xbf16> to vector<4x128xbf16>
    %c0_25 = arith.constant 0 : index
    %c2 = arith.constant 2 : index
    %c3_26 = arith.constant 3 : index
    %c0_27 = arith.constant 0 : index
    %44 = vector.load %arg6[%c0_25, %c2, %c3_26, %c0_27] : memref<1x4x7x128xbf16, #tpu.memory_space<vmem>>, vector<1x1x4x128xbf16>
    %45 = vector.shape_cast %44 : vector<1x1x4x128xbf16> to vector<4x128xbf16>
    %46 = vector.shape_cast %43 : vector<4x128xbf16> to vector<1x1x4x128xbf16>
    tpu.vector_store %arg6[%c0_25, %c2, %c3_26, %c0_27], %46 {strides = array<i32>} : memref<1x4x7x128xbf16, #tpu.memory_space<vmem>>, vector<1x1x4x128xbf16>,
    %47 = vector.extract_strided_slice %34 {offsets = [12, 0], sizes = [4, 128], strides = [1, 1]} : vector<16x128xbf16> to vector<4x128xbf16>
    %c0_28 = arith.constant 0 : index
    %c3_29 = arith.constant 3 : index
    %c3_30 = arith.constant 3 : index
    %c0_31 = arith.constant 0 : index
    %48 = vector.load %arg6[%c0_28, %c3_29, %c3_30, %c0_31] : memref<1x4x7x128xbf16, #tpu.memory_space<vmem>>, vector<1x1x4x128xbf16>
    %49 = vector.shape_cast %48 : vector<1x1x4x128xbf16> to vector<4x128xbf16>
    %50 = vector.shape_cast %47 : vector<4x128xbf16> to vector<1x1x4x128xbf16>
    tpu.vector_store %arg6[%c0_28, %c3_29, %c3_30, %c0_31], %50 {strides = array<i32>} : memref<1x4x7x128xbf16, #tpu.memory_space<vmem>>, vector<1x1x4x128xbf16>,
    %51 = vector.extract_strided_slice %21 {offsets = [0, 0, 0], sizes = [1, 4, 128], strides = [1, 1, 1]} : vector<1x16x128xbf16> to vector<1x4x128xbf16>
    %52 = vector.shape_cast %51 : vector<1x4x128xbf16> to vector<4x128xbf16>
    %c1_32 = arith.constant 1 : index
    %c0_33 = arith.constant 0 : index
    %c0_34 = arith.constant 0 : index
    %53 = vector.load %arg2[%c1_32, %c0_33, %c0_34] : memref<3x128x128xbf16, #tpu.memory_space<vmem>>, vector<1x128x128xbf16>
    %54 = vector.shape_cast %53 : vector<1x128x128xbf16> to vector<128x128xbf16>
    %cst_35 = arith.constant dense<0.000000e+00> : vector<4x128xf32>
    %55 = tpu.matmul %52, %54, %cst_35 {dimension_numbers = #tpu.dot_dimension_numbers<[1], [0], [0], [1], [0, 0, 1, 1], [], []>} : vector<4x128xbf16>, vector<128x128xbf16>, vector<4x128xf32> -> vector<4x128xf32>
    %c2_36 = arith.constant 2 : index
    %c0_37 = arith.constant 0 : index
    %56 = vector.load %arg4[%c2_36, %c0_37] : memref<8x128xf32, #tpu.memory_space<vmem>>, vector<1x128xf32>
    %57 = vector.broadcast %56 : vector<1x128xf32> to vector<4x128xf32>
    %58 = arith.mulf %55, %57 : vector<4x128xf32>
    %c3_38 = arith.constant 3 : index
    %c0_39 = arith.constant 0 : index
    %59 = vector.load %arg4[%c3_38, %c0_39] : memref<8x128xf32, #tpu.memory_space<vmem>>, vector<1x128xf32>
    %60 = vector.broadcast %59 : vector<1x128xf32> to vector<4x128xf32>
    %61 = arith.addf %58, %60 : vector<4x128xf32>
    %c0_40 = arith.constant 0 : index
    %c3_41 = arith.constant 3 : index
    %c0_42 = arith.constant 0 : index
    %c0_43 = arith.constant 0 : index
    %62 = vector.load %arg6[%c0_40, %c3_41, %c0_42, %c0_43] : memref<1x4x7x128xbf16, #tpu.memory_space<vmem>>, vector<1x1x4x128xbf16>
    %63 = vector.shape_cast %62 : vector<1x1x4x128xbf16> to vector<4x128xbf16>
    %cst_44 = arith.constant 0.000000e+00 : bf16
    %64 = vector.broadcast %cst_44 : bf16 to vector<4x128xbf16>
    %65 = arith.select %20, %64, %63 : vector<4x128xi1>, vector<4x128xbf16>
    %c0_45 = arith.constant 0 : index
    %c0_46 = arith.constant 0 : index
    %66 = vector.load %arg7[%c0_45, %c0_46] : memref<4x1152xbf16, #tpu.memory_space<vmem>>, vector<4x128xbf16>
    tpu.vector_store %arg7[%c0_45, %c0_46], %65 {strides = array<i32>} : memref<4x1152xbf16, #tpu.memory_space<vmem>>, vector<4x128xbf16>,
    %c0_47 = arith.constant 0 : index
    %c2_48 = arith.constant 2 : index
    %c1_49 = arith.constant 1 : index
    %c0_50 = arith.constant 0 : index
    %67 = vector.load %arg6[%c0_47, %c2_48, %c1_49, %c0_50] : memref<1x4x7x128xbf16, #tpu.memory_space<vmem>>, vector<1x1x4x128xbf16>
    %68 = vector.shape_cast %67 : vector<1x1x4x128xbf16> to vector<4x128xbf16>
    %c0_51 = arith.constant 0 : index
    %c128 = arith.constant 128 : index
    %69 = vector.load %arg7[%c0_51, %c128] : memref<4x1152xbf16, #tpu.memory_space<vmem>>, vector<4x128xbf16>
    tpu.vector_store %arg7[%c0_51, %c128], %68 {strides = array<i32>} : memref<4x1152xbf16, #tpu.memory_space<vmem>>, vector<4x128xbf16>,
    %c0_52 = arith.constant 0 : index
    %c3_53 = arith.constant 3 : index
    %c1_54 = arith.constant 1 : index
    %c0_55 = arith.constant 0 : index
    %70 = vector.load %arg6[%c0_52, %c3_53, %c1_54, %c0_55] : memref<1x4x7x128xbf16, #tpu.memory_space<vmem>>, vector<1x1x4x128xbf16>
    %71 = vector.shape_cast %70 : vector<1x1x4x128xbf16> to vector<4x128xbf16>
    %c0_56 = arith.constant 0 : index
    %c256 = arith.constant 256 : index
    %72 = vector.load %arg7[%c0_56, %c256] : memref<4x1152xbf16, #tpu.memory_space<vmem>>, vector<4x128xbf16>
    tpu.vector_store %arg7[%c0_56, %c256], %71 {strides = array<i32>} : memref<4x1152xbf16, #tpu.memory_space<vmem>>, vector<4x128xbf16>,
    %c0_57 = arith.constant 0 : index
    %c1_58 = arith.constant 1 : index
    %c2_59 = arith.constant 2 : index
    %c0_60 = arith.constant 0 : index
    %73 = vector.load %arg6[%c0_57, %c1_58, %c2_59, %c0_60] : memref<1x4x7x128xbf16, #tpu.memory_space<vmem>>, vector<1x1x4x128xbf16>
    %74 = vector.shape_cast %73 : vector<1x1x4x128xbf16> to vector<4x128xbf16>
    %cst_61 = arith.constant 0.000000e+00 : bf16
    %75 = vector.broadcast %cst_61 : bf16 to vector<4x128xbf16>
    %76 = arith.select %20, %75, %74 : vector<4x128xi1>, vector<4x128xbf16>
    %c0_62 = arith.constant 0 : index
    %c384 = arith.constant 384 : index
    %77 = vector.load %arg7[%c0_62, %c384] : memref<4x1152xbf16, #tpu.memory_space<vmem>>, vector<4x128xbf16>
    tpu.vector_store %arg7[%c0_62, %c384], %76 {strides = array<i32>} : memref<4x1152xbf16, #tpu.memory_space<vmem>>, vector<4x128xbf16>,
    %c0_63 = arith.constant 0 : index
    %c0_64 = arith.constant 0 : index
    %c3_65 = arith.constant 3 : index
    %c0_66 = arith.constant 0 : index
    %78 = vector.load %arg6[%c0_63, %c0_64, %c3_65, %c0_66] : memref<1x4x7x128xbf16, #tpu.memory_space<vmem>>, vector<1x1x4x128xbf16>
    %79 = vector.shape_cast %78 : vector<1x1x4x128xbf16> to vector<4x128xbf16>
    %c0_67 = arith.constant 0 : index
    %c512 = arith.constant 512 : index
    %80 = vector.load %arg7[%c0_67, %c512] : memref<4x1152xbf16, #tpu.memory_space<vmem>>, vector<4x128xbf16>
    tpu.vector_store %arg7[%c0_67, %c512], %79 {strides = array<i32>} : memref<4x1152xbf16, #tpu.memory_space<vmem>>, vector<4x128xbf16>,
    %c0_68 = arith.constant 0 : index
    %c1_69 = arith.constant 1 : index
    %c3_70 = arith.constant 3 : index
    %c0_71 = arith.constant 0 : index
    %81 = vector.load %arg6[%c0_68, %c1_69, %c3_70, %c0_71] : memref<1x4x7x128xbf16, #tpu.memory_space<vmem>>, vector<1x1x4x128xbf16>
    %82 = vector.shape_cast %81 : vector<1x1x4x128xbf16> to vector<4x128xbf16>
    %c0_72 = arith.constant 0 : index
    %c640 = arith.constant 640 : index
    %83 = vector.load %arg7[%c0_72, %c640] : memref<4x1152xbf16, #tpu.memory_space<vmem>>, vector<4x128xbf16>
    tpu.vector_store %arg7[%c0_72, %c640], %82 {strides = array<i32>} : memref<4x1152xbf16, #tpu.memory_space<vmem>>, vector<4x128xbf16>,
    %c0_73 = arith.constant 0 : index
    %c3_74 = arith.constant 3 : index
    %c2_75 = arith.constant 2 : index
    %c0_76 = arith.constant 0 : index
    %84 = vector.load %arg6[%c0_73, %c3_74, %c2_75, %c0_76] : memref<1x4x7x128xbf16, #tpu.memory_space<vmem>>, vector<1x1x4x128xbf16>
    %85 = vector.shape_cast %84 : vector<1x1x4x128xbf16> to vector<4x128xbf16>
    %cst_77 = arith.constant 0.000000e+00 : bf16
    %86 = vector.broadcast %cst_77 : bf16 to vector<4x128xbf16>
    %87 = arith.select %20, %86, %85 : vector<4x128xi1>, vector<4x128xbf16>
    %c0_78 = arith.constant 0 : index
    %c768 = arith.constant 768 : index
    %88 = vector.load %arg7[%c0_78, %c768] : memref<4x1152xbf16, #tpu.memory_space<vmem>>, vector<4x128xbf16>
    tpu.vector_store %arg7[%c0_78, %c768], %87 {strides = array<i32>} : memref<4x1152xbf16, #tpu.memory_space<vmem>>, vector<4x128xbf16>,
    %c0_79 = arith.constant 0 : index
    %c2_80 = arith.constant 2 : index
    %c3_81 = arith.constant 3 : index
    %c0_82 = arith.constant 0 : index
    %89 = vector.load %arg6[%c0_79, %c2_80, %c3_81, %c0_82] : memref<1x4x7x128xbf16, #tpu.memory_space<vmem>>, vector<1x1x4x128xbf16>
    %90 = vector.shape_cast %89 : vector<1x1x4x128xbf16> to vector<4x128xbf16>
    %c0_83 = arith.constant 0 : index
    %c896 = arith.constant 896 : index
    %91 = vector.load %arg7[%c0_83, %c896] : memref<4x1152xbf16, #tpu.memory_space<vmem>>, vector<4x128xbf16>
    tpu.vector_store %arg7[%c0_83, %c896], %90 {strides = array<i32>} : memref<4x1152xbf16, #tpu.memory_space<vmem>>, vector<4x128xbf16>,
    %c0_84 = arith.constant 0 : index
    %c3_85 = arith.constant 3 : index
    %c3_86 = arith.constant 3 : index
    %c0_87 = arith.constant 0 : index
    %92 = vector.load %arg6[%c0_84, %c3_85, %c3_86, %c0_87] : memref<1x4x7x128xbf16, #tpu.memory_space<vmem>>, vector<1x1x4x128xbf16>
    %93 = vector.shape_cast %92 : vector<1x1x4x128xbf16> to vector<4x128xbf16>
    %c0_88 = arith.constant 0 : index
    %c1024 = arith.constant 1024 : index
    %94 = vector.load %arg7[%c0_88, %c1024] : memref<4x1152xbf16, #tpu.memory_space<vmem>>, vector<4x128xbf16>
    tpu.vector_store %arg7[%c0_88, %c1024], %93 {strides = array<i32>} : memref<4x1152xbf16, #tpu.memory_space<vmem>>, vector<4x128xbf16>,
    %c0_89 = arith.constant 0 : index
    %c0_90 = arith.constant 0 : index
    %95 = vector.load %arg7[%c0_89, %c0_90] : memref<4x1152xbf16, #tpu.memory_space<vmem>>, vector<4x1152xbf16>
    %c0_91 = arith.constant 0 : index
    %c0_92 = arith.constant 0 : index
    %96 = vector.load %arg3[%c0_91, %c0_92] : memref<1152x128xbf16, #tpu.memory_space<vmem>>, vector<1152x128xbf16>
    %cst_93 = arith.constant dense<0.000000e+00> : vector<4x128xf32>
    %97 = tpu.matmul %95, %96, %cst_93 {dimension_numbers = #tpu.dot_dimension_numbers<[1], [0], [0], [1], [0, 0, 1, 1], [], []>} : vector<4x1152xbf16>, vector<1152x128xbf16>, vector<4x128xf32> -> vector<4x128xf32>
    %c4 = arith.constant 4 : index
    %c0_94 = arith.constant 0 : index
    %98 = vector.load %arg4[%c4, %c0_94] : memref<8x128xf32, #tpu.memory_space<vmem>>, vector<1x128xf32>
    %99 = vector.broadcast %98 : vector<1x128xf32> to vector<4x128xf32>
    %100 = arith.mulf %97, %99 : vector<4x128xf32>
    %c5 = arith.constant 5 : index
    %c0_95 = arith.constant 0 : index
    %101 = vector.load %arg4[%c5, %c0_95] : memref<8x128xf32, #tpu.memory_space<vmem>>, vector<1x128xf32>
    %102 = vector.broadcast %101 : vector<1x128xf32> to vector<4x128xf32>
    %103 = arith.addf %100, %102 : vector<4x128xf32>
    %cst_96 = arith.constant 0.000000e+00 : f32
    %104 = vector.broadcast %cst_96 : f32 to vector<4x128xf32>
    %105 = arith.maximumf %103, %104 : vector<4x128xf32>
    %106 = arith.truncf %105 : vector<4x128xf32> to vector<4x128xbf16>
    %c2_97 = arith.constant 2 : index
    %c0_98 = arith.constant 0 : index
    %c0_99 = arith.constant 0 : index
    %107 = vector.load %arg2[%c2_97, %c0_98, %c0_99] : memref<3x128x128xbf16, #tpu.memory_space<vmem>>, vector<1x128x128xbf16>
    %108 = vector.shape_cast %107 : vector<1x128x128xbf16> to vector<128x128xbf16>
    %cst_100 = arith.constant dense<0.000000e+00> : vector<4x128xf32>
    %109 = tpu.matmul %106, %108, %cst_100 {dimension_numbers = #tpu.dot_dimension_numbers<[1], [0], [0], [1], [0, 0, 1, 1], [], []>} : vector<4x128xbf16>, vector<128x128xbf16>, vector<4x128xf32> -> vector<4x128xf32>
    %c6 = arith.constant 6 : index
    %c0_101 = arith.constant 0 : index
    %110 = vector.load %arg4[%c6, %c0_101] : memref<8x128xf32, #tpu.memory_space<vmem>>, vector<1x128xf32>
    %111 = vector.broadcast %110 : vector<1x128xf32> to vector<4x128xf32>
    %112 = arith.mulf %109, %111 : vector<4x128xf32>
    %c7 = arith.constant 7 : index
    %c0_102 = arith.constant 0 : index
    %113 = vector.load %arg4[%c7, %c0_102] : memref<8x128xf32, #tpu.memory_space<vmem>>, vector<1x128xf32>
    %114 = vector.broadcast %113 : vector<1x128xf32> to vector<4x128xf32>
    %115 = arith.addf %112, %114 : vector<4x128xf32>
    %116 = arith.addf %115, %61 : vector<4x128xf32>
    %cst_103 = arith.constant 0.000000e+00 : f32
    %117 = vector.broadcast %cst_103 : f32 to vector<4x128xf32>
    %118 = arith.maximumf %116, %117 : vector<4x128xf32>
    %cst_104 = arith.constant dense<0.000000e+00> : vector<128xf32>
    %119 = vector.multi_reduction <add>, %118, %cst_104 [0] : vector<4x128xf32> to vector<128xf32>
    %120 = vector.shape_cast %119 : vector<128xf32> to vector<1x128xf32>
    %cst_105 = arith.constant 4.000000e+00 : f32
    %121 = vector.broadcast %cst_105 : f32 to vector<1x128xf32>
    %122 = arith.divf %120, %121 : vector<1x128xf32>
    %c0_106 = arith.constant 0 : index
    %c0_107 = arith.constant 0 : index
    %c0_108 = arith.constant 0 : index
    %123 = vector.load %arg5[%c0_106, %c0_107, %c0_108] : memref<1x1x128xf32, #tpu.memory_space<vmem>>, vector<1x1x128xf32>
    %124 = vector.shape_cast %123 : vector<1x1x128xf32> to vector<1x128xf32>
    %125 = vector.shape_cast %122 : vector<1x128xf32> to vector<1x1x128xf32>
    tpu.vector_store %arg5[%c0_106, %c0_107, %c0_108], %125 {strides = array<i32>} : memref<1x1x128xf32, #tpu.memory_space<vmem>>, vector<1x1x128xf32>,
    return
  }
  func.func @transform_0(%arg0: i32) -> (i32, i32, i32) {
    %c0_i32 = arith.constant 0 : i32
    %c0_i32_0 = arith.constant 0 : i32
    %c0_i32_1 = arith.constant 0 : i32
    return %arg0, %c0_i32, %c0_i32_0 : i32, i32, i32
  }
  func.func @transform_1(%arg0: i32) -> (i32, i32, i32) {
    %c0_i32 = arith.constant 0 : i32
    %c0_i32_0 = arith.constant 0 : i32
    %c0_i32_1 = arith.constant 0 : i32
    %c0_i32_2 = arith.constant 0 : i32
    return %c0_i32, %c0_i32_0, %c0_i32_1 : i32, i32, i32
  }
  func.func @transform_2(%arg0: i32) -> (i32, i32) {
    %c0_i32 = arith.constant 0 : i32
    %c0_i32_0 = arith.constant 0 : i32
    %c0_i32_1 = arith.constant 0 : i32
    return %c0_i32, %c0_i32_0 : i32, i32
  }
  func.func @transform_3(%arg0: i32) -> (i32, i32) {
    %c0_i32 = arith.constant 0 : i32
    %c0_i32_0 = arith.constant 0 : i32
    %c0_i32_1 = arith.constant 0 : i32
    return %c0_i32, %c0_i32_0 : i32, i32
  }
  func.func @transform_4(%arg0: i32) -> (i32, i32, i32) {
    %c0_i32 = arith.constant 0 : i32
    %c0_i32_0 = arith.constant 0 : i32
    %c0_i32_1 = arith.constant 0 : i32
    return %arg0, %c0_i32, %c0_i32_0 : i32, i32, i32
  }
}

</mosaic_0001>

<bundles_post_ra>
// kernel: regnet_forward.5
= control target key start
LH: loop header
LB: loop body
LE: loop exit
PB: predicated region body
PF: predicated region fallthrough
CT: control target
= control target key end

     0   :  { %9 = vsyncpa [#allocation5], 0  ;;  %s2979_s0 = inlined_call_operand.vmem [shape: bf16[2,16,128], index: 0, kind: input, shape index: {}]   ;;  %s2980_s1 = inlined_call_operand.vmem [shape: bf16[3,128,128], index: 1, kind: input, shape index: {}]   ;;  %s2981_s2 = inlined_call_operand.vmem [shape: bf16[1152,128], index: 2, kind: input, shape index: {}]   ;;  %s2982_s3 = inlined_call_operand.vmem [shape: f32[8,128], index: 3, kind: input, shape index: {}]   ;;  %s2983_s4 = inlined_call_operand.hbm [shape: f32[2,1,128], index: 4, kind: output, shape index: {}]  }
   0x1   :  { %11 = vsyncpa [#allocation5 + $0x1], 0  ;;  %s2387_s15 = smov 0   ;;  %s2389_s16 = smov 0  }
   0x2   :  { %s2391_s17 = smov 0   ;;  %s2393_s18 = smov 0  }
   0x3 LB: > { %s2408_s19 = sadd.s32 4294967295, %s2355_s18   ;;  %s1783_s20 = sadd.s32 4294967294, %s2355_s18   ;;  %s2355_s18 = sphi %s2393_s18, %s3013_s18   ;;  %s2351_s17 = sphi %s2391_s17, %s3012_s17   ;;  %s2347_s16 = sphi %s2389_s16, %s3011_s16   ;;  %s2343_s15 = sphi %s2387_s15, %s3010_s15  }
   0x4   : > { %s2412_s21 = sadd.s32 1, %s2355_s18   ;;  %s113_s22 = sadd.s32 1, %s2351_s17 }
   0x5   : > { %s110_s23 = ssub.s32 %s2355_s18, %s2412_s21  ;;  %p123_p0 = scmp.ne.s32.totalorder %s2351_s17, %s2347_s16 }
   0x6   : > { %p111_p1 = scmp.eq.s32.totalorder %s110_s23, 0  ;;  %p124_p2 = scmp.eq.s32.totalorder %s2408_s19, 1 }
   0x7   : > { %p129_p3 = scmp.ne.s32.totalorder %s2347_s16, %s2343_s15  ;;  %p130_p4 = scmp.eq.s32.totalorder %s1783_s20, 1 }
   0x8   : > { %s2423_s24 = scalar_select %p111_p1, %s2351_s17, %s113_s22  }
   0x9   : > { %p2425_p5 = por %p124_p2, %p123_p0  ;;  %p2429_p6 = por %p130_p4, %p129_p3 }
   0xa   : > { %p1786_p7 = scmp.ge.s32.totalorder %s2355_s18, 1  ;;  %p165_p8 = scmp.lt.s32.totalorder %s2355_s18, 3 }
   0xc   : > { %p166_p9 = pnand %p1786_p7, %p165_p8 }
   0xd   : > { %v2194_v0 = vld [vmem:[%s2980_s1] sm:$0xff] (!%p166_p9)   ;;  %v2357_v1 = vmov (!%p166_p9), 0.0   ;;  %v2195_v2 = vld [vmem:[%s2980_s1 + $0x8] sm:$0xff] (!%p166_p9)   ;;  %vm2984_vm0 = vmmov (!%p166_p9), 0   ;;  %p190_p10 = scmp.lt.s32.totalorder (!%p166_p9), %s2408_s19, 1  ;;  %v2196_v3 = vld [vmem:[%s2980_s1 + $0x10] sm:$0xff] (!%p166_p9)  }
   0xe   : > { %169 = sbr.rel (%p166_p9) target bundleno = 846 (0x34e), region = 36  ;;  %2071 = vmatprep.subr.bf16.mxu0 (!%p166_p9), %v2357_v1  ;;  %2091 = vmatprep.subr.bf16.mxu1 (!%p166_p9), %v2357_v1  ;;  %v2203_v4 = vld [vmem:[%s2980_s1 + $0x40] sm:$0xff] (!%p166_p9)   ;;  %vm198_vm1 = vcmask (!%p166_p9), 1041408   ;;  %v2197_v5 = vld [vmem:[%s2980_s1 + $0x18] sm:$0xff] (!%p166_p9)   ;;  %v2204_v6 = vld [vmem:[%s2980_s1 + $0x48] sm:$0xff] (!%p166_p9)   ;;  %vm370_vm4 = vcmask (!%p166_p9), 1043457  }
   0xf   : > { %2072 = vmatpush3.bf16.msra.mxu0 (!%p166_p9), %v2194_v0  ;;  %2087 = vmatprep.mubr.msk.bf16.mxu0 (!%p166_p9), %vm2984_vm0, %v2357_v1  ;;  %vm199_vm2 = vsmask.f32 (!%p166_p9), 1280  ;;  %v2198_v7 = vld [vmem:[%s2980_s1 + $0x20] sm:$0xff] (!%p166_p9)   ;;  %v2205_v11 = vld [vmem:[%s2980_s1 + $0x50] sm:$0xff] (!%p166_p9)   ;;  %v2199_v14 = vld [vmem:[%s2980_s1 + $0x28] sm:$0xff] (!%p166_p9)   ;;  %v213_v0 = vlaneseq (!%p166_p9)  ;;  %vm602_vm12 = vcmask (!%p166_p9), 1040384  }
  0x10   : > { %2073 = vmatprep.subr.bf16.mxu0 (!%p166_p9), %v2357_v1  ;;  %2107 = vmatprep.mubr.msk.bf16.mxu1 (!%p166_p9), %vm2984_vm0, %v2357_v1  ;;  %vm2472_vm3 = vmand (!%p166_p9), %vm198_vm1, %vm199_vm2  ;;  %v201_v9 = vld [vmem:[#allocation2] sm:$0x3] (!%p166_p9)  ;;  %v204_v10 = vld [vmem:[#allocation2 + $0x4] sm:$0x3] (!%p166_p9)  ;;  %vm371_vm5 = vsmask.f32 (!%p166_p9), 3334 }
  0x11   : > { %2092 = vmatpush3.bf16.msra.mxu1 (!%p166_p9), %v2203_v4  ;;  %v202_v12 = vsel (!%p166_p9), %vm2472_vm3, 0, %v201_v9  ;;  %v205_v13 = vsel (!%p166_p9), %vm2472_vm3, 0, %v204_v10  ;;  %v2200_v15 = vld [vmem:[%s2980_s1 + $0x30] sm:$0xff] (!%p166_p9)   ;;  %v2201_v16 = vld [vmem:[%s2980_s1 + $0x38] sm:$0xff] (!%p166_p9)   ;;  %v2207_v21 = vld [vmem:[%s2980_s1 + $0x60] sm:$0xff] (!%p166_p9)   ;;  %vm603_vm13 = vcmask (!%p166_p9), 1042434  }
  0x12   : > { %2093 = vmatprep.subr.bf16.mxu1 (!%p166_p9), %v2357_v1  ;;  %203 = vst [vmem:[#allocation2] sm:$0x3] (!%p166_p9), %v202_v12  ;;  %206 = vst [vmem:[#allocation2 + $0x4] sm:$0x3] (!%p166_p9), %v205_v13  ;;  %v2206_v20 = vld [vmem:[%s2980_s1 + $0x58] sm:$0xff] (!%p166_p9)   ;;  %v2208_v23 = vld [vmem:[%s2980_s1 + $0x68] sm:$0xff] (!%p166_p9)  }
  0x13   : > { %2074 = vmatpush3.bf16.msra.mxu0 (!%p166_p9), %v2195_v2  ;;  %v207_v22 = vld [vmem:[#allocation2 + $0x8] sm:$0x3] (!%p166_p9)  ;;  %v210_v25 = vld [vmem:[#allocation2 + $0xc] sm:$0x3] (!%p166_p9)  ;;  %v2209_v27 = vld [vmem:[%s2980_s1 + $0x70] sm:$0xff] (!%p166_p9)   ;;  %vm605_vm1 = vcmask (!%p166_p9), 1044484  }
  0x14   : > { %2075 = vmatprep.subr.bf16.mxu0 (!%p166_p9), %v2357_v1  ;;  %v208_v24 = vsel (!%p166_p9), %vm2472_vm3, 0, %v207_v22  ;;  %v211_v26 = vsel (!%p166_p9), %vm2472_vm3, 0, %v210_v25  ;;  %v2210_v28 = vld [vmem:[%s2980_s1 + $0x78] sm:$0xff] (!%p166_p9)   ;;  %v2211_v29 = vld [vmem:[%s2981_s2 + $0x40] sm:$0xff] (!%p166_p9)   ;;  %v2215_v33 = vld [vmem:[%s2981_s2 + $0x48] sm:$0xff] (!%p166_p9)   ;;  %vm607_vm3 = vcmask (!%p166_p9), 1046534  }
  0x15   : > { %s2454_s7 = scalar_select %p190_p10, %s2408_s19, 1  ;;  %2094 = vmatpush3.bf16.msra.mxu1 %v2204_v6  ;;  %209 = vst [vmem:[#allocation2 + $0x8] sm:$0x3] %v208_v24  ;;  %212 = vst [vmem:[#allocation2 + $0xc] sm:$0x3] %v211_v26  ;;  %v2212_v30 = vld [vmem:[%s2981_s2] sm:$0xff]  }
  0x16   : > { %2095 = vmatprep.subr.bf16.mxu1 %v2357_v1  ;;  %v2213_v31 = vld [vmem:[%s2981_s2 + $0xc0] sm:$0xff]   ;;  %v2216_v34 = vld [vmem:[%s2981_s2 + $0x8] sm:$0xff]   ;;  %v2219_v37 = vld [vmem:[%s2981_s2 + $0x50] sm:$0xff]   ;;  %vm540_vm9 = vsmask.f32 3336  ;;  %s188_s10 = sand.u32 1, %s2347_s16  }
  0x17   : > { %2076 = vmatpush3.bf16.msra.mxu0 %v2196_v3  ;;  %s1944_s22 = sshll.u32 %s2454_s7, 3  ;;  %v2214_v32 = vld [vmem:[%s2981_s2 + $0x80] sm:$0xff]   ;;  %v2217_v35 = vld [vmem:[%s2981_s2 + $0xc8] sm:$0xff]   ;;  %v2220_v38 = vld [vmem:[%s2981_s2 + $0x10] sm:$0xff]   ;;  %vm542_vm10 = vsmask.f32 5392 }
  0x18   : > { %2077 = vmatprep.subr.bf16.mxu0 %v2357_v1  ;;  %s194_s8 = scalar_lea.vmem %s2979_s0, %s1944_s22  ;;  %v2218_v36 = vld [vmem:[%s2981_s2 + $0x88] sm:$0xff]   ;;  %v2221_v39 = vld [vmem:[%s2981_s2 + $0xd0] sm:$0xff]   ;;  %v2223_v40 = vld [vmem:[%s2981_s2 + $0x58] sm:$0xff]   ;;  %vm625_vm14 = vsmask.f32 256  ;;  %s1941_s11 = sshll.u32 %s2408_s19, 4 }
  0x19   : > { %2096 = vmatpush3.bf16.msra.mxu1 %v2205_v11  ;;  %v228_v17 = vld [vmem:[%s194_s8] sm:$0xf]  ;;  %v229_v18 = vld [vmem:[%s194_s8 + $0x4] sm:$0xf]  ;;  %v2222_v41 = vld [vmem:[%s2981_s2 + $0x90] sm:$0xff]   ;;  %s189_s12 = scalar_lea.vmem [#allocation4], %s188_s10  ;;  %s2937_s22 = scalar_lea.hbm %s2983_s4, %s1941_s11 }
  0x1a   : > { %2097 = vmatprep.subr.bf16.mxu1 %v2357_v1  ;;  %v1789_v19 = vcombine.low %v228_v17, %v229_v18  ;;  %v2224_v42 = vld [vmem:[%s2981_s2 + $0x18] sm:$0xff]   ;;  %v2227_v44 = vld [vmem:[%s2981_s2 + $0x60] sm:$0xff]   ;;  %v2231_v48 = vld [vmem:[%s2981_s2 + $0x68] sm:$0xff]   ;;  %vm630_vm0 = vsmask.f32 6424  ;;  %s1728_s13 = sshll.u32 %s189_s12, 4  ;;  %s2939_s13 = int_to_ptr.vmem [resolvable:$true] %s1728_s13 }
  0x1b   : > { %2078 = vmatpush3.bf16.msra.mxu0 %v2197_v5  ;;  %v2225_v43 = vld [vmem:[%s2981_s2 + $0xd8] sm:$0xff]   ;;  %v2228_v46 = vld [vmem:[%s2981_s2 + $0x20] sm:$0xff]   ;;  %v2232_v50 = vld [vmem:[%s2981_s2 + $0x28] sm:$0xff]   ;;  %s1716_s23 = scalar_lea.sflag [#allocation5], %s188_s10  ;;  %s2293_s27 = scalar_lea.vmem %s2939_s13, 16 }
  0x1c   : > { %2079 = vmatprep.subr.bf16.mxu0 %v2357_v1  ;;  %v2226_v45 = vld [vmem:[%s2981_s2 + $0x98] sm:$0xff]   ;;  %v2229_v47 = vld [vmem:[%s2981_s2 + $0xe0] sm:$0xff]   ;;  %v2233_v51 = vld [vmem:[%s2981_s2 + $0xe8] sm:$0xff]   ;;  %p2294_p11 = scmp.ne.s32.totalorder %s2939_s13, %s2293_s27  ;;  %s2361_s19 = smov [#allocation4]  }
  0x1d   : > { %2098 = vmatpush3.bf16.msra.mxu1 %v2206_v20  ;;  %v2230_v49 = vld [vmem:[%s2981_s2 + $0xa0] sm:$0xff]   ;;  %v2235_v52 = vld [vmem:[%s2981_s2 + $0x70] sm:$0xff]   ;;  %v2234_v53 = vld [vmem:[%s2981_s2 + $0xa8] sm:$0xff]   ;;  %s2297_s28 = sshll.u32 %s2361_s19, 4  ;;  %s2298_s28 = int_to_ptr.vmem [resolvable:$false] %s2297_s28 }
  0x1e   : > { %2099 = vmatprep.subr.bf16.mxu1 %v2357_v1  ;;  %v2236_v54 = vld [vmem:[%s2981_s2 + $0x30] sm:$0xff]   ;;  %v2239_v56 = vld [vmem:[%s2981_s2 + $0x78] sm:$0xff]   ;;  %v2243_v61 = vld [vmem:[%s2981_s2 + $0x140] sm:$0xff]   ;;  %p2295_p12 = pnand %p2294_p11, %p2425_p5  ;;  %s2299_s29 = scalar_lea.vmem %s2298_s28, 32 }
  0x1f   : > { %2080 = vmatpush3.bf16.msra.mxu0 %v2198_v7  ;;  %v2237_v55 = vld [vmem:[%s2981_s2 + $0xf0] sm:$0xff]   ;;  %v2240_v58 = vld [vmem:[%s2981_s2 + $0x38] sm:$0xff]   ;;  %v2246_v62 = vld [vmem:[%s2981_s2 + $0x1c0] sm:$0xff]   ;;  %v214_v7 = vshrl.u32 %v213_v0, 7  ;;  %p2300_p0 = scmp.lt.s32.totalorder %s2939_s13, %s2298_s28  ;;  %p2301_p1 = scmp.lt.s32.totalorder %s2299_s29, %s2293_s27 }
  0x20   : > { %2081 = vmatprep.subr.bf16.mxu0 %v2357_v1  ;;  %v2238_v57 = vld [vmem:[%s2981_s2 + $0xb0] sm:$0xff]   ;;  %v2241_v59 = vld [vmem:[%s2981_s2 + $0xf8] sm:$0xff]   ;;  %v1798_v63 = vld [vmem:[%s2982_s3] ss:$0 sm:$0xff]  ;;  %p2296_p13 = pneg %p2295_p12 }
  0x21   : > { %2100 = vmatpush3.bf16.msra.mxu1 %v2207_v21  ;;  %v2242_v60 = vld [vmem:[%s2981_s2 + $0xb8] sm:$0xff]   ;;  %v1799_v3 = vld [vmem:[%s2982_s3 + $0x1] ss:$0 sm:$0xff]  ;;  %v219_v13 = vand.u32 1, %v214_v7  ;;  %vm2636_vm7 = vmand %vm370_vm4, %vm371_vm5  ;;  %vm626_vm4 = vsmask.f32 2312  ;;  %p2302_p2 = por %p2301_p1, %p2300_p0 }
  0x22   : > { %2101 = vmatprep.subr.bf16.mxu1 %v2357_v1  ;;  %v373_v25 = vld [vmem:[#allocation2] sm:$0xe]  ;;  %vm628_vm5 = vsmask.f32 4368  ;;  %vm541_vm11 = vmor %vm199_vm2, %vm540_vm9 }
  0x23   : > { %2082 = vmatpush3.bf16.msra.mxu0 %v2199_v14  ;;  %vm2632_vm6 = vcmp.eq.s32.totalorder %v219_v13, 0  ;;  %vm2679_vm2 = vmor %vm541_vm11, %vm542_vm10  ;;  %p2303_p3 = pnand %p2302_p2, %p2296_p13 }
  0x24   : > { %2083 = vmatprep.subr.bf16.mxu0 %v2357_v1  ;;  %vm527_vm8 = vmpackc.low %vm2632_vm6, %vm2632_vm6  ;;  %vm3002_vm6 = vsmask.f32 7448 }
  0x25   : > { %2102 = vmatpush3.bf16.msra.mxu1 %v2208_v23  ;;  %vm627_vm9 = vmor %vm625_vm14, %vm626_vm4  ;;  %vm1704_vm14 = vcmask 1043456  }
  0x26   : > { %2103 = vmatprep.subr.bf16.mxu1 %v2357_v1  ;;  %vm2710_vm11 = vmor %vm627_vm9, %vm628_vm5 }
  0x27   : > { %2084 = vmatpush3.bf16.msra.mxu0 %v2200_v15 }
  0x28   : > { %2085 = vmatprep.subr.bf16.mxu0 %v2357_v1 }
  0x29   : > { %2104 = vmatpush3.bf16.msra.mxu1 %v2209_v27 }
  0x2a   : > { %2105 = vmatprep.subr.bf16.mxu1 %v2357_v1 }
  0x2b   : > { %2086 = vmatpush3.bf16.msra.mxu0 %v2201_v16 }
  0x2c   : > { %1965 = vmatprep.subr.bf16.mxu0 %v2211_v29 }
  0x2d   : > { %2106 = vmatpush3.bf16.msra.mxu1 %v2210_v28 }
  0x2e   : > { %2088 = vmatmul.mubr.bf16.vlgmr.msra.gmra.mrb[0].mxu0 %v1789_v19  ;;  %1987 = vmatprep.subr.bf16.mxu1 %v2213_v31 }
  0x2f   : > { %1966 = vmatpush3.bf16.msra.mxu0 %v2212_v30  ;;  %v382_v30 = vld [vmem:[#allocation2 + $0x4] sm:$0xe] }
  0x30   : > { %2108 = vmatmul.mubr.bf16.vlgmr.msra.gmra.mrb[0].mxu1 %v228_v17  ;;  %1967 = vmatprep.subr.bf16.mxu0 %v2215_v33 }
  0x31   : > { %1988 = vmatpush3.bf16.msra.mxu1 %v2214_v32 }
  0x32   : > { %1989 = vmatprep.subr.bf16.mxu1 %v2217_v35 }
  0x33   : > { %1968 = vmatpush3.bf16.msra.mxu0 %v2216_v34 }
  0x34   : > { %1969 = vmatprep.subr.bf16.mxu0 %v2219_v37  ;;  %v397_v37 = vld [vmem:[#allocation2 + $0x8] sm:$0xe] }
  0x35   : > { %1990 = vmatpush3.bf16.msra.mxu1 %v2218_v36 }
  0x36   : > { %1991 = vmatprep.subr.bf16.mxu1 %v2221_v39 }
  0x37   : > { %1970 = vmatpush3.bf16.msra.mxu0 %v2220_v38  ;;  %v2359_v38 = vmov 1983009808  }
  0x38   : > { %1971 = vmatprep.subr.bf16.mxu0 %v2223_v40  ;;  %v595_v39 = vunpack.c.l.s4 %v2359_v38 }
  0x39   : > { %1992 = vmatpush3.bf16.msra.mxu1 %v2222_v41 }
  0x3a   : > { %1993 = vmatprep.subr.bf16.mxu1 %v2225_v43 }
  0x3b   : > { %1972 = vmatpush3.bf16.msra.mxu0 %v2224_v42  ;;  %v2360_v42 = vmov 0  }
  0x3c   : > { %1973 = vmatprep.subr.bf16.mxu0 %v2227_v44  ;;  %v589_v43 = vsel %vm527_vm8, 65537, %v2360_v42  ;;  %v2271_v42 = vld [vmem:[%s2981_s2 + $0x1f0] sm:$0xff]  }
  0x3d   : > { %1994 = vmatpush3.bf16.msra.mxu1 %v2226_v45  ;;  %v406_v45 = vld [vmem:[#allocation2 + $0xc] sm:$0xe] }
  0x3e   : > { %1995 = vmatprep.subr.bf16.mxu1 %v2229_v47 }
  0x3f   : > { %1974 = vmatpush3.bf16.msra.mxu0 %v2228_v46 }
  0x40   : > { %1975 = vmatprep.subr.bf16.mxu0 %v2231_v48  ;;  %v590_v48 = vrot.slane %v589_v43, 7 }
  0x41   : > { %1996 = vmatpush3.bf16.msra.mxu1 %v2230_v49  ;;  %v596_v49 = vunpack.c.0.s8 %v595_v39 }
  0x42   : > { %1997 = vmatprep.subr.bf16.mxu1 %v2233_v51  ;;  %vm2656_vm15 = vcmp.ne.s16.totalorder %v590_v48, 0 }
  0x43   : > { %1976 = vmatpush3.bf16.msra.mxu0 %v2232_v50 }
  0x44   : > { %1977 = vmatprep.subr.bf16.mxu0 %v2235_v52  ;;  %v2660_v52 = vsub.s32 %v596_v49, %v214_v7 }
  0x45   : > { %1998 = vmatpush3.bf16.msra.mxu1 %v2234_v53 }
  0x46   : > { %1999 = vmatprep.subr.bf16.mxu1 %v2237_v55 }
  0x47   : > { %1978 = vmatpush3.bf16.msra.mxu0 %v2236_v54 }
  0x48   : > { %1979 = vmatprep.subr.bf16.mxu0 %v2239_v56 }
  0x49   : > { %2000 = vmatpush3.bf16.msra.mxu1 %v2238_v57 }
  0x4a   : > { %2001 = vmatprep.subr.bf16.mxu1 %v2241_v59 }
  0x4b   : > { %1980 = vmatpush3.bf16.msra.mxu0 %v2240_v58 }
  0x4c   : > { %2009 = vmatprep.subr.bf16.mxu0 %v2243_v61 }
  0x4d   : > { %2002 = vmatpush3.bf16.msra.mxu1 %v2242_v60 }
  0x4e   : > { %2031 = vmatprep.subr.bf16.mxu1 %v2246_v62 }
 0x101   : > { %v334_v2 = vpop.f32.mrb[0].mxu0 }
 0x102   : > { %v346_v4 = vmul.f32 %v1798_v63, %v334_v2  ;;  %v2089_v5 = vpop.f32.mrb[1].mxu0 }
 0x103   : > { %v337_v6 = vpop.f32.mrb[2].mxu0 }
 0x104   : > { %v353_v8 = vadd.f32 %v1799_v3, %v346_v4  ;;  %v347_v9 = vmul.f32 %v1798_v63, %v337_v6  ;;  %v2090_v10 = vpop.f32.mrb[3].mxu0 }
 0x106   : > { %v355_v11 = vmax.f32 %v353_v8, 0.0  ;;  %v354_v12 = vadd.f32 %v1799_v3, %v347_v9 }
 0x108   : > { %v1945_v14 = vpack.c.bf16 %v355_v11, %v355_v11  ;;  %v356_v15 = vmax.f32 %v354_v12, 0.0 }
 0x10a   : > { %v362_v16 = vshrl.u32 %v1945_v14, 16  ;;  %v365_v17 = vshll.u32 %v1945_v14, 16  ;;  %v1946_v18 = vpack.c.bf16 %v356_v15, %v356_v15 }
 0x10c   : > { %v364_v20 = vrot.slane %v362_v16, 6  ;;  %v367_v21 = vrot.slane %v365_v17, 7  ;;  %v376_v22 = vrot.slane %v362_v16, 4  ;;  %v377_v23 = vrot.slane %v365_v17, 5  ;;  %v2247_v17 = vld [vmem:[%s2981_s2 + $0x180] sm:$0xff]  }
 0x10d   : > { %v388_v26 = vshrl.u32 %v1946_v18, 16  ;;  %v391_v27 = vshll.u32 %v1946_v18, 16 }
 0x10e   : > { %v368_v28 = vor.u32 %v367_v21, %v364_v20  ;;  %v378_v29 = vor.u32 %v377_v23, %v376_v22  ;;  %v2250_v21 = vld [vmem:[%s2981_s2 + $0x108] sm:$0xff]  }
 0x10f   : > { %v390_v31 = vrot.slane %v388_v26, 6  ;;  %v393_v32 = vrot.slane %v391_v27, 7  ;;  %v400_v33 = vrot.slane %v388_v26, 4  ;;  %v401_v34 = vrot.slane %v391_v27, 5 }
 0x110   : > { %v374_v35 = vsel %vm2636_vm7, %v368_v28, %v373_v25  ;;  %v379_v36 = vrot.slane %v378_v29, 4  ;;  %v2256_v29 = vld [vmem:[%s2981_s2 + $0x190] sm:$0xff]  }
 0x111   : > { %375 = vst [vmem:[#allocation2] sm:$0xe] %v374_v35  ;;  %v394_v40 = vor.u32 %v393_v32, %v390_v31  ;;  %v402_v41 = vor.u32 %v401_v34, %v400_v33 }
 0x112   : > { %v383_v44 = vsel %vm2636_vm7, %v379_v36, %v382_v30 }
 0x113   : > { %384 = vst [vmem:[#allocation2 + $0x4] sm:$0xe] %v383_v44  ;;  %v398_v46 = vsel %vm2636_vm7, %v394_v40, %v397_v37  ;;  %v403_v47 = vrot.slane %v402_v41, 4 }
 0x114   : > { %399 = vst [vmem:[#allocation2 + $0x8] sm:$0xe] %v398_v46 }
 0x115   : > { %v407_v50 = vsel %vm2636_vm7, %v403_v47, %v406_v45  ;;  %vm604_vm7 = vmor %vm602_vm12, %vm603_vm13 }
 0x116   : > { %408 = vst [vmem:[#allocation2 + $0xc] sm:$0xe] %v407_v50  ;;  %vm2672_vm12 = vmor %vm604_vm7, %vm605_vm1 }
 0x117   : > { %vm2693_vm10 = vmor %vm2672_vm12, %vm607_vm3 }
 0x118   : > { %v1831_v53 = vld.sshfl [vmem:[#allocation2] sm:$0x32 pattern:$0x76325410]  ;;  %vm2721_vm13 = vmor %vm2710_vm11, %vm630_vm0  ;;  %vm3009_vm0 = vmmov 0  }
 0x119   : > { %v633_v58 = vshrl.u32 %v1831_v53, 16  ;;  %v624_v4 = vcombine.high %v1831_v53, %v1831_v53 }
 0x11a   : > { %v588_v54 = vld [vmem:[#allocation2 + $0x4] sm:$0x6] }
 0x11b   : > { %v2662_v55 = vld.sshfl [vmem:[#allocation2 + $0x4] sm:$0x32 pattern:$0x76325410]  ;;  %v592_v57 = vsel %vm2656_vm15, 0, %v588_v54  ;;  %v638_v30 = vshrl.u32 %v624_v4, 16 }
 0x11c   : > { %v1828_v56 = vld.sshfl [vmem:[#allocation2 + $0x8] sm:$0x13 pattern:$0x76325410]  ;;  %v600_v62 = vrot.slane %v592_v57, %v2660_v52  ;;  %v656_v5 = vcombine.high %v2662_v55, %v2662_v55  ;;  %v1832_v33 = vrot.slane %v633_v58, 9  ;;  %v641_v34 = vshll.u32 %v624_v4, 16 }
 0x11d   : > { %v539_v59 = vcombine.high %v1828_v56, %v1828_v56  ;;  %v547_v60 = vshrl.u32 %v1828_v56, 16  ;;  %v550_v61 = vshll.u32 %v1828_v56, 16  ;;  %v2669_v63 = vld.sshfl [vmem:[#allocation2 + $0x8] sm:$0x32 pattern:$0x76325410] }
 0x11e   : > { %v526_v0 = vld [vmem:[#allocation2 + $0xc] sm:$0x3]  ;;  %v601_v15 = vcombine.high %v600_v62, %v600_v62  ;;  %v1830_v18 = vrot.slane %v600_v62, 9  ;;  %v698_v20 = vcombine.high %v2669_v63, %v2669_v63  ;;  %v640_v38 = vrot.slane %v638_v30, 7  ;;  %v2259_v30 = vld [vmem:[%s2981_s2 + $0x1d8] sm:$0xff]  }
 0x11f   : > { %v1829_v2 = vld.sshfl [vmem:[#allocation2 + $0xc] sm:$0x13 pattern:$0x76325410]  ;;  %v528_v7 = vsel %vm527_vm8, 0, %v526_v0  ;;  %v549_v8 = vrot.slane %v547_v60, 6  ;;  %vm2704_vm8 = vmor %vm2679_vm2, %vm3002_vm6 }
 0x120   : > { %v552_v9 = vrot.slane %v550_v61, 7  ;;  %v556_v10 = vshll.u32 %v539_v59, 16  ;;  %v672_v11 = vld [vmem:[#allocation2 + $0xc] sm:$0x6]  ;;  %529 = vst [vmem:[#allocation3] sm:$0x3] %v528_v7  ;;  %v571_v12 = vcombine.high %v1829_v2, %v1829_v2  ;;  %v643_v46 = vor.u32 %v641_v34, %v640_v38 }
 0x121   : > { %v573_v13 = vshrl.u32 %v1829_v2, 16  ;;  %v576_v14 = vshll.u32 %v1829_v2, 16  ;;  %v673_v19 = vsel %vm2656_vm15, 0, %v672_v11  ;;  %v611_v25 = vrot.slane %v601_v15, 7  ;;  %v2263_v34 = vld [vmem:[%s2981_s2 + $0x1e0] sm:$0xff]   ;;  %v2267_v38 = vld [vmem:[%s2981_s2 + $0x1e8] sm:$0xff]  }
 0x122   : > { %v553_v16 = vor.u32 %v552_v9, %v549_v8  ;;  %v582_v24 = vshll.u32 %v571_v12, 16  ;;  %v558_v27 = vrot.slane %v556_v10, 7  ;;  %v681_v28 = vrot.slane %v673_v19, %v2660_v52  ;;  %v1838_v39 = vld.sshfl [vmem:[#allocation2 + $0xc] sm:$0x32 pattern:$0x76325410] }
 0x123   : > { %v575_v22 = vrot.slane %v573_v13, 6  ;;  %v578_v23 = vrot.slane %v576_v14, 7  ;;  %v612_v32 = vsel %vm2693_vm10, %v1830_v18, %v611_v25  ;;  %v658_v43 = vshrl.u32 %v2662_v55, 16  ;;  %v2244_v12 = vld [vmem:[%s2981_s2 + $0x100] sm:$0xff]   ;;  %v2248_v14 = vld [vmem:[%s2981_s2 + $0x148] sm:$0xff]  }
 0x124   : > { %v554_v26 = vrot.slane %v553_v16, 2  ;;  %v584_v36 = vrot.slane %v582_v24, 7  ;;  %614 = vst [vmem:[#allocation3 + $0x6] sm:$0x3] %v612_v32  ;;  %v682_v37 = vcombine.high %v681_v28, %v681_v28  ;;  %v1835_v41 = vrot.slane %v681_v28, 9  ;;  %v2253_v24 = vld [vmem:[%s2981_s2 + $0x150] sm:$0xff]  }
 0x125   : > { %v579_v31 = vor.u32 %v578_v23, %v575_v22  ;;  %v663_v44 = vshrl.u32 %v656_v5, 16  ;;  %v700_v47 = vshrl.u32 %v2669_v63, 16  ;;  %v705_v48 = vshrl.u32 %v698_v20, 16  ;;  %v2252_v25 = vld [vmem:[%s2981_s2 + $0x188] sm:$0xff]   ;;  %v2257_v28 = vld [vmem:[%s2981_s2 + $0x158] sm:$0xff]   ;;  %v2261_v32 = vld [vmem:[%s2981_s2 + $0x160] sm:$0xff]  }
 0x126   : > { %v559_v35 = vsel %vm2704_vm8, %v554_v26, %v558_v27  ;;  %v685_v45 = vrot.slane %v682_v37, 7  ;;  %v666_v51 = vshll.u32 %v656_v5, 16  ;;  %v723_v53 = vcombine.high %v1838_v39, %v1838_v39  ;;  %v2255_v27 = vld [vmem:[%s2981_s2 + $0x1d0] sm:$0xff]   ;;  %v2264_v37 = vld [vmem:[%s2981_s2 + $0x1a0] sm:$0xff]  }
 0x127   : > { %561 = vst [vmem:[#allocation3 + $0x2] sm:$0x3] %v559_v35  ;;  %v580_v40 = vrot.slane %v579_v31, 2  ;;  %v665_v50 = vrot.slane %v663_v44, 7  ;;  %v644_v56 = vsel %vm2721_vm13, %v1832_v33, %v643_v46  ;;  %v707_v55 = vrot.slane %v705_v48, 7  ;;  %v2258_v31 = vld [vmem:[%s2981_s2 + $0x118] sm:$0xff]  }
 0x128   : > { %v686_v54 = vsel %vm2693_vm10, %v1835_v41, %v685_v45  ;;  %v708_v57 = vshll.u32 %v698_v20, 16  ;;  %646 = vst [vmem:[#allocation3 + $0x8] sm:$0x3] %v644_v56  ;;  %v1834_v58 = vrot.slane %v658_v43, 9  ;;  %v725_v60 = vshrl.u32 %v1838_v39, 16  ;;  %v2251_v20 = vld [vmem:[%s2981_s2 + $0x1c8] sm:$0xff]  }
 0x129   : > { %v585_v49 = vsel %vm2704_vm8, %v580_v40, %v584_v36  ;;  %688 = vst [vmem:[#allocation3 + $0xc] sm:$0x3] %v686_v54  ;;  %v668_v59 = vor.u32 %v666_v51, %v665_v50  ;;  %v730_v61 = vshrl.u32 %v723_v53, 16  ;;  %v1837_v62 = vrot.slane %v700_v47, 9  ;;  %v2260_v33 = vld [vmem:[%s2981_s2 + $0x198] sm:$0xff]   ;;  %v2262_v35 = vld [vmem:[%s2981_s2 + $0x120] sm:$0xff]  }
 0x12a   : > { %587 = vst [vmem:[#allocation3 + $0x4] sm:$0x3] %v585_v49  ;;  %v710_v63 = vor.u32 %v708_v57, %v707_v55  ;;  %v733_v3 = vshll.u32 %v723_v53, 16  ;;  %v1839_v5 = vrot.slane %v725_v60, 9  ;;  %v2265_v36 = vld [vmem:[%s2981_s2 + $0x168] sm:$0xff]   ;;  %v2269_v40 = vld [vmem:[%s2981_s2 + $0x170] sm:$0xff]  }
 0x12b   : > { %v669_v0 = vsel %vm2721_vm13, %v1834_v58, %v668_v59  ;;  %v732_v2 = vrot.slane %v730_v61, 7  ;;  %v2266_v39 = vld [vmem:[%s2981_s2 + $0x128] sm:$0xff]   ;;  %v2270_v43 = vld [vmem:[%s2981_s2 + $0x130] sm:$0xff]   ;;  %v2273_v44 = vld [vmem:[%s2981_s2 + $0x178] sm:$0xff]   ;;  %v2872_v55 = vpop.f32.mrb[0].mxu1 }
 0x12c   : > { %671 = vst [vmem:[#allocation3 + $0xa] sm:$0x3] %v669_v0  ;;  %v711_v4 = vsel %vm2721_vm13, %v1837_v62, %v710_v63  ;;  %v2268_v41 = vld [vmem:[%s2981_s2 + $0x1a8] sm:$0xff]   ;;  %v2272_v45 = vld [vmem:[%s2981_s2 + $0x1b0] sm:$0xff]   ;;  %v2275_v46 = vld [vmem:[%s2981_s2 + $0x1f8] sm:$0xff]   ;;  %v2109_v57 = vpop.f32.mrb[1].mxu1 }
 0x12d   : > { %713 = vst [vmem:[#allocation3 + $0xe] sm:$0x3] %v711_v4  ;;  %v735_v6 = vor.u32 %v733_v3, %v732_v2  ;;  %v2274_v47 = vld [vmem:[%s2981_s2 + $0x138] sm:$0xff]   ;;  %v2277_v49 = vld [vmem:[%s2981_s2 + $0x200] sm:$0xff]   ;;  %v2278_v50 = vld [vmem:[%s2981_s2 + $0x208] sm:$0xff]   ;;  %v511_v59 = vpop.f32.mrb[2].mxu1 }
 0x12e   : > { %v2276_v48 = vld [vmem:[%s2981_s2 + $0x1b8] sm:$0xff]   ;;  %v2279_v51 = vld [vmem:[%s2981_s2 + $0x210] sm:$0xff]   ;;  %v2281_v54 = vld [vmem:[%s2981_s2 + $0x220] sm:$0xff]   ;;  %v2110_v60 = vpop.f32.mrb[3].mxu1 }
 0x12f   : > { %v736_v8 = vsel %vm2721_vm13, %v1839_v5, %v735_v6  ;;  %v2280_v53 = vld [vmem:[%s2981_s2 + $0x218] sm:$0xff]   ;;  %v2282_v56 = vld [vmem:[%s2981_s2 + $0x228] sm:$0xff]   ;;  %v2283_v58 = vld [vmem:[%s2981_s2 + $0x230] sm:$0xff]  }
 0x130   : > { %738 = vst [vmem:[#allocation3 + $0x10] sm:$0x3] %v736_v8  ;;  %v2284_v61 = vld [vmem:[%s2981_s2 + $0x238] sm:$0xff]   ;;  %v2285_v63 = vld [vmem:[%s2980_s1 + $0x80] sm:$0xff]   ;;  %v2286_v0 = vld [vmem:[%s2980_s1 + $0x88] sm:$0xff]  }
 0x131   : > { %v739_v7 = vld [vmem:[#allocation3] sm:$0xff]  ;;  %v2288_v3 = vld [vmem:[%s2980_s1 + $0x98] sm:$0xff]   ;;  %v2289_v4 = vld [vmem:[%s2980_s1 + $0xa0] sm:$0xff]  }
 0x132   : > { %v896_v9 = vrot.slane %v739_v7, %v2660_v52  ;;  %v889_v10 = vcombine.high %v739_v7, %v739_v7  ;;  %v2287_v2 = vld [vmem:[%s2980_s1 + $0x90] sm:$0xff]   ;;  %v2290_v5 = vld [vmem:[%s2980_s1 + $0xa8] sm:$0xff]   ;;  %v2292_v7 = vld [vmem:[%s2980_s1 + $0xb8] sm:$0xff]  }
 0x133   : > { %v2291_v6 = vld [vmem:[%s2980_s1 + $0xb0] sm:$0xff]  }
 0x134   : > { %v904_v11 = vcombine.high %v896_v9, %v896_v9  ;;  %v903_v13 = vrot.slane %v889_v10, %v2660_v52  ;;  %v740_v16 = vld [vmem:[#allocation3 + $0x8] sm:$0xff] }
 0x135   : > { %v2751_v18 = vrot.slane %v740_v16, %v2660_v52  ;;  %v906_v19 = vcombine.high %v740_v16, %v740_v16 }
 0x136   : > { %1403 = vmatprep.mubr.bf16.mxu0 %v904_v11  ;;  %v905_v15 = vcombine.high %v903_v13, %v903_v13 }
 0x137   : > { %1404 = vmatmul.mubr.bf16.vlgmr.msra.gmra.mrb[4].mxu0 %v896_v9  ;;  %v921_v22 = vcombine.high %v2751_v18, %v2751_v18  ;;  %v2762_v23 = vrot.slane %v906_v19, %v2660_v52  ;;  %v2254_v52 = vld [vmem:[%s2981_s2 + $0x110] sm:$0xff]   ;;  %v1840_v62 = vld.sshfl [vmem:[#allocation3 + $0x10] sm:$0x3 pattern:$0x76325410] }
 0x138   : > { %2010 = vmatpush3.bf16.msra.mxu0 %v2244_v12  ;;  %1443 = vmatprep.mubr.bf16.mxu1 %v905_v15 }
 0x139   : > { %1444 = vmatmul.mubr.bf16.vlgmr.msra.gmra.mrb[4].mxu1 %v903_v13  ;;  %2011 = vmatprep.subr.bf16.mxu0 %v2248_v14  ;;  %v922_v26 = vcombine.high %v2762_v23, %v2762_v23 }
 0x13a   : > { %2032 = vmatpush3.bf16.msra.mxu1 %v2247_v17  ;;  %1483 = vmatprep.mubr.bf16.mxu0 %v921_v22 }
 0x13b   : > { %2033 = vmatprep.subr.bf16.mxu1 %v2251_v20  ;;  %1523 = vmatprep.mubr.bf16.mxu1 %v922_v26 }
 0x13c   : > { %2012 = vmatpush3.bf16.msra.mxu0 %v2250_v21 }
 0x13d   : > { %2013 = vmatprep.subr.bf16.mxu0 %v2253_v24 }
 0x13e   : > { %2034 = vmatpush3.bf16.msra.mxu1 %v2252_v25 }
 0x13f   : > { %2035 = vmatprep.subr.bf16.mxu1 %v2255_v27 }
 0x140   : > { %2014 = vmatpush3.bf16.msra.mxu0 %v2254_v52 }
 0x141   : > { %2015 = vmatprep.subr.bf16.mxu0 %v2257_v28 }
 0x142   : > { %2036 = vmatpush3.bf16.msra.mxu1 %v2256_v29 }
 0x143   : > { %2037 = vmatprep.subr.bf16.mxu1 %v2259_v30  ;;  %v1913_v30 = vld [vmem:[%s2982_s3 + $0x4] ss:$0 sm:$0xff] }
 0x144   : > { %2016 = vmatpush3.bf16.msra.mxu0 %v2258_v31 }
 0x145   : > { %2017 = vmatprep.subr.bf16.mxu0 %v2261_v32 }
 0x146   : > { %2038 = vmatpush3.bf16.msra.mxu1 %v2260_v33  ;;  %v1914_v33 = vld [vmem:[%s2982_s3 + $0x5] ss:$0 sm:$0xff] }
 0x147   : > { %2039 = vmatprep.subr.bf16.mxu1 %v2263_v34 }
 0x148   : > { %2018 = vmatpush3.bf16.msra.mxu0 %v2262_v35 }
 0x149   : > { %2019 = vmatprep.subr.bf16.mxu0 %v2265_v36 }
 0x14a   : > { %2040 = vmatpush3.bf16.msra.mxu1 %v2264_v37 }
 0x14b   : > { %2041 = vmatprep.subr.bf16.mxu1 %v2267_v38 }
 0x14c   : > { %2020 = vmatpush3.bf16.msra.mxu0 %v2266_v39 }
 0x14d   : > { %2021 = vmatprep.subr.bf16.mxu0 %v2269_v40  ;;  %v1826_v40 = vld [vmem:[%s2982_s3 + $0x2] ss:$0 sm:$0xff] }
 0x14e   : > { %2042 = vmatpush3.bf16.msra.mxu1 %v2268_v41  ;;  %v1939_v41 = vld [vmem:[%s2982_s3 + $0x6] ss:$0 sm:$0xff] }
 0x14f   : > { %2043 = vmatprep.subr.bf16.mxu1 %v2271_v42  ;;  %v519_v42 = vmul.f32 %v1826_v40, %v2872_v55 }
 0x150   : > { %2022 = vmatpush3.bf16.msra.mxu0 %v2270_v43  ;;  %v1827_v43 = vld [vmem:[%s2982_s3 + $0x3] ss:$0 sm:$0xff] }
 0x151   : > { %2023 = vmatprep.subr.bf16.mxu0 %v2273_v44 }
 0x152   : > { %2044 = vmatpush3.bf16.msra.mxu1 %v2272_v45  ;;  %v1940_v45 = vld [vmem:[%s2982_s3 + $0x7] ss:$0 sm:$0xff] }
 0x153   : > { %2045 = vmatprep.subr.bf16.mxu1 %v2275_v46 }
 0x154   : > { %2024 = vmatpush3.bf16.msra.mxu0 %v2274_v47 }
 0x155   : > { %2111 = vmatprep.subr.bf16.mxu0 %v2357_v1 }
 0x156   : > { %2046 = vmatpush3.bf16.msra.mxu1 %v2276_v48 }
 0x157   : > { %1484 = vmatmul.mubr.bf16.vlgmr.msra.gmra.mrb[8].mxu0 %v2751_v18  ;;  %2131 = vmatprep.subr.bf16.mxu1 %v2357_v1 }
 0x158   : > { %2112 = vmatpush3.bf16.msra.mxu0 %v2277_v49  ;;  %2127 = vmatprep.mubr.msk.bf16.mxu0 %vm3009_vm0, %v2357_v1  ;;  %v525_v49 = vadd.f32 %v1827_v43, %v519_v42 }
 0x159   : > { %1524 = vmatmul.mubr.bf16.vlgmr.msra.gmra.mrb[8].mxu1 %v2762_v23  ;;  %2113 = vmatprep.subr.bf16.mxu0 %v2357_v1 }
 0x15a   : > { %2147 = vmatprep.mubr.msk.bf16.mxu1 %vm3009_vm0, %v2357_v1  ;;  %2132 = vmatpush3.bf16.msra.mxu1 %v2285_v63 }
 0x15b   : > { %2133 = vmatprep.subr.bf16.mxu1 %v2357_v1 }
 0x15c   : > { %2114 = vmatpush3.bf16.msra.mxu0 %v2278_v50 }
 0x15d   : > { %2115 = vmatprep.subr.bf16.mxu0 %v2357_v1 }
 0x15e   : > { %2134 = vmatpush3.bf16.msra.mxu1 %v2286_v0 }
 0x15f   : > { %2135 = vmatprep.subr.bf16.mxu1 %v2357_v1 }
 0x160   : > { %2116 = vmatpush3.bf16.msra.mxu0 %v2279_v51 }
 0x161   : > { %2117 = vmatprep.subr.bf16.mxu0 %v2357_v1 }
 0x162   : > { %2136 = vmatpush3.bf16.msra.mxu1 %v2287_v2 }
 0x163   : > { %2137 = vmatprep.subr.bf16.mxu1 %v2357_v1 }
 0x164   : > { %2118 = vmatpush3.bf16.msra.mxu0 %v2280_v53 }
 0x165   : > { %2119 = vmatprep.subr.bf16.mxu0 %v2357_v1 }
 0x166   : > { %2138 = vmatpush3.bf16.msra.mxu1 %v2288_v3 }
 0x167   : > { %2139 = vmatprep.subr.bf16.mxu1 %v2357_v1 }
 0x168   : > { %2120 = vmatpush3.bf16.msra.mxu0 %v2281_v54 }
 0x169   : > { %2121 = vmatprep.subr.bf16.mxu0 %v2357_v1 }
 0x16a   : > { %2140 = vmatpush3.bf16.msra.mxu1 %v2289_v4 }
 0x16b   : > { %2141 = vmatprep.subr.bf16.mxu1 %v2357_v1 }
 0x16c   : > { %2122 = vmatpush3.bf16.msra.mxu0 %v2282_v56 }
 0x16d   : > { %2123 = vmatprep.subr.bf16.mxu0 %v2357_v1 }
 0x16e   : > { %2142 = vmatpush3.bf16.msra.mxu1 %v2290_v5 }
 0x16f   : > { %2143 = vmatprep.subr.bf16.mxu1 %v2357_v1 }
 0x170   : > { %2124 = vmatpush3.bf16.msra.mxu0 %v2283_v58 }
 0x171   : > { %2125 = vmatprep.subr.bf16.mxu0 %v2357_v1 }
 0x172   : > { %2144 = vmatpush3.bf16.msra.mxu1 %v2291_v6 }
 0x173   : > { %2145 = vmatprep.subr.bf16.mxu1 %v2357_v1 }
 0x174   : > { %2126 = vmatpush3.bf16.msra.mxu0 %v2284_v61 }
 0x176   : > { %2146 = vmatpush3.bf16.msra.mxu1 %v2292_v7 }
 0x177   : > { %2128 = vmatmul.mubr.bf16.vlgmr.msra.gmra.mrb[12].mxu0 %v1840_v62 }
 0x20a   : > { %v1981_v8 = vpop.f32.mrb[4].mxu0 }
 0x20b   : > { %v1982_v9 = vpop.f32.mrb[5].mxu0 }
 0x20c   : > { %v1983_v10 = vadd.f32 %v1982_v9, %v1981_v8  ;;  %v1984_v11 = vpop.f32.mrb[6].mxu0  ;;  %v2003_v12 = vpop.f32.mrb[4].mxu1 }
 0x20d   : > { %v1985_v13 = vpop.f32.mrb[7].mxu0  ;;  %v2004_v14 = vpop.f32.mrb[5].mxu1 }
 0x20e   : > { %v2005_v15 = vadd.f32 %v2004_v14, %v2003_v12  ;;  %v2006_v16 = vpop.f32.mrb[6].mxu1 }
 0x20f   : > { %v2007_v17 = vpop.f32.mrb[7].mxu1 }
 0x210   : > { %v1446_v18 = vadd.f32 %v2005_v15, %v1983_v10 }
 0x22a   : > { %v2025_v19 = vpop.f32.mrb[8].mxu0 }
 0x22b   : > { %v2026_v20 = vpop.f32.mrb[9].mxu0 }
 0x22c   : > { %v2027_v21 = vadd.f32 %v2026_v20, %v2025_v19  ;;  %v2028_v22 = vpop.f32.mrb[10].mxu0  ;;  %v2047_v23 = vpop.f32.mrb[8].mxu1 }
 0x22d   : > { %v2029_v24 = vpop.f32.mrb[11].mxu0  ;;  %v2048_v25 = vpop.f32.mrb[9].mxu1 }
 0x22e   : > { %v1486_v1 = vadd.f32 %v2027_v21, %v1446_v18  ;;  %v2049_v26 = vadd.f32 %v2048_v25, %v2047_v23  ;;  %v2050_v27 = vpop.f32.mrb[10].mxu1 }
 0x22f   : > { %v2051_v52 = vpop.f32.mrb[11].mxu1 }
 0x230   : > { %v1526_v28 = vadd.f32 %v2049_v26, %v1486_v1 }
 0x24a   : > { %v1565_v29 = vpop.f32.mrb[12].mxu0 }
 0x24b   : > { %v1566_v31 = vadd.f32 %v1565_v29, %v1526_v28  ;;  %v2129_v32 = vpop.f32.mrb[13].mxu0 }
 0x24c   : > { %v1568_v34 = vpop.f32.mrb[14].mxu0 }
 0x24d   : > { %v1576_v35 = vmul.f32 %v1913_v30, %v1566_v31  ;;  %v2130_v36 = vpop.f32.mrb[15].mxu0 }
 0x24f   : > { %v1582_v37 = vadd.f32 %v1914_v33, %v1576_v35 }
 0x251   : > { %v1583_v38 = vmax.f32 %v1582_v37, 0.0 }
 0x253   : > { %v1584_v39 = vpack.c.bf16 %v1583_v38, %v1583_v38 }
 0x255   : > { %2148 = vmatmul.mubr.bf16.vlgmr.msra.gmra.mrb[12].mxu1 %v1584_v39 }
 0x328   : > { %v1684_v44 = vpop.f32.mrb[12].mxu1 }
 0x329   : > { %v1695_v46 = vmul.f32 %v1939_v41, %v1684_v44  ;;  %v2149_v47 = vpop.f32.mrb[13].mxu1 }
 0x32a   : > { %v1687_v48 = vpop.f32.mrb[14].mxu1 }
 0x32b   : > { %v1701_v50 = vadd.f32 %v1940_v45, %v1695_v46  ;;  %v2150_v51 = vpop.f32.mrb[15].mxu1 }
 0x32d   : > { %v1702_v53 = vadd.f32 %v1701_v50, %v525_v49 }
 0x32f   : > { %v1703_v54 = vmax.f32 %v1702_v53, 0.0 }
 0x331   : > { %v1705_v56 = vsel %vm1704_vm14, %v1703_v54, 0.0 }
 0x332   : > { %v1706_v55 = vrot.slane %v1705_v56, 4 }
 0x334   : > { %v1707_v57 = vadd.f32 %v1706_v55, %v1705_v56 }
 0x336   : > { %v1708_v58 = vrot.slane %v1707_v57, 2 }
 0x338   : > { %v1709_v59 = vadd.f32 %v1708_v58, %v1707_v57 }
 0x33a   : > { %v1710_v60 = vrot.slane %v1709_v59, 1 }
 0x33c   : > { %v1711_v61 = vadd.f32 %v1710_v60, %v1709_v59 }
 0x33e   : > { %v1713_v62 = vmul.f32 0.25, %v1711_v61 }
 0x340   : > { %1714 = vst [vmem:[%s189_s12] sm:$0x1] %v1713_v62 }
 0x341   : > { %2306 = shalt.err (!%p2303_p3)
}
 0x342   : > { %s2307_s30 = scalar_lea.hbm %s2937_s22, 16  ;;  %s2311_s7 = scalar_lea.hbm %s2983_s4, 32 }
 0x343   : > { %p2308_p4 = scmp.ne.s32.totalorder %s2937_s22, %s2307_s30  ;;  %p2312_p9 = scmp.lt.u32.totalorder %s2937_s22, %s2983_s4 }
 0x344   : > { %p2313_p10 = scmp.lt.u32.totalorder %s2311_s7, %s2307_s30  ;;  %p2315_p12 = scmp.lt.u32.totalorder %s2307_s30, %s2937_s22 }
 0x345   : > { %p2309_p7 = pnand %p2308_p4, %p2425_p5 }
 0x346   : > { %p2314_p11 = por %p2313_p10, %p2312_p9 }
 0x347   : > { %p2310_p8 = pneg %p2309_p7 }
 0x348   : > { %p2316_p13 = por %p2315_p12, %p2314_p11 }
 0x34a   : > { %p2317_p0 = pnand %p2316_p13, %p2310_p8 }
 0x34c   : > { %2320 = shalt.err (!%p2317_p0)
}
 0x34d   : > { %2151 = dma.vmem_to_hbm [thread:$0]  (%p2425_p5), %s2939_s13, 16, %s2937_s22, %s1716_s23  }
 0x34e PF: > { %p2157_p1 = scmp.ge.s32.totalorder %s2355_s18, 2  ;;  %s1740_s10 = sand.u32 1, %s2343_s15  }
 0x34f   : > { %s1741_s11 = scalar_lea.sflag [#allocation5], %s1740_s10 }
 0x350   : > { %p2154_p2 = pnand %p2157_p1, %p2429_p6 }
 0x352   : > { %2338 = dma.done.wait (!%p2154_p2), %s1741_s11, 16  }
 0x353   : > { %2340 = vsyncadd (!%p2154_p2), %s1741_s11, 4294967280  ;;  %p14_p3 = scmp.ge.s32.totalorder %s2412_s21, 4   ;;  %s3010_s15 = smov %s2347_s16 }
 0x354   : > { %s3011_s16 = smov %s2351_s17  ;;  %s3012_s17 = smov %s2423_s24 }
 0x355   : > { %s3013_s18 = smov %s2412_s21  ;;  %16 = sbr.rel (!%p14_p3) target bundleno = 3 (0x3), region = 76 }
 0x35c   :  { %1745 = vsyncpa [#allocation5], 1 }
 0x35d   :  { %1747 = vsyncpa [#allocation5 + $0x1], 1 }

// kernel: regnet_forward.4
= control target key start
LH: loop header
LB: loop body
LE: loop exit
PB: predicated region body
PF: predicated region fallthrough
CT: control target
= control target key end

     0   :  { %s2602_s18 = smov 0   ;;  %s3139_s0 = inlined_call_operand.vmem [shape: bf16[2,64,128], index: 0, kind: input, shape index: {}]   ;;  %s3140_s1 = inlined_call_operand.vmem [shape: bf16[3,128,128], index: 1, kind: input, shape index: {}]   ;;  %s3141_s2 = inlined_call_operand.vmem [shape: bf16[1152,128], index: 2, kind: input, shape index: {}]   ;;  %s3142_s3 = inlined_call_operand.vmem [shape: f32[8,128], index: 3, kind: input, shape index: {}]   ;;  %s3143_s4 = inlined_call_operand.vmem [shape: bf16[16,16], index: 4, kind: input, shape index: {}]   ;;  %s3144_s5 = inlined_call_operand.vmem [shape: bf16[2,16,128], index: 5, kind: output, shape index: {}]  }
   0x1 LB: > { %s2021_s19 = sadd.s32 4294967295, %s2567_s18   ;;  %p2025_p0 = scmp.ge.s32.totalorder %s2567_s18, 1  ;;  %s2567_s18 = sphi %s2602_s18, %s15_s18  }
   0x2   : > { %p187_p1 = scmp.lt.s32.totalorder %s2567_s18, 3 }
   0x4   : > { %p188_p2 = pnand %p2025_p0, %p187_p1 }
   0x5   : > { %v2448_v0 = vld [vmem:[%s3140_s1] sm:$0xff] (!%p188_p2)   ;;  %p215_p3 = scmp.lt.s32.totalorder (!%p188_p2), %s2021_s19, 1  ;;  %v2449_v1 = vld [vmem:[%s3140_s1 + $0x8] sm:$0xff] (!%p188_p2)   ;;  %v2569_v2 = vmov (!%p188_p2), 0.0   ;;  %v2450_v3 = vld [vmem:[%s3140_s1 + $0x10] sm:$0xff] (!%p188_p2)   ;;  %vm228_vm0 = vcmask (!%p188_p2), 1042432  }
   0x6   : > { %191 = sbr.rel (%p188_p2) target bundleno = 1030 (0x406), region = 40  ;;  %2347 = vmatprep.subr.bf16.mxu0 (!%p188_p2), %v2448_v0  ;;  %2371 = vmatprep.subr.bf16.mxu1 (!%p188_p2), %v2569_v2  ;;  %v2451_v4 = vld [vmem:[%s3140_s1 + $0x18] sm:$0xff] (!%p188_p2)   ;;  %v2452_v6 = vld [vmem:[%s3140_s1 + $0x20] sm:$0xff] (!%p188_p2)   ;;  %v2461_v8 = vld [vmem:[%s3140_s1 + $0x48] sm:$0xff] (!%p188_p2)   ;;  %vm229_vm1 = vsmask.f32 (!%p188_p2), 2304 }
   0x7   : > { %2348 = vmatpush3.bf16.msra.mxu0 (!%p188_p2), %v2448_v0  ;;  %v2460_v7 = vld [vmem:[%s3140_s1 + $0x40] sm:$0xff] (!%p188_p2)   ;;  %v2453_v9 = vld [vmem:[%s3140_s1 + $0x28] sm:$0xff] (!%p188_p2)   ;;  %v2462_v10 = vld [vmem:[%s3140_s1 + $0x50] sm:$0xff] (!%p188_p2)   ;;  %vm2570_vm3 = vmmov (!%p188_p2), 0   ;;  %v243_v0 = vlaneseq (!%p188_p2)  ;;  %vm500_vm8 = vcmask (!%p188_p2), 1043458   ;;  %vm804_vm11 = vcmask (!%p188_p2), 1041408  }
   0x8   : > { %2349 = vmatprep.subr.bf16.mxu0 (!%p188_p2), %v2449_v1  ;;  %2372 = vmatpush3.bf16.msra.mxu1 (!%p188_p2), %v2460_v7  ;;  %v2454_v11 = vld [vmem:[%s3140_s1 + $0x30] sm:$0xff] (!%p188_p2)   ;;  %v234_v12 = vld [vmem:[#allocation2 + $0xc] sm:$0x7] (!%p188_p2)  ;;  %vm2656_vm2 = vmand (!%p188_p2), %vm228_vm0, %vm229_vm1  ;;  %vm501_vm9 = vsmask.f32 (!%p188_p2), 7946  ;;  %vm805_vm12 = vcmask (!%p188_p2), 1045508  }
   0x9   : > { %2373 = vmatprep.subr.bf16.mxu1 (!%p188_p2), %v2569_v2  ;;  %v2463_v14 = vld [vmem:[%s3140_s1 + $0x58] sm:$0xff] (!%p188_p2)   ;;  %v235_v15 = vsel (!%p188_p2), %vm2656_vm2, 0, %v234_v12  ;;  %v2464_v17 = vld [vmem:[%s3140_s1 + $0x60] sm:$0xff] (!%p188_p2)   ;;  %v2465_v19 = vld [vmem:[%s3140_s1 + $0x68] sm:$0xff] (!%p188_p2)   ;;  %2387 = vmatprep.mubr.msk.bf16.mxu1 (!%p188_p2), %vm2570_vm3, %v2569_v2  ;;  %vm476_vm10 = vsmask.f32 (!%p188_p2), 6416 }
   0xa   : > { %236 = vst [vmem:[#allocation2 + $0xc] sm:$0x7] (!%p188_p2), %v235_v15  ;;  %v2455_v16 = vld [vmem:[%s3140_s1 + $0x38] sm:$0xff] (!%p188_p2)   ;;  %v2466_v22 = vld [vmem:[%s3140_s1 + $0x70] sm:$0xff] (!%p188_p2)   ;;  %v231_v24 = vld [vmem:[#allocation2] sm:$0x7] (!%p188_p2) }
   0xb   : > { %2350 = vmatpush3.bf16.msra.mxu0 (!%p188_p2), %v2449_v1  ;;  %v2467_v23 = vld [vmem:[%s3140_s1 + $0x78] sm:$0xff] (!%p188_p2)   ;;  %v232_v25 = vsel (!%p188_p2), %vm2656_vm2, 0, %v231_v24  ;;  %v240_v26 = vld [vmem:[#allocation2 + $0x24] sm:$0x7] (!%p188_p2)  ;;  %v2472_v34 = vld [vmem:[%s3141_s2 + $0xc8] sm:$0xff] (!%p188_p2)   ;;  %v244_v1 = vshrl.u32 (!%p188_p2), %v243_v0, 7 }
   0xc   : > { %2351 = vmatprep.subr.bf16.mxu0 (!%p188_p2), %v2450_v3  ;;  %2374 = vmatpush3.bf16.msra.mxu1 (!%p188_p2), %v2461_v8  ;;  %233 = vst [vmem:[#allocation2] sm:$0x7] (!%p188_p2), %v232_v25  ;;  %v2468_v27 = vld [vmem:[%s3141_s2 + $0xc0] sm:$0xff] (!%p188_p2)   ;;  %v241_v28 = vsel (!%p188_p2), %vm2656_vm2, 0, %v240_v26  ;;  %v237_v31 = vld [vmem:[#allocation2 + $0x18] sm:$0x7] (!%p188_p2)  ;;  %vm2859_vm13 = vmand (!%p188_p2), %vm500_vm8, %vm501_vm9 }
   0xd   : > { %s3158_s19 = smov (!%p215_p3, %s2021_s19), 1  ;;  %2375 = vmatprep.subr.bf16.mxu1 %v2569_v2  ;;  %v2469_v29 = vld [vmem:[%s3141_s2 + $0x80] sm:$0xff]   ;;  %242 = vst [vmem:[#allocation2 + $0x24] sm:$0x7] %v241_v28  ;;  %v238_v33 = vsel %vm2656_vm2, 0, %v237_v31  ;;  %v2473_v35 = vld [vmem:[%s3141_s2 + $0x88] sm:$0xff]   ;;  %vm2866_vm14 = vmor %vm229_vm1, %vm476_vm10 }
   0xe   : > { %s2201_s26 = sshll.u32 %s3158_s19, 5  ;;  %v2470_v30 = vld [vmem:[%s3141_s2 + $0x40] sm:$0xff]   ;;  %239 = vst [vmem:[#allocation2 + $0x18] sm:$0x7] %v238_v33  ;;  %v2474_v36 = vld [vmem:[%s3141_s2 + $0x48] sm:$0xff]   ;;  %v2476_v38 = vld [vmem:[%s3141_s2 + $0xd0] sm:$0xff]  }
   0xf   : > { %s2626_s29 = scalar_lea.vmem %s3139_s0, %s2201_s26  ;;  %2352 = vmatpush3.bf16.msra.mxu0 %v2450_v3  ;;  %v2471_v32 = vld [vmem:[%s3141_s2] sm:$0xff]   ;;  %v2475_v37 = vld [vmem:[%s3141_s2 + $0x8] sm:$0xff]   ;;  %v2477_v39 = vld [vmem:[%s3141_s2 + $0x90] sm:$0xff]   ;;  %v245_v3 = vadd.s32 8, %v244_v1  ;;  %vm826_vm9 = vcmask 1045504   ;;  %s2202_s27 = sshll.u32 %s3158_s19, 3 }
  0x10   : > { %v2632_v5 = vld [vmem:[%s2626_s29] sm:$0xff]   ;;  %2353 = vmatprep.subr.bf16.mxu0 %v2451_v4  ;;  %2376 = vmatpush3.bf16.msra.mxu1 %v2462_v10  ;;  %v2457_v18 = vld [vmem:[%s2626_s29 + $0x8] sm:$0xff]   ;;  %v2458_v20 = vld [vmem:[%s2626_s29 + $0x10] sm:$0xff]   ;;  %vm759_vm10 = vsmask.f32 7424  ;;  %s224_s6 = scalar_lea.vmem %s3144_s5, %s2202_s27 }
  0x11   : > { %2363 = vmatprep.mubr.bf16.mxu0 %v2632_v5  ;;  %2377 = vmatprep.subr.bf16.mxu1 %v2569_v2  ;;  %v2459_v21 = vld [vmem:[%s2626_s29 + $0x18] sm:$0xff]   ;;  %v2478_v40 = vld [vmem:[%s3141_s2 + $0x50] sm:$0xff]   ;;  %v2484_v46 = vld [vmem:[%s3141_s2 + $0xe0] sm:$0xff]  }
  0x12   : > { %v2479_v41 = vld [vmem:[%s3141_s2 + $0x10] sm:$0xff]   ;;  %v2480_v42 = vld [vmem:[%s3141_s2 + $0xd8] sm:$0xff]   ;;  %v2485_v47 = vld [vmem:[%s3141_s2 + $0xa0] sm:$0xff]  }
  0x13   : > { %2354 = vmatpush3.bf16.msra.mxu0 %v2451_v4  ;;  %v2481_v43 = vld [vmem:[%s3141_s2 + $0x98] sm:$0xff]   ;;  %v2486_v48 = vld [vmem:[%s3141_s2 + $0x60] sm:$0xff]   ;;  %v2488_v50 = vld [vmem:[%s3141_s2 + $0xe8] sm:$0xff]   ;;  %v250_v4 = vand.u32 3, %v244_v1 }
  0x14   : > { %2355 = vmatprep.subr.bf16.mxu0 %v2452_v6  ;;  %2378 = vmatpush3.bf16.msra.mxu1 %v2463_v14  ;;  %v2482_v44 = vld [vmem:[%s3141_s2 + $0x58] sm:$0xff]   ;;  %v2487_v49 = vld [vmem:[%s3141_s2 + $0x20] sm:$0xff]   ;;  %v2489_v51 = vld [vmem:[%s3141_s2 + $0xa8] sm:$0xff]   ;;  %v2571_v14 = vmov 0  }
  0x15   : > { %2379 = vmatprep.subr.bf16.mxu1 %v2569_v2  ;;  %v2483_v45 = vld [vmem:[%s3141_s2 + $0x18] sm:$0xff]   ;;  %v2490_v52 = vld [vmem:[%s3141_s2 + $0x68] sm:$0xff]   ;;  %v2492_v54 = vld [vmem:[%s3141_s2 + $0xf0] sm:$0xff]   ;;  %vm2799_vm4 = vcmp.eq.s32.totalorder %v250_v4, 0 }
  0x16   : > { %v2491_v53 = vld [vmem:[%s3141_s2 + $0x28] sm:$0xff]   ;;  %v2493_v55 = vld [vmem:[%s3141_s2 + $0xb0] sm:$0xff]   ;;  %v2496_v58 = vld [vmem:[%s3141_s2 + $0xf8] sm:$0xff]  }
  0x17   : > { %2356 = vmatpush3.bf16.msra.mxu0 %v2452_v6  ;;  %v2494_v56 = vld [vmem:[%s3141_s2 + $0x70] sm:$0xff]   ;;  %v2497_v59 = vld [vmem:[%s3141_s2 + $0xb8] sm:$0xff]   ;;  %v2500_v62 = vld [vmem:[%s3141_s2 + $0x1c0] sm:$0xff]  }
  0x18   : > { %2357 = vmatprep.subr.bf16.mxu0 %v2453_v9  ;;  %2380 = vmatpush3.bf16.msra.mxu1 %v2464_v17  ;;  %v2495_v57 = vld [vmem:[%s3141_s2 + $0x30] sm:$0xff]   ;;  %v2498_v60 = vld [vmem:[%s3141_s2 + $0x78] sm:$0xff]   ;;  %v2506_v63 = vld [vmem:[%s3141_s2 + $0x140] sm:$0xff]  }
  0x19   : > { %2381 = vmatprep.subr.bf16.mxu1 %v2569_v2  ;;  %v2499_v61 = vld [vmem:[%s3141_s2 + $0x38] sm:$0xff]   ;;  %vm737_vm6 = vmpackc.low %vm2799_vm4, %vm2799_vm4  ;;  %v2813_v8 = vld [vmem:[%s3142_s3] ss:$0 sm:$0xff] }
  0x1a   : > { %v2821_v10 = vld [vmem:[%s3142_s3 + $0x1] ss:$0 sm:$0xff]  ;;  %v2829_v15 = vsel %vm737_vm6, 65537, %v2571_v14  ;;  %vm806_vm15 = vmor %vm804_vm11, %vm805_vm12 }
  0x1b   : > { %2358 = vmatpush3.bf16.msra.mxu0 %v2453_v9  ;;  %v807_v24 = vrot.slane %v2829_v15, 6 }
  0x1c   : > { %2359 = vmatprep.subr.bf16.mxu0 %v2454_v11  ;;  %2382 = vmatpush3.bf16.msra.mxu1 %v2465_v19 }
  0x1d   : > { %2383 = vmatprep.subr.bf16.mxu1 %v2569_v2  ;;  %vm2896_vm0 = vcmp.ne.s16.totalorder %v807_v24, 0 }
  0x1f   : > { %2360 = vmatpush3.bf16.msra.mxu0 %v2454_v11 }
  0x20   : > { %2361 = vmatprep.subr.bf16.mxu0 %v2455_v16  ;;  %2384 = vmatpush3.bf16.msra.mxu1 %v2466_v22 }
  0x21   : > { %2385 = vmatprep.subr.bf16.mxu1 %v2569_v2 }
  0x23   : > { %2362 = vmatpush3.bf16.msra.mxu0 %v2455_v16 }
  0x24   : > { %2386 = vmatpush3.bf16.msra.mxu1 %v2467_v23  ;;  %2239 = vmatprep.subr.bf16.mxu0 %v2470_v30 }
  0x25   : > { %2261 = vmatprep.subr.bf16.mxu1 %v2468_v27 }
  0x26   : > { %2364 = vmatmul.mubr.bf16.vlgmr.msra.gmra.mrb[0].mxu0 %v2457_v18 }
  0x27   : > { %2367 = vmatprep.mubr.bf16.mxu0 %v2458_v20  ;;  %2388 = vmatmul.mubr.bf16.vlgmr.msra.gmra.mrb[0].mxu1 %v2632_v5  ;;  %v257_v5 = vand.u32 3, %v245_v3 }
  0x28   : > { %2262 = vmatpush3.bf16.msra.mxu1 %v2469_v29  ;;  %2240 = vmatpush3.bf16.msra.mxu0 %v2471_v32 }
  0x29   : > { %2263 = vmatprep.subr.bf16.mxu1 %v2472_v34  ;;  %2241 = vmatprep.subr.bf16.mxu0 %v2474_v36  ;;  %vm2803_vm5 = vcmp.eq.s32.totalorder %v257_v5, 0 }
  0x2a   : > { %vm738_vm7 = vmpackc.low %vm2803_vm5, %vm2803_vm5 }
  0x2b   : > { %v2836_v16 = vsel %vm738_vm7, 65537, %v2571_v14 }
  0x2c   : > { %2264 = vmatpush3.bf16.msra.mxu1 %v2473_v35  ;;  %2242 = vmatpush3.bf16.msra.mxu0 %v2475_v37  ;;  %v809_v25 = vrot.slane %v2836_v16, 6  ;;  %v2849_v35 = vrot.slane %v807_v24, 4 }
  0x2d   : > { %2265 = vmatprep.subr.bf16.mxu1 %v2476_v38  ;;  %2243 = vmatprep.subr.bf16.mxu0 %v2478_v40 }
  0x2e   : > { %2368 = vmatmul.mubr.bf16.gmra.mrb[4].mxu0 %v2459_v21  ;;  %v2853_v36 = vrot.slane %v809_v25, 4 }
  0x30   : > { %2266 = vmatpush3.bf16.msra.mxu1 %v2477_v39  ;;  %2244 = vmatpush3.bf16.msra.mxu0 %v2479_v41  ;;  %vm814_vm8 = vcmp.ne.s16.totalorder %v2853_v36, 0  ;;  %v2535_v36 = vld [vmem:[%s3141_s2 + $0x130] sm:$0xff]  }
  0x31   : > { %2267 = vmatprep.subr.bf16.mxu1 %v2480_v42  ;;  %2245 = vmatprep.subr.bf16.mxu0 %v2482_v44 }
  0x34   : > { %2268 = vmatpush3.bf16.msra.mxu1 %v2481_v43  ;;  %2246 = vmatpush3.bf16.msra.mxu0 %v2483_v45 }
  0x35   : > { %2269 = vmatprep.subr.bf16.mxu1 %v2484_v46  ;;  %2247 = vmatprep.subr.bf16.mxu0 %v2486_v48 }
  0x38   : > { %2270 = vmatpush3.bf16.msra.mxu1 %v2485_v47  ;;  %2248 = vmatpush3.bf16.msra.mxu0 %v2487_v49 }
  0x39   : > { %2271 = vmatprep.subr.bf16.mxu1 %v2488_v50  ;;  %2249 = vmatprep.subr.bf16.mxu0 %v2490_v52 }
  0x3c   : > { %2272 = vmatpush3.bf16.msra.mxu1 %v2489_v51  ;;  %2250 = vmatpush3.bf16.msra.mxu0 %v2491_v53  ;;  %v538_v53 = vld [vmem:[#allocation2 + $0xc] sm:$0xc] }
  0x3d   : > { %2273 = vmatprep.subr.bf16.mxu1 %v2492_v54  ;;  %2251 = vmatprep.subr.bf16.mxu0 %v2494_v56 }
  0x40   : > { %2274 = vmatpush3.bf16.msra.mxu1 %v2493_v55  ;;  %2252 = vmatpush3.bf16.msra.mxu0 %v2495_v57 }
  0x41   : > { %2275 = vmatprep.subr.bf16.mxu1 %v2496_v58  ;;  %2253 = vmatprep.subr.bf16.mxu0 %v2498_v60 }
  0x44   : > { %2276 = vmatpush3.bf16.msra.mxu1 %v2497_v59  ;;  %2254 = vmatpush3.bf16.msra.mxu0 %v2499_v61  ;;  %v503_v59 = vld [vmem:[#allocation2] sm:$0xc] }
  0x45   : > { %2305 = vmatprep.subr.bf16.mxu1 %v2500_v62  ;;  %2283 = vmatprep.subr.bf16.mxu0 %v2506_v63 }
  0xf9   : > { %v2365_v9 = vpop.f32.mrb[0].mxu0 }
  0xfa   : > { %v440_v11 = vmul.f32 %v2365_v9, %v2813_v8  ;;  %v402_v12 = vpop.f32.mrb[1].mxu0 }
  0xfb   : > { %v438_v17 = vmul.f32 %v2813_v8, %v402_v12  ;;  %v2366_v18 = vpop.f32.mrb[2].mxu0 }
  0xfc   : > { %v453_v19 = vadd.f32 %v2821_v10, %v440_v11  ;;  %v441_v20 = vmul.f32 %v2366_v18, %v2813_v8  ;;  %v405_v21 = vpop.f32.mrb[3].mxu0  ;;  %v542_v18 = vld [vmem:[#allocation2 + $0x14] sm:$0x7] }
  0xfd   : > { %v451_v22 = vadd.f32 %v2821_v10, %v438_v17  ;;  %v439_v23 = vmul.f32 %v2813_v8, %v405_v21 }
  0xfe   : > { %v461_v26 = vmax.f32 %v453_v19, 0.0  ;;  %v454_v27 = vadd.f32 %v2821_v10, %v441_v20 }
  0xff   : > { %v459_v28 = vmax.f32 %v451_v22, 0.0  ;;  %v452_v29 = vadd.f32 %v2821_v10, %v439_v23  ;;  %v507_v23 = vld [vmem:[#allocation2 + $0x8] sm:$0x7] }
 0x100   : > { %v2205_v30 = vpack.c.bf16 %v461_v26, %v461_v26  ;;  %v462_v31 = vmax.f32 %v454_v27, 0.0 }
 0x101   : > { %v2203_v32 = vpack.c.bf16 %v459_v28, %v459_v28  ;;  %v460_v33 = vmax.f32 %v452_v29, 0.0  ;;  %v2369_v34 = vpop.f32.mrb[4].mxu0 }
 0x102   : > { %v516_v37 = vshrl.u32 %v2205_v30, 16  ;;  %v519_v38 = vshll.u32 %v2205_v30, 16  ;;  %v2206_v39 = vpack.c.bf16 %v462_v31, %v462_v31  ;;  %v444_v40 = vmul.f32 %v2369_v34, %v2813_v8  ;;  %v418_v41 = vpop.f32.mrb[5].mxu0 }
 0x103   : > { %v479_v42 = vshrl.u32 %v2203_v32, 16  ;;  %v482_v43 = vshll.u32 %v2203_v32, 16  ;;  %v2204_v44 = vpack.c.bf16 %v460_v33, %v460_v33  ;;  %v442_v45 = vmul.f32 %v2813_v8, %v418_v41  ;;  %v2370_v46 = vpop.f32.mrb[6].mxu0 }
 0x104   : > { %v518_v47 = vrot.slane %v516_v37, 5  ;;  %v521_v48 = vrot.slane %v519_v38, 6  ;;  %v525_v49 = vshrl.u32 %v2206_v39, 16  ;;  %v528_v50 = vshll.u32 %v2206_v39, 16  ;;  %v421_v51 = vpop.f32.mrb[7].mxu0 }
 0x105   : > { %v481_v54 = vrot.slane %v479_v42, 5  ;;  %v484_v55 = vrot.slane %v482_v43, 6  ;;  %v488_v56 = vshrl.u32 %v2204_v44, 16  ;;  %v491_v57 = vshll.u32 %v2204_v44, 16 }
 0x106   : > { %v522_v58 = vor.u32 %v521_v48, %v518_v47  ;;  %v527_v60 = vrot.slane %v525_v49, 5  ;;  %v530_v61 = vrot.slane %v528_v50, 6  ;;  %v457_v62 = vadd.f32 %v2821_v10, %v444_v40  ;;  %v573_v50 = vld [vmem:[#allocation2 + $0x18] sm:$0xc] }
 0x107   : > { %v485_v63 = vor.u32 %v484_v55, %v481_v54  ;;  %v490_v1 = vrot.slane %v488_v56, 5  ;;  %v493_v3 = vrot.slane %v491_v57, 6  ;;  %v455_v4 = vadd.f32 %v2821_v10, %v442_v45  ;;  %v608_v45 = vld [vmem:[#allocation2 + $0x24] sm:$0xc] }
 0x108   : > { %v523_v5 = vrot.slane %v522_v58, 4  ;;  %v539_v9 = vsel %vm2859_vm13, %v522_v58, %v538_v53  ;;  %v531_v11 = vor.u32 %v530_v61, %v527_v60  ;;  %v465_v12 = vmax.f32 %v457_v62, 0.0 }
 0x109   : > { %540 = vst [vmem:[#allocation2 + $0xc] sm:$0xc] %v539_v9  ;;  %v486_v14 = vrot.slane %v485_v63, 4  ;;  %v504_v17 = vsel %vm2859_vm13, %v485_v63, %v503_v59  ;;  %v494_v19 = vor.u32 %v493_v3, %v490_v1  ;;  %v463_v20 = vmax.f32 %v455_v4, 0.0 }
 0x10a   : > { %505 = vst [vmem:[#allocation2] sm:$0xc] %v504_v17  ;;  %v532_v21 = vsel %vm2866_vm14, %v523_v5, %v531_v11  ;;  %v533_v22 = vrot.slane %v531_v11, 4  ;;  %v2209_v26 = vpack.c.bf16 %v465_v12, %v465_v12  ;;  %v445_v27 = vmul.f32 %v2370_v46, %v2813_v8  ;;  %v612_v12 = vld [vmem:[#allocation2 + $0x2c] sm:$0x7] }
 0x10b   : > { %541 = vst [vmem:[#allocation2 + $0x10] sm:$0xf] %v532_v21  ;;  %v495_v28 = vsel %vm2866_vm14, %v486_v14, %v494_v19  ;;  %v496_v29 = vrot.slane %v494_v19, 4  ;;  %v2207_v30 = vpack.c.bf16 %v463_v20, %v463_v20  ;;  %v443_v31 = vmul.f32 %v2813_v8, %v421_v51  ;;  %v577_v20 = vld [vmem:[#allocation2 + $0x20] sm:$0x7] }
 0x10c   : > { %v543_v32 = vsel %vm2656_vm2, %v533_v22, %v542_v18  ;;  %506 = vst [vmem:[#allocation2 + $0x4] sm:$0xf] %v495_v28  ;;  %v586_v33 = vshrl.u32 %v2209_v26, 16  ;;  %v589_v34 = vshll.u32 %v2209_v26, 16  ;;  %v458_v37 = vadd.f32 %v2821_v10, %v445_v27 }
 0x10d   : > { %544 = vst [vmem:[#allocation2 + $0x14] sm:$0x7] %v543_v32  ;;  %v508_v38 = vsel %vm2656_vm2, %v496_v29, %v507_v23  ;;  %v551_v39 = vshrl.u32 %v2207_v30, 16  ;;  %v554_v40 = vshll.u32 %v2207_v30, 16  ;;  %v456_v41 = vadd.f32 %v2821_v10, %v443_v31 }
 0x10e   : > { %509 = vst [vmem:[#allocation2 + $0x8] sm:$0x7] %v508_v38  ;;  %v588_v8 = vrot.slane %v586_v33, 5  ;;  %v591_v42 = vrot.slane %v589_v34, 6  ;;  %v466_v43 = vmax.f32 %v458_v37, 0.0  ;;  %v2892_v44 = vsel %vm806_vm15, %v2849_v35, %v809_v25 }
 0x10f   : > { %v553_v46 = vrot.slane %v551_v39, 5  ;;  %v556_v47 = vrot.slane %v554_v40, 6  ;;  %v464_v48 = vmax.f32 %v456_v41, 0.0  ;;  %vm813_vm1 = vcmp.ne.s16.totalorder %v2892_v44, 0  ;;  %v2537_v44 = vld [vmem:[%s3141_s2 + $0x1b8] sm:$0xff]  }
 0x110   : > { %v592_v10 = vor.u32 %v591_v42, %v588_v8  ;;  %v2210_v51 = vpack.c.bf16 %v466_v43, %v466_v43  ;;  %v799_v53 = vld [vmem:[#allocation2 + $0xc] sm:$0xc] }
 0x111   : > { %v557_v54 = vor.u32 %v556_v47, %v553_v46  ;;  %v2208_v55 = vpack.c.bf16 %v464_v48, %v464_v48  ;;  %v815_v24 = vsel %vm2896_vm0, 0, %v799_v53 }
 0x112   : > { %v609_v16 = vsel %vm2859_vm13, %v592_v10, %v608_v45  ;;  %v595_v25 = vshrl.u32 %v2210_v51, 16  ;;  %v598_v35 = vshll.u32 %v2210_v51, 16  ;;  %v800_v15 = vld [vmem:[#allocation2 + $0x10] sm:$0xf]  ;;  %v593_v56 = vrot.slane %v592_v10, 4 }
 0x113   : > { %610 = vst [vmem:[#allocation2 + $0x24] sm:$0xc] %v609_v16  ;;  %v574_v57 = vsel %vm2859_vm13, %v557_v54, %v573_v50  ;;  %v560_v58 = vshrl.u32 %v2208_v55, 16  ;;  %v563_v59 = vshll.u32 %v2208_v55, 16  ;;  %v558_v60 = vrot.slane %v557_v54, 4 }
 0x114   : > { %575 = vst [vmem:[#allocation2 + $0x18] sm:$0xc] %v574_v57  ;;  %v597_v61 = vrot.slane %v595_v25, 5  ;;  %v600_v62 = vrot.slane %v598_v35, 6  ;;  %v801_v63 = vld [vmem:[#allocation2 + $0x14] sm:$0x3] }
 0x115   : > { %v816_v1 = vsel %vm813_vm1, 0, %v800_v15  ;;  %v562_v3 = vrot.slane %v560_v58, 5  ;;  %v565_v4 = vrot.slane %v563_v59, 6  ;;  %v817_v5 = vsel %vm814_vm8, 0, %v801_v63  ;;  %v2508_v17 = vld [vmem:[#allocation2 + $0xc] sm:$0xfc]  }
 0x116   : > { %v2083_v9 = vcombine.low %v815_v24, %v816_v1  ;;  %v601_v11 = vor.u32 %v600_v62, %v597_v61  ;;  %v2084_v52 = vcombine.low %v817_v5, %v817_v5  ;;  %v2509_v30 = vld [vmem:[#allocation2 + $0x14] ss:$0 sps:$4 sm:$0x77]   ;;  %v875_v31 = vshrl.u32 %v2508_v17, 16  ;;  %v2503_v15 = vld [vmem:[%s3141_s2 + $0x180] sm:$0xff]   ;;  %v2510_v59 = vld [vmem:[%s3141_s2 + $0x1c8] sm:$0xff]  }
 0x117   : > { %v566_v14 = vor.u32 %v565_v4, %v562_v3  ;;  %v878_v33 = vshll.u32 %v2508_v17, 16  ;;  %v883_v34 = vshrl.u32 %v2509_v30, 16  ;;  %v886_v39 = vshll.u32 %v2509_v30, 16  ;;  %v2507_v63 = vld [vmem:[%s3141_s2 + $0x100] sm:$0xff]   ;;  %v2521_v30 = vld [vmem:[%s3141_s2 + $0x198] sm:$0xff]  }
 0x118   : > { %v602_v18 = vsel %vm2866_vm14, %v593_v56, %v601_v11  ;;  %v603_v19 = vrot.slane %v601_v11, 4  ;;  %v827_v21 = vrot.slane %v2083_v9, 2  ;;  %v828_v22 = vrot.slane %v2084_v52, 2  ;;  %v2514_v52 = vld [vmem:[%s3141_s2 + $0x148] sm:$0xff]  }
 0x119   : > { %611 = vst [vmem:[#allocation2 + $0x28] sm:$0xf] %v602_v18  ;;  %v567_v23 = vsel %vm2866_vm14, %v558_v60, %v566_v14  ;;  %v568_v26 = vrot.slane %v566_v14, 4  ;;  %v877_v0 = vrot.slane %v875_v31, 2  ;;  %v880_v8 = vrot.slane %v878_v33, 3  ;;  %v2513_v14 = vld [vmem:[%s3141_s2 + $0x188] sm:$0xff]  }
 0x11a   : > { %v613_v27 = vsel %vm2656_vm2, %v603_v19, %v612_v12  ;;  %576 = vst [vmem:[#allocation2 + $0x1c] sm:$0xf] %v567_v23  ;;  %v829_v28 = vsel %vm826_vm9, %v827_v21, %v828_v22  ;;  %v735_v32 = vld [vmem:[#allocation2 + $0x24] sm:$0xf]  ;;  %v885_v47 = vrot.slane %v883_v34, 2  ;;  %v888_v48 = vrot.slane %v886_v39, 3 }
 0x11b   : > { %614 = vst [vmem:[#allocation2 + $0x2c] sm:$0x7] %v613_v27  ;;  %v578_v29 = vsel %vm2656_vm2, %v568_v26, %v577_v20  ;;  %1630 = vmatprep.mubr.bf16.mxu1 %v829_v28  ;;  %v739_v13 = vsel %vm737_vm6, 0, %v735_v32  ;;  %vm843_vm2 = vsmask.f32 5376  ;;  %v881_v1 = vor.u32 %v880_v8, %v877_v0  ;;  %v2516_v20 = vld [vmem:[%s3141_s2 + $0x1d0] sm:$0xff]  }
 0x11c   : > { %579 = vst [vmem:[#allocation2 + $0x20] sm:$0x7] %v578_v29  ;;  %v889_v7 = vor.u32 %v888_v48, %v885_v47  ;;  %v2515_v21 = vld [vmem:[%s3141_s2 + $0x108] sm:$0xff]   ;;  %v2518_v23 = vld [vmem:[%s3141_s2 + $0x150] sm:$0xff]   ;;  %v2520_v27 = vld [vmem:[%s3141_s2 + $0x1d8] sm:$0xff]  }
 0x11d   : > { %v2517_v26 = vld [vmem:[%s3141_s2 + $0x190] sm:$0xff]   ;;  %v2522_v29 = vld [vmem:[%s3141_s2 + $0x158] sm:$0xff]   ;;  %v2524_v31 = vld [vmem:[%s3141_s2 + $0x1e0] sm:$0xff]  }
 0x11e   : > { %v890_v17 = vsel %vm843_vm2, %v881_v1, %v889_v7  ;;  %v2519_v28 = vld [vmem:[%s3141_s2 + $0x110] sm:$0xff]   ;;  %v2523_v32 = vld [vmem:[%s3141_s2 + $0x118] sm:$0xff]   ;;  %v2526_v33 = vld [vmem:[%s3141_s2 + $0x160] sm:$0xff]  }
 0x11f   : > { %v2525_v0 = vld [vmem:[%s3141_s2 + $0x1a0] sm:$0xff]   ;;  %v2528_v34 = vld [vmem:[%s3141_s2 + $0x1e8] sm:$0xff]   ;;  %v2533_v47 = vld [vmem:[%s3141_s2 + $0x1b0] sm:$0xff]  }
 0x120   : > { %v736_v37 = vld [vmem:[#allocation2 + $0x28] sm:$0xf]  ;;  %v893_v48 = vld [vmem:[#allocation2 + $0x24] sm:$0xc] }
 0x121   : > { %v2501_v38 = vld [vmem:[#allocation2 + $0x24] sm:$0xff]   ;;  %v2504_v40 = vld [vmem:[#allocation2 + $0x18] sm:$0xff]   ;;  %v740_v10 = vsel %vm738_vm7, 0, %v736_v37 }
 0x122   : > { %v2502_v41 = vld [vmem:[#allocation2 + $0x2c] ss:$0 sps:$4 sm:$0x11]   ;;  %v788_v42 = vshll.u32 %v2501_v38, 16  ;;  %v763_v46 = vshll.u32 %v2504_v40, 16  ;;  %v786_v50 = vshrl.u32 %v2501_v38, 16  ;;  %v2078_v9 = vcombine.low %v739_v13, %v740_v10 }
 0x123   : > { %v2505_v43 = vld [vmem:[#allocation2 + $0x20] ss:$0 sps:$4 sm:$0x11]   ;;  %v793_v45 = vshll.u32 %v2502_v41, 16  ;;  %v2511_v53 = vld [vmem:[#allocation2 + $0x18] sm:$0xfc]  }
 0x124   : > { %v790_v51 = vrot.slane %v788_v42, 1  ;;  %v768_v6 = vshll.u32 %v2505_v43, 16  ;;  %v761_v55 = vshrl.u32 %v2504_v40, 16  ;;  %v765_v16 = vrot.slane %v763_v46, 1  ;;  %v2527_v37 = vld [vmem:[%s3141_s2 + $0x120] sm:$0xff]   ;;  %v2530_v38 = vld [vmem:[%s3141_s2 + $0x168] sm:$0xff]  }
 0x125   : > { %v795_v54 = vrot.slane %v793_v45, 1  ;;  %v2512_v25 = vld [vmem:[#allocation2 + $0x20] ss:$0 sps:$4 sm:$0x77]   ;;  %v924_v56 = vshrl.u32 %v2511_v53, 16  ;;  %v927_v57 = vshll.u32 %v2511_v53, 16 }
 0x126   : > { %v791_v35 = vor.u32 %v790_v51, %v786_v50  ;;  %v770_v24 = vrot.slane %v768_v6, 1  ;;  %v766_v58 = vor.u32 %v765_v16, %v761_v55  ;;  %v932_v60 = vshrl.u32 %v2512_v25, 16  ;;  %v2529_v39 = vld [vmem:[%s3141_s2 + $0x1a8] sm:$0xff]   ;;  %v2532_v41 = vld [vmem:[%s3141_s2 + $0x1f0] sm:$0xff]   ;;  %v2540_v43 = vld [vmem:[#allocation2] sm:$0xfc]  }
 0x127   : > { %v935_v61 = vshll.u32 %v2512_v25, 16  ;;  %v926_v3 = vrot.slane %v924_v56, 2  ;;  %v929_v4 = vrot.slane %v927_v57, 3  ;;  %v895_v40 = vld [vmem:[#allocation2 + $0x2c] sm:$0x3]  ;;  %v2534_v45 = vld [vmem:[%s3141_s2 + $0x170] sm:$0xff]  }
 0x128   : > { %v796_v62 = vsel %vm759_vm10, %v791_v35, %v795_v54  ;;  %v771_v5 = vsel %vm759_vm10, %v766_v58, %v770_v24  ;;  %v934_v11 = vrot.slane %v932_v60, 2  ;;  %v2541_v13 = vld [vmem:[#allocation2 + $0x8] ss:$0 sps:$4 sm:$0x77]   ;;  %v898_v46 = vsel %vm814_vm8, 0, %v895_v40  ;;  %v2536_v51 = vld [vmem:[%s3141_s2 + $0x1f8] sm:$0xff]  }
 0x129   : > { %1631 = vmatmul.mubr.bf16.vlgmr.msra.gmra.mrb[4].mxu1 %v796_v62  ;;  %v937_v12 = vrot.slane %v935_v61, 3  ;;  %1589 = vmatprep.mubr.bf16.mxu0 %v771_v5  ;;  %v930_v18 = vor.u32 %v929_v4, %v926_v3  ;;  %v2531_v8 = vld [vmem:[%s3141_s2 + $0x128] sm:$0xff]   ;;  %v853_v10 = vshrl.u32 %v2541_v13, 16  ;;  %v856_v50 = vshll.u32 %v2541_v13, 16  ;;  %v2538_v16 = vld [vmem:[%s3141_s2 + $0x178] sm:$0xff]   ;;  %v2542_v62 = vld [vmem:[%s3141_s2 + $0x200] sm:$0xff]  }
 0x12a   : > { %2306 = vmatpush3.bf16.msra.mxu1 %v2503_v15  ;;  %1590 = vmatmul.mubr.bf16.vlgmr.msra.gmra.mrb[8].mxu0 %v2078_v9  ;;  %v894_v42 = vld [vmem:[#allocation2 + $0x28] sm:$0xf]  ;;  %v2090_v53 = vcombine.low %v898_v46, %v898_v46  ;;  %v845_v54 = vshrl.u32 %v2540_v43, 16  ;;  %v848_v55 = vshll.u32 %v2540_v43, 16  ;;  %v896_v25 = vsel %vm2896_vm0, 0, %v893_v48  ;;  %v2539_v56 = vld [vmem:[%s3141_s2 + $0x138] sm:$0xff]  }
 0x12b   : > { %2307 = vmatprep.subr.bf16.mxu1 %v2510_v59  ;;  %v938_v19 = vor.u32 %v937_v12, %v934_v11  ;;  %2284 = vmatpush3.bf16.msra.mxu0 %v2507_v63  ;;  %v897_v6 = vsel %vm813_vm1, 0, %v894_v42  ;;  %v855_v15 = vrot.slane %v853_v10, 2  ;;  %v858_v24 = vrot.slane %v856_v50, 3  ;;  %v2543_v1 = vld [vmem:[%s3141_s2 + $0x208] sm:$0xff]   ;;  %v2544_v3 = vld [vmem:[%s3141_s2 + $0x210] sm:$0xff]   ;;  %v2545_v4 = vld [vmem:[%s3141_s2 + $0x218] sm:$0xff]  }
 0x12c   : > { %1671 = vmatprep.mubr.bf16.mxu0 %v890_v17  ;;  %2285 = vmatprep.subr.bf16.mxu0 %v2514_v52  ;;  %v2089_v35 = vcombine.low %v896_v25, %v897_v6  ;;  %v908_v57 = vrot.slane %v2090_v53, 2  ;;  %v847_v58 = vrot.slane %v845_v54, 2  ;;  %v850_v7 = vrot.slane %v848_v55, 3  ;;  %v2546_v5 = vld [vmem:[%s3141_s2 + $0x220] sm:$0xff]   ;;  %v3058_v11 = vpop.f32.mrb[0].mxu1  ;;  %v2547_v12 = vld [vmem:[%s3141_s2 + $0x228] sm:$0xff]  }
 0x12d   : > { %v939_v22 = vsel %vm843_vm2, %v930_v18, %v938_v19  ;;  %v859_v59 = vor.u32 %v858_v24, %v855_v15  ;;  %v2551_v9 = vld [vmem:[#allocation2 + $0x2c] ss:$0 sps:$4 sm:$0x77]   ;;  %v2550_v52 = vld [vmem:[#allocation2 + $0x24] sm:$0xfc]   ;;  %v2558_v13 = vld [vmem:[%s3140_s1 + $0xb0] sm:$0xff]  }
 0x12e   : > { %1712 = vmatprep.mubr.bf16.mxu1 %v939_v22  ;;  %2308 = vmatpush3.bf16.msra.mxu1 %v2513_v14  ;;  %v907_v49 = vrot.slane %v2089_v35, 2  ;;  %v851_v61 = vor.u32 %v850_v7, %v847_v58  ;;  %v2389_v14 = vpop.f32.mrb[1].mxu1  ;;  %v962_v18 = vshrl.u32 %v2551_v9, 16  ;;  %v965_v19 = vshll.u32 %v2551_v9, 16  ;;  %v2557_v40 = vld [vmem:[%s3140_s1 + $0xa8] sm:$0xff]  }
 0x12f   : > { %2309 = vmatprep.subr.bf16.mxu1 %v2516_v20  ;;  %2286 = vmatpush3.bf16.msra.mxu0 %v2515_v21  ;;  %v3064_v17 = vpop.f32.mrb[2].mxu1  ;;  %v2548_v21 = vld [vmem:[%s3141_s2 + $0x230] sm:$0xff]   ;;  %v954_v22 = vshrl.u32 %v2550_v52, 16 }
 0x130   : > { %2287 = vmatprep.subr.bf16.mxu0 %v2518_v23  ;;  %v909_v60 = vsel %vm826_vm9, %v907_v49, %v908_v57  ;;  %v860_v63 = vsel %vm843_vm2, %v851_v61, %v859_v59  ;;  %v2390_v20 = vpop.f32.mrb[3].mxu1  ;;  %v957_v23 = vshll.u32 %v2550_v52, 16 }
 0x132   : > { %2310 = vmatpush3.bf16.msra.mxu1 %v2517_v26  ;;  %v964_v26 = vrot.slane %v962_v18, 2 }
 0x133   : > { %2311 = vmatprep.subr.bf16.mxu1 %v2520_v27  ;;  %2288 = vmatpush3.bf16.msra.mxu0 %v2519_v28  ;;  %v967_v27 = vrot.slane %v965_v19, 3  ;;  %v2549_v28 = vld [vmem:[%s3141_s2 + $0x238] sm:$0xff]  }
 0x134   : > { %2289 = vmatprep.subr.bf16.mxu0 %v2522_v29  ;;  %v956_v29 = vrot.slane %v954_v22, 2 }
 0x136   : > { %2312 = vmatpush3.bf16.msra.mxu1 %v2521_v30  ;;  %v959_v30 = vrot.slane %v957_v23, 3  ;;  %v2076_v23 = vld [vmem:[%s3142_s3 + $0x2] ss:$0 sm:$0xff] }
 0x137   : > { %2313 = vmatprep.subr.bf16.mxu1 %v2524_v31  ;;  %2290 = vmatpush3.bf16.msra.mxu0 %v2523_v32  ;;  %v968_v31 = vor.u32 %v967_v27, %v964_v26  ;;  %v2193_v26 = vld [vmem:[%s3142_s3 + $0x6] ss:$0 sm:$0xff]  ;;  %v726_v27 = vmul.f32 %v2076_v23, %v3058_v11 }
 0x138   : > { %2291 = vmatprep.subr.bf16.mxu0 %v2526_v33  ;;  %v960_v32 = vor.u32 %v959_v30, %v956_v29  ;;  %v2194_v30 = vld [vmem:[%s3142_s3 + $0x7] ss:$0 sm:$0xff] }
 0x13a   : > { %2314 = vmatpush3.bf16.msra.mxu1 %v2525_v0  ;;  %v969_v33 = vsel %vm843_vm2, %v960_v32, %v968_v31  ;;  %v2552_v0 = vld [vmem:[%s3140_s1 + $0x80] sm:$0xff]   ;;  %v727_v31 = vmul.f32 %v2076_v23, %v3064_v17 }
 0x13b   : > { %2315 = vmatprep.subr.bf16.mxu1 %v2528_v34  ;;  %2292 = vmatpush3.bf16.msra.mxu0 %v2527_v37  ;;  %v2553_v34 = vld [vmem:[%s3140_s1 + $0x88] sm:$0xff]   ;;  %v2554_v37 = vld [vmem:[%s3140_s1 + $0x90] sm:$0xff]  }
 0x13c   : > { %2293 = vmatprep.subr.bf16.mxu0 %v2530_v38  ;;  %v2555_v38 = vld [vmem:[%s3140_s1 + $0x98] sm:$0xff]  }
 0x13e   : > { %2316 = vmatpush3.bf16.msra.mxu1 %v2529_v39  ;;  %v2556_v39 = vld [vmem:[%s3140_s1 + $0xa0] sm:$0xff]  }
 0x13f   : > { %2317 = vmatprep.subr.bf16.mxu1 %v2532_v41  ;;  %2294 = vmatpush3.bf16.msra.mxu0 %v2531_v8  ;;  %v2559_v41 = vld [vmem:[%s3140_s1 + $0xb8] sm:$0xff]  }
 0x140   : > { %2295 = vmatprep.subr.bf16.mxu0 %v2534_v45 }
 0x142   : > { %2318 = vmatpush3.bf16.msra.mxu1 %v2533_v47 }
 0x143   : > { %2319 = vmatprep.subr.bf16.mxu1 %v2536_v51  ;;  %2296 = vmatpush3.bf16.msra.mxu0 %v2535_v36 }
 0x144   : > { %2297 = vmatprep.subr.bf16.mxu0 %v2538_v16 }
 0x146   : > { %2320 = vmatpush3.bf16.msra.mxu1 %v2537_v44 }
 0x147   : > { %2411 = vmatprep.subr.bf16.mxu1 %v2569_v2  ;;  %2298 = vmatpush3.bf16.msra.mxu0 %v2539_v56 }
 0x148   : > { %2391 = vmatprep.subr.bf16.mxu0 %v2569_v2 }
 0x149   : > { %1713 = vmatmul.mubr.bf16.vlgmr.msra.gmra.mrb[8].mxu1 %v909_v60 }
 0x14a   : > { %2427 = vmatprep.mubr.msk.bf16.mxu1 %vm2570_vm3, %v2569_v2  ;;  %1672 = vmatmul.mubr.bf16.vlgmr.msra.gmra.mrb[12].mxu0 %v860_v63  ;;  %v2167_v63 = vld [vmem:[%s3142_s3 + $0x4] ss:$0 sm:$0xff] }
 0x14b   : > { %2392 = vmatpush3.bf16.msra.mxu0 %v2542_v62  ;;  %2407 = vmatprep.mubr.msk.bf16.mxu0 %vm2570_vm3, %v2569_v2 }
 0x14c   : > { %2393 = vmatprep.subr.bf16.mxu0 %v2569_v2  ;;  %2412 = vmatpush3.bf16.msra.mxu1 %v2552_v0 }
 0x14d   : > { %2413 = vmatprep.subr.bf16.mxu1 %v2569_v2 }
 0x14f   : > { %2394 = vmatpush3.bf16.msra.mxu0 %v2543_v1 }
 0x150   : > { %2395 = vmatprep.subr.bf16.mxu0 %v2569_v2  ;;  %2414 = vmatpush3.bf16.msra.mxu1 %v2553_v34 }
 0x151   : > { %2415 = vmatprep.subr.bf16.mxu1 %v2569_v2 }
 0x153   : > { %2396 = vmatpush3.bf16.msra.mxu0 %v2544_v3 }
 0x154   : > { %2397 = vmatprep.subr.bf16.mxu0 %v2569_v2  ;;  %2416 = vmatpush3.bf16.msra.mxu1 %v2554_v37 }
 0x155   : > { %2417 = vmatprep.subr.bf16.mxu1 %v2569_v2 }
 0x157   : > { %2398 = vmatpush3.bf16.msra.mxu0 %v2545_v4  ;;  %v2168_v4 = vld [vmem:[%s3142_s3 + $0x5] ss:$0 sm:$0xff] }
 0x158   : > { %2399 = vmatprep.subr.bf16.mxu0 %v2569_v2  ;;  %2418 = vmatpush3.bf16.msra.mxu1 %v2555_v38 }
 0x159   : > { %2419 = vmatprep.subr.bf16.mxu1 %v2569_v2 }
 0x15b   : > { %2400 = vmatpush3.bf16.msra.mxu0 %v2546_v5 }
 0x15c   : > { %2401 = vmatprep.subr.bf16.mxu0 %v2569_v2  ;;  %2420 = vmatpush3.bf16.msra.mxu1 %v2556_v39 }
 0x15d   : > { %2421 = vmatprep.subr.bf16.mxu1 %v2569_v2 }
 0x15f   : > { %2402 = vmatpush3.bf16.msra.mxu0 %v2547_v12 }
 0x160   : > { %2403 = vmatprep.subr.bf16.mxu0 %v2569_v2  ;;  %2422 = vmatpush3.bf16.msra.mxu1 %v2557_v40 }
 0x161   : > { %2423 = vmatprep.subr.bf16.mxu1 %v2569_v2 }
 0x163   : > { %2404 = vmatpush3.bf16.msra.mxu0 %v2548_v21 }
 0x164   : > { %2405 = vmatprep.subr.bf16.mxu0 %v2569_v2  ;;  %2424 = vmatpush3.bf16.msra.mxu1 %v2558_v13 }
 0x165   : > { %2425 = vmatprep.subr.bf16.mxu1 %v2569_v2 }
 0x167   : > { %2406 = vmatpush3.bf16.msra.mxu0 %v2549_v28  ;;  %v2077_v28 = vld [vmem:[%s3142_s3 + $0x3] ss:$0 sm:$0xff] }
 0x168   : > { %2431 = vmatprep.subr.bf16.mxu0 %v2569_v2  ;;  %2426 = vmatpush3.bf16.msra.mxu1 %v2559_v41  ;;  %v733_v34 = vadd.f32 %v2077_v28, %v726_v27  ;;  %v734_v11 = vadd.f32 %v2077_v28, %v727_v31 }
 0x16a   : > { %2408 = vmatmul.mubr.bf16.vlgmr.msra.gmra.mrb[16].mxu0 %v969_v33 }
 0x16b   : > { %2433 = vmatprep.mubr.msk.bf16.mxu0 %vm2570_vm3, %v2569_v2  ;;  %vm1911_vm3 = vcmask 130048  }
 0x1fc   : > { %v2277_v8 = vpop.f32.mrb[4].mxu1 }
 0x1fd   : > { %v2278_v42 = vpop.f32.mrb[5].mxu1  ;;  %v2255_v45 = vpop.f32.mrb[8].mxu0 }
 0x1fe   : > { %v2279_v43 = vadd.f32 %v2278_v42, %v2277_v8  ;;  %v2280_v46 = vpop.f32.mrb[6].mxu1  ;;  %v2256_v47 = vpop.f32.mrb[9].mxu0 }
 0x1ff   : > { %v2281_v48 = vpop.f32.mrb[7].mxu1  ;;  %v2257_v10 = vadd.f32 %v2256_v47, %v2255_v45  ;;  %v2258_v51 = vpop.f32.mrb[10].mxu0  ;;  %v2560_v45 = vld [vmem:[%s3143_s4] sm:$0xff]  }
 0x200   : > { %v2282_v50 = vadd.f32 %v2281_v48, %v2280_v46  ;;  %v2259_v6 = vpop.f32.mrb[11].mxu0 }
 0x201   : > { %v1633_v36 = vadd.f32 %v2279_v43, %v2257_v10  ;;  %v2260_v53 = vadd.f32 %v2259_v6, %v2258_v51 }
 0x203   : > { %v1636_v54 = vadd.f32 %v2282_v50, %v2260_v53 }
 0x21c   : > { %v2321_v55 = vpop.f32.mrb[8].mxu1 }
 0x21d   : > { %v2322_v16 = vpop.f32.mrb[9].mxu1  ;;  %v2299_v44 = vpop.f32.mrb[12].mxu0 }
 0x21e   : > { %v2323_v25 = vadd.f32 %v2322_v16, %v2321_v55  ;;  %v2324_v2 = vpop.f32.mrb[10].mxu1  ;;  %v2300_v35 = vpop.f32.mrb[13].mxu0 }
 0x21f   : > { %v2325_v15 = vpop.f32.mrb[11].mxu1  ;;  %v2301_v24 = vadd.f32 %v2300_v35, %v2299_v44  ;;  %v2302_v57 = vpop.f32.mrb[14].mxu0 }
 0x220   : > { %v2326_v56 = vadd.f32 %v2325_v15, %v2324_v2  ;;  %v2303_v58 = vpop.f32.mrb[15].mxu0 }
 0x221   : > { %v1674_v7 = vadd.f32 %v2301_v24, %v1633_v36  ;;  %v2304_v49 = vadd.f32 %v2303_v58, %v2302_v57 }
 0x223   : > { %v1677_v59 = vadd.f32 %v2304_v49, %v1636_v54  ;;  %v1715_v60 = vadd.f32 %v2323_v25, %v1674_v7 }
 0x225   : > { %v1718_v61 = vadd.f32 %v2326_v56, %v1677_v59 }
 0x23d   : > { %v1755_v62 = vpop.f32.mrb[16].mxu0 }
 0x23e   : > { %v1756_v1 = vadd.f32 %v1755_v62, %v1715_v60  ;;  %v2409_v3 = vpop.f32.mrb[17].mxu0 }
 0x23f   : > { %v1758_v5 = vpop.f32.mrb[18].mxu0 }
 0x240   : > { %v1767_v9 = vmul.f32 %v2167_v63, %v1756_v1  ;;  %v1759_v12 = vadd.f32 %v1758_v5, %v1718_v61  ;;  %v2410_v52 = vpop.f32.mrb[19].mxu0 }
 0x242   : > { %v1774_v14 = vadd.f32 %v2168_v4, %v1767_v9  ;;  %v1768_v18 = vmul.f32 %v2167_v63, %v1759_v12 }
 0x244   : > { %v1775_v19 = vadd.f32 %v2168_v4, %v1768_v18  ;;  %v1776_v20 = vmax.f32 %v1774_v14, 0.0 }
 0x246   : > { %v1777_v21 = vmax.f32 %v1775_v19, 0.0 }
 0x248   : > { %v1778_v22 = vpack.c.bf16 %v1777_v21, %v1776_v20 }
 0x24a   : > { %2428 = vmatmul.mubr.bf16.vlgmr.msra.gmra.mrb[12].mxu1 %v1778_v22 }
 0x31d   : > { %v1878_v29 = vpop.f32.mrb[12].mxu1 }
 0x31e   : > { %v1890_v32 = vmul.f32 %v2193_v26, %v1878_v29  ;;  %v2429_v33 = vpop.f32.mrb[13].mxu1 }
 0x31f   : > { %v1881_v0 = vpop.f32.mrb[14].mxu1 }
 0x320   : > { %v1897_v37 = vadd.f32 %v2194_v30, %v1890_v32  ;;  %v1891_v38 = vmul.f32 %v2193_v26, %v1881_v0  ;;  %v2430_v39 = vpop.f32.mrb[15].mxu1 }
 0x322   : > { %v1899_v40 = vadd.f32 %v1897_v37, %v733_v34  ;;  %v1898_v13 = vadd.f32 %v2194_v30, %v1891_v38 }
 0x324   : > { %v1900_v41 = vadd.f32 %v1898_v13, %v734_v11  ;;  %v1901_v8 = vmax.f32 %v1899_v40, 0.0 }
 0x326   : > { %v1902_v42 = vmax.f32 %v1900_v41, 0.0 }
 0x328   : > { %v1905_v43 = vpack.c.bf16 %v1902_v42, %v1901_v8 }
 0x32a   : > { %2432 = vmatpush3.bf16.msra.mxu0 %v1905_v43 }
 0x32d   : > { %2434 = vmatmul.mubr.msk.bf16.vlgmr.msra.gmra.mrb[20].mxu0 %vm1911_vm3, %v2560_v45 }
 0x400   : > { %v1949_v17 = vpop.f32.mrb[20].mxu0 }
 0x401   : > { %v2435_v46 = vpop.f32.mrb[21].mxu0 }
 0x402   : > { %v1952_v47 = vpop.f32.mrb[22].mxu0 }
 0x403   : > { %v2216_v48 = vpack.c.bf16 %v1952_v47, %v1949_v17  ;;  %v2436_v10 = vpop.f32.mrb[23].mxu0 }
 0x405   : > { %2217 = vst [vmem:[%s224_s6] sm:$0xff] %v2216_v48  }
 0x406 PF: > { %s15_s18 = sadd.s32 1, %s2567_s18  }
 0x407   : > { %p12_p4 = scmp.ge.s32.totalorder %s15_s18, 4  }
 0x409   :  { %14 = sbr.rel (!%p12_p4) target bundleno = 1 (0x1), region = 75 }

// kernel: regnet_forward.3
= control target key start
LH: loop header
LB: loop body
LE: loop exit
PB: predicated region body
PF: predicated region fallthrough
CT: control target
= control target key end

     0   :  { %s3061_s15 = smov 0   ;;  %s3801_s0 = inlined_call_operand.vmem [shape: bf16[2,256,128], index: 0, kind: input, shape index: {}]   ;;  %s3802_s1 = inlined_call_operand.vmem [shape: bf16[1152,128], index: 1, kind: input, shape index: {}]   ;;  %s3803_s2 = inlined_call_operand.vmem [shape: f32[2,128], index: 2, kind: input, shape index: {}]   ;;  %s3804_s3 = inlined_call_operand.vmem [shape: bf16[64,64], index: 3, kind: input, shape index: {}]   ;;  %s3805_s4 = inlined_call_operand.vmem [shape: bf16[2,64,128], index: 4, kind: output, shape index: {}]  }
   0x1 LB: > { %s2516_s16 = sadd.s32 4294967295, %s3033_s15   ;;  %p2520_p0 = scmp.ge.s32.totalorder %s3033_s15, 1  ;;  %s3033_s15 = sphi %s3061_s15, %s14_s15  }
   0x2   : > { %p162_p1 = scmp.lt.s32.totalorder %s3033_s15, 3 }
   0x4   : > { %p163_p2 = pnand %p2520_p0, %p162_p1 }
   0x5   : > { %v2921_v0 = vld [vmem:[%s3802_s1 + $0x40] sm:$0xff] (!%p163_p2)   ;;  %v3035_v3 = vmov (!%p163_p2), 0   ;;  %v2925_v5 = vld [vmem:[%s3802_s1 + $0x48] sm:$0xff] (!%p163_p2)   ;;  %v2929_v9 = vld [vmem:[%s3802_s1 + $0x50] sm:$0xff] (!%p163_p2)   ;;  %p188_p3 = scmp.lt.s32.totalorder (!%p163_p2), %s2516_s16, 1  ;;  %v218_v18 = vlaneseq (!%p163_p2)  ;;  %vm200_vm0 = vcmask (!%p163_p2), 1040384  }
   0x6   : > { %166 = sbr.rel (%p163_p2) target bundleno = 605 (0x25d), region = 36  ;;  %v2922_v1 = vld [vmem:[%s3802_s1 + $0xc0] sm:$0xff] (!%p163_p2)   ;;  %2692 = vmatprep.subr.bf16.mxu0 (!%p163_p2), %v2921_v0  ;;  %210 = vst [vmem:[#allocation2 + $0x50] sm:$0xf] (!%p163_p2), %v3035_v3  ;;  %214 = vst [vmem:[#allocation2 + $0x78] sm:$0xf] (!%p163_p2), %v3035_v3 }
   0x7   : > { %v2923_v2 = vld [vmem:[%s3802_s1] sm:$0xff] (!%p163_p2)   ;;  %2732 = vmatprep.subr.bf16.mxu1 (!%p163_p2), %v2922_v1  ;;  %v2926_v6 = vld [vmem:[%s3802_s1 + $0xc8] sm:$0xff] (!%p163_p2)   ;;  %v2930_v10 = vld [vmem:[%s3802_s1 + $0xd0] sm:$0xff] (!%p163_p2)   ;;  %v3138_v23 = vshrl.u32 (!%p163_p2), %v218_v18, 7  ;;  %vm421_vm1 = vcmask (!%p163_p2), 1043456  }
   0x8   : > { %v2924_v4 = vld [vmem:[%s3802_s1 + $0x80] sm:$0xff] (!%p163_p2)   ;;  %2693 = vmatpush3.bf16.msra.mxu0 (!%p163_p2), %v2923_v2  ;;  %v2927_v7 = vld [vmem:[%s3802_s1 + $0x8] sm:$0xff] (!%p163_p2)   ;;  %v2931_v11 = vld [vmem:[%s3802_s1 + $0x10] sm:$0xff] (!%p163_p2)   ;;  %vm201_vm2 = vsmask.f32 (!%p163_p2), 256 }
   0x9   : > { %2733 = vmatpush3.bf16.msra.mxu1 (!%p163_p2), %v2924_v4  ;;  %2694 = vmatprep.subr.bf16.mxu0 (!%p163_p2), %v2925_v5  ;;  %v2928_v8 = vld [vmem:[%s3802_s1 + $0x88] sm:$0xff] (!%p163_p2)   ;;  %v2932_v12 = vld [vmem:[%s3802_s1 + $0x90] sm:$0xff] (!%p163_p2)   ;;  %v2933_v13 = vld [vmem:[%s3802_s1 + $0x58] sm:$0xff] (!%p163_p2)   ;;  %v3154_v28 = vadd.s32 (!%p163_p2), 8, %v3138_v23  ;;  %v231_v30 = vand.u32 (!%p163_p2), 7, %v3138_v23  ;;  %v3164_v32 = vadd.s32 (!%p163_p2), 16, %v3138_v23 }
   0xa   : > { %2734 = vmatprep.subr.bf16.mxu1 (!%p163_p2), %v2926_v6  ;;  %v2934_v14 = vld [vmem:[%s3802_s1 + $0xd8] sm:$0xff] (!%p163_p2)   ;;  %v2937_v17 = vld [vmem:[%s3802_s1 + $0x60] sm:$0xff] (!%p163_p2)   ;;  %v2941_v22 = vld [vmem:[%s3802_s1 + $0x68] sm:$0xff] (!%p163_p2)   ;;  %v3170_v34 = vadd.s32 (!%p163_p2), 24, %v3138_v23  ;;  %v3176_v36 = vadd.s32 (!%p163_p2), 32, %v3138_v23  ;;  %v3196_v44 = vadd.s32 (!%p163_p2), 40, %v3138_v23 }
   0xb   : > { %v2935_v15 = vld [vmem:[%s3802_s1 + $0x18] sm:$0xff] (!%p163_p2)   ;;  %v2938_v19 = vld [vmem:[%s3802_s1 + $0xe0] sm:$0xff] (!%p163_p2)   ;;  %v2942_v24 = vld [vmem:[%s3802_s1 + $0xe8] sm:$0xff] (!%p163_p2)   ;;  %v238_v38 = vand.u32 (!%p163_p2), 7, %v3154_v28  ;;  %v245_v40 = vand.u32 (!%p163_p2), 7, %v3164_v32  ;;  %vm3210_vm5 = vcmp.eq.s32.totalorder (!%p163_p2), %v231_v30, 0 }
   0xc   : > { %2695 = vmatpush3.bf16.msra.mxu0 (!%p163_p2), %v2927_v7  ;;  %v2936_v16 = vld [vmem:[%s3802_s1 + $0x98] sm:$0xff] (!%p163_p2)   ;;  %v2939_v20 = vld [vmem:[%s3802_s1 + $0x20] sm:$0xff] (!%p163_p2)   ;;  %v2943_v25 = vld [vmem:[%s3802_s1 + $0x28] sm:$0xff] (!%p163_p2)   ;;  %v252_v42 = vand.u32 (!%p163_p2), 7, %v3170_v34  ;;  %v259_v45 = vand.u32 (!%p163_p2), 7, %v3176_v36 }
   0xd   : > { %2735 = vmatpush3.bf16.msra.mxu1 %v2928_v8  ;;  %2696 = vmatprep.subr.bf16.mxu0 %v2929_v9  ;;  %v2940_v21 = vld [vmem:[%s3802_s1 + $0xa0] sm:$0xff]   ;;  %s3845_s16 = smov (!%p188_p3, %s2516_s16), 1  ;;  %v2944_v26 = vld [vmem:[%s3802_s1 + $0xa8] sm:$0xff]   ;;  %v2945_v27 = vld [vmem:[%s3802_s1 + $0x70] sm:$0xff]   ;;  %vm339_vm4 = vsmask.f32 4368 }
   0xe   : > { %2736 = vmatprep.subr.bf16.mxu1 %v2930_v10  ;;  %s2659_s17 = sshll.u32 %s3845_s16, 7  ;;  %v2946_v29 = vld [vmem:[%s3802_s1 + $0xf0] sm:$0xff]   ;;  %v2949_v35 = vld [vmem:[%s3802_s1 + $0x78] sm:$0xff]   ;;  %vm3201_vm3 = vmand %vm200_vm0, %vm201_vm2  ;;  %vm422_vm6 = vsmask.f32 7938  ;;  %vm3247_vm9 = vcmp.eq.s32.totalorder %v238_v38, 0 }
   0xf   : > { %v2947_v31 = vld [vmem:[%s3802_s1 + $0x30] sm:$0xff]   ;;  %v2950_v37 = vld [vmem:[%s3802_s1 + $0xf8] sm:$0xff]   ;;  %s3188_s8 = scalar_lea.vmem %s3801_s0, %s2659_s17  ;;  %v2957_v58 = vld [vmem:[%s3802_s1 + $0x140] sm:$0xff]   ;;  %vm829_vm11 = vsmask.f32 7424  ;;  %vm3301_vm13 = vcmp.eq.s32.totalorder %v245_v40, 0 }
  0x10   : > { %2697 = vmatpush3.bf16.msra.mxu0 %v2931_v11  ;;  %v2948_v33 = vld [vmem:[%s3802_s1 + $0xb0] sm:$0xff]   ;;  %v2951_v39 = vld [vmem:[%s3802_s1 + $0x38] sm:$0xff]   ;;  %v539_v47 = vld [vmem:[%s3188_s8 + $0x40] sm:$0xf]  ;;  %vm3309_vm14 = vcmp.eq.s32.totalorder %v252_v42, 0  ;;  %s2660_s9 = sshll.u32 %s3845_s16, 5 }
  0x11   : > { %2737 = vmatpush3.bf16.msra.mxu1 %v2932_v12  ;;  %2698 = vmatprep.subr.bf16.mxu0 %v2933_v13  ;;  %v2952_v41 = vld [vmem:[%s3802_s1 + $0xb8] sm:$0xff]   ;;  %v211_v43 = vld [vmem:[#allocation2 + $0x54] sm:$0x1]  ;;  %v540_v48 = vld [vmem:[%s3188_s8 + $0x44] sm:$0xf]  ;;  %v548_v51 = vshrl.u32 %v539_v47, 16  ;;  %s197_s12 = scalar_lea.vmem %s3805_s4, %s2660_s9 }
  0x12   : > { %2738 = vmatprep.subr.bf16.mxu1 %v2934_v14  ;;  %v212_v49 = vsel %vm3201_vm3, 0, %v211_v43  ;;  %v541_v50 = vld [vmem:[%s3188_s8 + $0x48] sm:$0xf]  ;;  %v551_v52 = vshll.u32 %v539_v47, 16  ;;  %v556_v53 = vshrl.u32 %v540_v48, 16  ;;  %v559_v54 = vshll.u32 %v540_v48, 16  ;;  %vm3219_vm7 = vmor %vm201_vm2, %vm339_vm4 }
  0x13   : > { %213 = vst [vmem:[#allocation2 + $0x54] sm:$0x1] %v212_v49  ;;  %v565_v55 = vshrl.u32 %v541_v50, 16  ;;  %v568_v56 = vshll.u32 %v541_v50, 16  ;;  %v550_v59 = vrot.slane %v548_v51, 7  ;;  %vm3236_vm8 = vmand %vm421_vm1, %vm422_vm6  ;;  %v3259_v51 = vadd.s32 48, %v3138_v23 }
  0x14   : > { %2699 = vmatpush3.bf16.msra.mxu0 %v2935_v15  ;;  %v558_v60 = vrot.slane %v556_v53, 7  ;;  %v207_v61 = vld [vmem:[#allocation2 + $0x2c] sm:$0x1]  ;;  %v215_v1 = vld [vmem:[#allocation2 + $0x7c] sm:$0x1]  ;;  %vm3268_vm10 = vmpackc.low %vm3210_vm5, %vm3210_vm5  ;;  %vm3425_vm1 = vcmp.eq.s32.totalorder %v259_v45, 0 }
  0x15   : > { %2739 = vmatpush3.bf16.msra.mxu1 %v2936_v16  ;;  %2700 = vmatprep.subr.bf16.mxu0 %v2937_v17  ;;  %v3223_v63 = vrot.slane %v565_v55, 7  ;;  %v208_v0 = vsel %vm3201_vm3, 0, %v207_v61  ;;  %v437_v2 = vld [vmem:[%s3188_s8 + $0x20] sm:$0xf]  ;;  %v553_v3 = vor.u32 %v551_v52, %v550_v59  ;;  %v554_v4 = vrot.slane %v550_v59, 4  ;;  %vm3290_vm12 = vmpackc.low %vm3247_vm9, %vm3247_vm9 }
  0x16   : > { %2740 = vmatprep.subr.bf16.mxu1 %v2938_v19  ;;  %v561_v5 = vor.u32 %v559_v54, %v558_v60  ;;  %v563_v6 = vrot.slane %v558_v60, 4  ;;  %209 = vst [vmem:[#allocation2 + $0x2c] sm:$0x1] %v208_v0  ;;  %v438_v7 = vld [vmem:[%s3188_s8 + $0x24] sm:$0xf]  ;;  %v216_v10 = vsel %vm3201_vm3, 0, %v215_v1  ;;  %vm3361_vm15 = vmpackc.low %vm3301_vm13, %vm3301_vm13 }
  0x17   : > { %v641_v8 = vld [vmem:[%s3188_s8 + $0x60] sm:$0xf]  ;;  %v570_v9 = vor.u32 %v568_v56, %v3223_v63  ;;  %v446_v11 = vshrl.u32 %v437_v2, 16  ;;  %v449_v12 = vshll.u32 %v437_v2, 16  ;;  %v642_v13 = vld [vmem:[%s3188_s8 + $0x64] sm:$0xf]  ;;  %vm3378_vm0 = vmpackc.low %vm3309_vm14, %vm3309_vm14 }
  0x18   : > { %2701 = vmatpush3.bf16.msra.mxu0 %v2939_v20  ;;  %v562_v15 = vsel %vm3219_vm7, %v554_v4, %v561_v5  ;;  %217 = vst [vmem:[#allocation2 + $0x7c] sm:$0x1] %v216_v10  ;;  %v454_v16 = vshrl.u32 %v438_v7, 16  ;;  %v457_v17 = vshll.u32 %v438_v7, 16  ;;  %v650_v18 = vshrl.u32 %v641_v8, 16  ;;  %v2959_v19 = vld [vmem:[%s3802_s1 + $0x1c0] sm:$0xff]   ;;  %vm3481_vm4 = vmpackc.low %vm3425_vm1, %vm3425_vm1 }
  0x19   : > { %2741 = vmatpush3.bf16.msra.mxu1 %v2940_v21  ;;  %2702 = vmatprep.subr.bf16.mxu0 %v2941_v22  ;;  %v571_v20 = vsel %vm3219_vm7, %v563_v6, %v570_v9  ;;  %631 = vst [vmem:[#allocation2 + $0x58] sm:$0xf] %v562_v15  ;;  %v448_v22 = vrot.slane %v446_v11, 7  ;;  %v661_v30 = vshll.u32 %v642_v13, 16  ;;  %v745_v60 = vld [vmem:[#allocation2 + $0x78] sm:$0xf] }
  0x1a   : > { %2742 = vmatprep.subr.bf16.mxu1 %v2942_v24  ;;  %v653_v24 = vshll.u32 %v641_v8, 16  ;;  %632 = vst [vmem:[#allocation2 + $0x5c] sm:$0xf] %v571_v20  ;;  %v3252_v28 = vrot.slane %v454_v16, 7  ;;  %v3282_v1 = vadd.s32 56, %v3138_v23  ;;  %v761_v6 = vsel %vm3268_vm10, 0, %v745_v60 }
  0x1b   : > { %v542_v23 = vld [vmem:[%s3188_s8 + $0x4c] sm:$0xf]  ;;  %v543_v7 = vld [vmem:[%s3188_s8 + $0x50] sm:$0xf]  ;;  %v572_v8 = vrot.slane %v3223_v63, 4  ;;  %v2960_v5 = vld [vmem:[%s3802_s1 + $0x180] sm:$0xff]  }
  0x1c   : > { %2703 = vmatpush3.bf16.msra.mxu0 %v2943_v25  ;;  %v658_v25 = vshrl.u32 %v642_v13, 16  ;;  %v574_v13 = vshrl.u32 %v542_v23, 16  ;;  %v461_v60 = vrot.slane %v3252_v28, 4  ;;  %v2967_v9 = vld [vmem:[%s3802_s1 + $0x150] sm:$0xff]  }
  0x1d   : > { %2743 = vmatpush3.bf16.msra.mxu1 %v2944_v26  ;;  %2704 = vmatprep.subr.bf16.mxu0 %v2945_v27  ;;  %v643_v26 = vld [vmem:[%s3188_s8 + $0x68] sm:$0xf]  ;;  %v628_v27 = vld [vmem:[#allocation2 + $0x54] sm:$0xf]  ;;  %v526_v48 = vld [vmem:[#allocation2 + $0x2c] sm:$0xf] }
  0x1e   : > { %2744 = vmatprep.subr.bf16.mxu1 %v2946_v29  ;;  %v652_v29 = vrot.slane %v650_v18, 7  ;;  %v660_v38 = vrot.slane %v658_v25, 7  ;;  %v667_v47 = vshrl.u32 %v643_v26, 16  ;;  %v670_v50 = vshll.u32 %v643_v26, 16  ;;  %v336_v14 = vld [vmem:[%s3188_s8 + $0x14] sm:$0xf] }
  0x1f   : > { %v730_v59 = vld [vmem:[#allocation2 + $0x7c] sm:$0xf]  ;;  %v583_v18 = vshrl.u32 %v543_v7, 16  ;;  %v576_v21 = vrot.slane %v574_v13, 7  ;;  %v645_v13 = vld [vmem:[%s3188_s8 + $0x70] sm:$0xf] }
  0x20   : > { %2705 = vmatpush3.bf16.msra.mxu0 %v2947_v31  ;;  %v266_v31 = vand.u32 7, %v3196_v44  ;;  %v656_v43 = vrot.slane %v652_v29, 4  ;;  %v663_v49 = vor.u32 %v661_v30, %v660_v38  ;;  %v665_v55 = vrot.slane %v660_v38, 4 }
  0x21   : > { %2745 = vmatpush3.bf16.msra.mxu1 %v2948_v33  ;;  %2706 = vmatprep.subr.bf16.mxu0 %v2949_v35  ;;  %v629_v33 = vsel %vm3236_vm8, %v553_v3, %v628_v27  ;;  %v451_v35 = vor.u32 %v449_v12, %v448_v22  ;;  %v3272_v56 = vrot.slane %v667_v47, 7  ;;  %v3279_v0 = vld [vmem:[#allocation2 + $0x58] sm:$0xff]   ;;  %v2958_v27 = vld [vmem:[%s3802_s1 + $0x100] sm:$0xff]   ;;  %v2961_v47 = vld [vmem:[%s3802_s1 + $0x148] sm:$0xff]   ;;  %v688_v63 = vshll.u32 %v645_v13, 16 }
  0x22   : > { %2746 = vmatprep.subr.bf16.mxu1 %v2950_v37  ;;  %v452_v37 = vrot.slane %v448_v22, 4  ;;  %630 = vst [vmem:[#allocation2 + $0x54] sm:$0xf] %v629_v33  ;;  %v838_v4 = vshll.u32 %v3279_v0, 16  ;;  %v439_v22 = vld [vmem:[%s3188_s8 + $0x28] sm:$0xf] }
  0x23   : > { %v527_v53 = vsel %vm3236_vm8, %v451_v35, %v526_v48  ;;  %v672_v61 = vor.u32 %v670_v50, %v3272_v56  ;;  %v581_v50 = vrot.slane %v576_v21, 4  ;;  %vm3433_vm2 = vcmp.eq.s32.totalorder %v266_v31, 0  ;;  %v442_v31 = vld [vmem:[%s3188_s8 + $0x34] sm:$0xf] }
  0x24   : > { %2707 = vmatpush3.bf16.msra.mxu0 %v2951_v39  ;;  %v459_v39 = vor.u32 %v457_v17, %v3252_v28  ;;  %528 = vst [vmem:[#allocation2 + $0x2c] sm:$0xf] %v527_v53  ;;  %v3305_v12 = vrot.slane %v838_v4, 1  ;;  %v577_v17 = vshll.u32 %v542_v23, 16  ;;  %v440_v53 = vld [vmem:[%s3188_s8 + $0x2c] sm:$0xf]  ;;  %vm3493_vm5 = vmpackc.low %vm3433_vm2, %vm3433_vm2 }
  0x25   : > { %2747 = vmatpush3.bf16.msra.mxu1 %v2952_v41  ;;  %2772 = vmatprep.subr.bf16.mxu0 %v2957_v58  ;;  %v655_v41 = vor.u32 %v653_v24, %v652_v29  ;;  %v664_v58 = vsel %vm3219_vm7, %v656_v43, %v663_v49  ;;  %v673_v2 = vsel %vm3219_vm7, %v665_v55, %v672_v61  ;;  %v472_v61 = vshrl.u32 %v440_v53, 16  ;;  %v644_v28 = vld [vmem:[%s3188_s8 + $0x6c] sm:$0xf] }
  0x26   : > { %2812 = vmatprep.subr.bf16.mxu1 %v2959_v19  ;;  %v460_v52 = vsel %vm3219_vm7, %v452_v37, %v459_v39  ;;  %733 = vst [vmem:[#allocation2 + $0x80] sm:$0xf] %v664_v58  ;;  %734 = vst [vmem:[#allocation2 + $0x84] sm:$0xf] %v673_v2  ;;  %v579_v35 = vor.u32 %v577_v17, %v576_v21  ;;  %v586_v58 = vshll.u32 %v543_v7, 16  ;;  %v475_v2 = vshll.u32 %v440_v53, 16 }
  0x27   : > { %529 = vst [vmem:[#allocation2 + $0x30] sm:$0xf] %v460_v52  ;;  %v731_v57 = vsel %vm3236_vm8, %v655_v41, %v730_v59  ;;  %v3338_v52 = vrot.slane %v583_v18, 7  ;;  %v463_v59 = vshrl.u32 %v439_v22, 16  ;;  %v2973_v53 = vld [vmem:[%s3802_s1 + $0x1d8] sm:$0xff]  }
  0x28   : > { %732 = vst [vmem:[#allocation2 + $0x7c] sm:$0xf] %v731_v57  ;;  %v580_v49 = vsel %vm3219_vm7, %v572_v8, %v579_v35  ;;  %v466_v57 = vshll.u32 %v439_v22, 16  ;;  %v2963_v8 = vld [vmem:[%s3802_s1 + $0x1c8] sm:$0xff]   ;;  %v679_v22 = vshll.u32 %v644_v28, 16 }
  0x29   : > { %v2953_v3 = vld [vmem:[#allocation2 + $0x50] sm:$0xff]   ;;  %633 = vst [vmem:[#allocation2 + $0x60] sm:$0xf] %v580_v49  ;;  %v588_v23 = vor.u32 %v586_v58, %v3338_v52  ;;  %v465_v7 = vrot.slane %v463_v59, 7 }
  0x2a   : > { %v831_v10 = vshrl.u32 %v2953_v3, 16  ;;  %v833_v11 = vshll.u32 %v2953_v3, 16  ;;  %v544_v59 = vld [vmem:[%s3188_s8 + $0x54] sm:$0xf] }
  0x2b   : > { %v950_v15 = vld [vmem:[#allocation2 + $0x2c] sm:$0xf]  ;;  %v589_v18 = vsel %vm3219_vm7, %v581_v50, %v588_v23 }
  0x2c   : > { %v835_v32 = vrot.slane %v833_v11, 1  ;;  %v958_v40 = vsel %vm3268_vm10, 0, %v950_v15  ;;  %v674_v15 = vrot.slane %v3272_v56, 4  ;;  %634 = vst [vmem:[#allocation2 + $0x64] sm:$0xf] %v589_v18 }
  0x2d   : > { %v1147_v20 = vld [vmem:[#allocation2 + $0x80] sm:$0xf]  ;;  %v337_v56 = vld [vmem:[%s3188_s8 + $0x18] sm:$0xf] }
  0x2e   : > { %v951_v16 = vld [vmem:[#allocation2 + $0x30] sm:$0xf]  ;;  %v1155_v26 = vsel %vm3290_vm12, 0, %v1147_v20  ;;  %v836_v29 = vor.u32 %v835_v32, %v831_v10  ;;  %v3329_v39 = vld [vmem:[#allocation2 + $0x80] sm:$0xff]   ;;  %v3356_v10 = vrot.slane %v472_v61, 7  ;;  %v468_v32 = vor.u32 %v466_v57, %v465_v7 }
  0x2f   : > { %v959_v19 = vsel %vm3290_vm12, 0, %v951_v16  ;;  %v1146_v25 = vld [vmem:[#allocation2 + $0x7c] sm:$0xf]  ;;  %v914_v55 = vshll.u32 %v3329_v39, 16  ;;  %v676_v16 = vshrl.u32 %v644_v28, 16  ;;  %v918_v58 = vshrl.u32 %v3329_v39, 16 }
  0x30   : > { %v2539_v24 = vcombine.low %v958_v40, %v959_v19  ;;  %v746_v34 = vld [vmem:[#allocation2 + $0x7c] sm:$0xf]  ;;  %v1154_v30 = vsel %vm3268_vm10, 0, %v1146_v25  ;;  %v841_v48 = vsel %vm829_vm11, %v836_v29, %v3305_v12  ;;  %v470_v40 = vrot.slane %v465_v7, 4  ;;  %v747_v20 = vld [vmem:[#allocation2 + $0x80] sm:$0xf] }
  0x31   : > { %v2955_v42 = vld [vmem:[#allocation2 + $0x78] sm:$0xff]   ;;  %v762_v33 = vsel %vm3290_vm12, 0, %v746_v34  ;;  %v3327_v37 = vcombine.low %v1154_v30, %v1155_v26  ;;  %1986 = vmatprep.mubr.bf16.mxu0 %v841_v48  ;;  %v3343_v4 = vrot.slane %v914_v55, 1  ;;  %v477_v19 = vor.u32 %v475_v2, %v3356_v10  ;;  %v2965_v25 = vld [vmem:[%s3802_s1 + $0x188] sm:$0xff]   ;;  %v748_v26 = vld [vmem:[#allocation2 + $0x84] sm:$0xf] }
  0x32   : > { %2051 = vmatprep.mubr.bf16.mxu1 %v2539_v24  ;;  %v2525_v38 = vcombine.low %v761_v6, %v762_v33  ;;  %v907_v41 = vshrl.u32 %v2955_v42, 16  ;;  %v909_v43 = vshll.u32 %v2955_v42, 16  ;;  %v2962_v6 = vld [vmem:[%s3802_s1 + $0x108] sm:$0xff]   ;;  %v678_v21 = vrot.slane %v676_v16, 7  ;;  %v2968_v42 = vld [vmem:[%s3802_s1 + $0x110] sm:$0xff]  }
  0x33   : > { %v469_v24 = vsel %vm3219_vm7, %v461_v60, %v468_v32  ;;  %v685_v34 = vshrl.u32 %v645_v13, 16  ;;  %v2969_v33 = vld [vmem:[%s3802_s1 + $0x1d0] sm:$0xff]   ;;  %v763_v48 = vsel %vm3361_vm15, 0, %v747_v20  ;;  %v764_v50 = vsel %vm3378_vm0, 0, %v748_v26  ;;  %v545_v61 = vld [vmem:[%s3188_s8 + $0x58] sm:$0xf] }
  0x34   : > { %v911_v54 = vrot.slane %v909_v43, 1  ;;  %1987 = vmatmul.mubr.bf16.vlgmr.msra.gmra.mrb[0].mxu0 %v2525_v38  ;;  %530 = vst [vmem:[#allocation2 + $0x34] sm:$0xf] %v469_v24  ;;  %v681_v29 = vor.u32 %v679_v22, %v678_v21  ;;  %v683_v30 = vrot.slane %v678_v21, 4  ;;  %v2970_v38 = vld [vmem:[%s3802_s1 + $0x190] sm:$0xff]   ;;  %v592_v2 = vshrl.u32 %v544_v59, 16 }
  0x35   : > { %2773 = vmatpush3.bf16.msra.mxu0 %v2958_v27  ;;  %v478_v27 = vsel %vm3219_vm7, %v470_v40, %v477_v19  ;;  %v3395_v35 = vrot.slane %v685_v34, 7  ;;  %v441_v39 = vld [vmem:[%s3188_s8 + $0x30] sm:$0xf]  ;;  %v604_v23 = vshll.u32 %v545_v61, 16  ;;  %v479_v20 = vrot.slane %v3356_v10, 4  ;;  %v2975_v22 = vld [vmem:[%s3802_s1 + $0x198] sm:$0xff]  }
  0x36   : > { %v912_v3 = vor.u32 %v911_v54, %v907_v41  ;;  %2774 = vmatprep.subr.bf16.mxu0 %v2961_v47  ;;  %531 = vst [vmem:[#allocation2 + $0x38] sm:$0xf] %v478_v27  ;;  %v842_v41 = vshrl.u32 %v3279_v0, 16  ;;  %v682_v43 = vsel %vm3219_vm7, %v674_v15, %v681_v29  ;;  %v2971_v47 = vld [vmem:[%s3802_s1 + $0x158] sm:$0xff]   ;;  %v3417_v54 = vld [vmem:[#allocation2 + $0x60] sm:$0xff]   ;;  %v594_v44 = vrot.slane %v592_v2, 7 }
  0x37   : > { %v690_v49 = vor.u32 %v688_v63, %v3395_v35  ;;  %735 = vst [vmem:[#allocation2 + $0x88] sm:$0xf] %v682_v43  ;;  %v2972_v0 = vld [vmem:[%s3802_s1 + $0x118] sm:$0xff]   ;;  %v846_v36 = vshll.u32 %v3417_v54, 16  ;;  %v484_v40 = vshll.u32 %v441_v39, 16  ;;  %v490_v26 = vshrl.u32 %v442_v31, 16 }
  0x38   : > { %v917_v17 = vsel %vm829_vm11, %v912_v3, %v3343_v4  ;;  %v844_v57 = vor.u32 %v842_v41, %v3305_v12  ;;  %v595_v3 = vshll.u32 %v544_v59, 16  ;;  %v601_v12 = vshrl.u32 %v545_v61, 16  ;;  %v646_v24 = vld [vmem:[%s3188_s8 + $0x74] sm:$0xf]  ;;  %v647_v63 = vld [vmem:[%s3188_s8 + $0x78] sm:$0xf] }
  0x39   : > { %2052 = vmatmul.mubr.bf16.vlgmr.msra.gmra.mrb[0].mxu1 %v917_v17  ;;  %2775 = vmatpush3.bf16.msra.mxu0 %v2962_v6  ;;  %v691_v55 = vsel %vm3219_vm7, %v683_v30, %v690_v49  ;;  %v590_v6 = vrot.slane %v3338_v52, 4  ;;  %v3443_v13 = vrot.slane %v846_v36, 1  ;;  %v481_v17 = vshrl.u32 %v441_v39, 16  ;;  %v2978_v2 = vld [vmem:[%s3802_s1 + $0x120] sm:$0xff]  }
  0x3a   : > { %2813 = vmatpush3.bf16.msra.mxu1 %v2960_v5  ;;  %2776 = vmatprep.subr.bf16.mxu0 %v2967_v9  ;;  %736 = vst [vmem:[#allocation2 + $0x8c] sm:$0xf] %v691_v55  ;;  %v3447_v16 = vrot.slane %v601_v12, 7  ;;  %v597_v18 = vor.u32 %v595_v3, %v594_v44  ;;  %v599_v32 = vrot.slane %v594_v44, 4  ;;  %v493_v34 = vshll.u32 %v442_v31, 16  ;;  %v2981_v44 = vld [vmem:[%s3802_s1 + $0x168] sm:$0xff]  }
  0x3b   : > { %2814 = vmatprep.subr.bf16.mxu1 %v2963_v8  ;;  %v952_v45 = vld [vmem:[#allocation2 + $0x34] sm:$0xf]  ;;  %v2526_v8 = vcombine.low %v763_v48, %v764_v50  ;;  %v849_v9 = vsel %vm829_vm11, %v844_v57, %v3443_v13  ;;  %v483_v21 = vrot.slane %v481_v17, 7  ;;  %v273_v10 = vand.u32 7, %v3259_v51 }
  0x3c   : > { %v960_v28 = vsel %vm3361_vm15, 0, %v952_v45  ;;  %v606_v19 = vor.u32 %v604_v23, %v3447_v16  ;;  %1994 = vmatprep.mubr.bf16.mxu0 %v849_v9  ;;  %v3470_v43 = vrot.slane %v490_v26, 7  ;;  %v694_v48 = vshrl.u32 %v646_v24, 16 }
  0x3d   : > { %2777 = vmatpush3.bf16.msra.mxu0 %v2968_v42  ;;  %v953_v7 = vld [vmem:[#allocation2 + $0x38] sm:$0xf]  ;;  %v2977_v42 = vld [vmem:[%s3802_s1 + $0x160] sm:$0xff]   ;;  %v486_v30 = vor.u32 %v484_v40, %v483_v21  ;;  %v488_v41 = vrot.slane %v483_v21, 4  ;;  %v697_v49 = vshll.u32 %v646_v24, 16  ;;  %v703_v59 = vshrl.u32 %v647_v63, 16 }
  0x3e   : > { %2815 = vmatpush3.bf16.msra.mxu1 %v2965_v25  ;;  %2778 = vmatprep.subr.bf16.mxu0 %v2971_v47  ;;  %v961_v15 = vsel %vm3378_vm0, 0, %v953_v7  ;;  %v598_v25 = vsel %vm3219_vm7, %v590_v6, %v597_v18  ;;  %v607_v29 = vsel %vm3219_vm7, %v599_v32, %v606_v19  ;;  %v749_v47 = vld [vmem:[#allocation2 + $0x88] sm:$0xf]  ;;  %v495_v57 = vor.u32 %v493_v34, %v3470_v43  ;;  %v2979_v6 = vld [vmem:[%s3802_s1 + $0x1e0] sm:$0xff]   ;;  %v444_v34 = vld [vmem:[%s3188_s8 + $0x3c] sm:$0xf] }
  0x3f   : > { %2816 = vmatprep.subr.bf16.mxu1 %v2969_v33  ;;  %v2540_v52 = vcombine.low %v960_v28, %v961_v15  ;;  %1995 = vmatmul.mubr.bf16.gmra.mrb[4].mxu0 %v2526_v8  ;;  %635 = vst [vmem:[#allocation2 + $0x68] sm:$0xf] %v598_v25  ;;  %v692_v33 = vrot.slane %v3395_v35, 4  ;;  %636 = vst [vmem:[#allocation2 + $0x6c] sm:$0xf] %v607_v29  ;;  %v850_v35 = vshrl.u32 %v3417_v54, 16 }
  0x40   : > { %v3497_v60 = vrot.slane %v703_v59, 7  ;;  %v496_v39 = vsel %vm3219_vm7, %v488_v41, %v495_v57  ;;  %v765_v12 = vsel %vm3481_vm4, 0, %v749_v47  ;;  %v2980_v7 = vld [vmem:[%s3802_s1 + $0x1a0] sm:$0xff]   ;;  %v608_v18 = vrot.slane %v3447_v16, 4  ;;  %v2983_v19 = vld [vmem:[%s3802_s1 + $0x1e8] sm:$0xff]   ;;  %v2988_v59 = vld [vmem:[%s3802_s1 + $0x130] sm:$0xff]  }
  0x41   : > { %2779 = vmatpush3.bf16.msra.mxu0 %v2972_v0  ;;  %2059 = vmatprep.mubr.bf16.mxu1 %v2540_v52  ;;  %v3464_v27 = vld [vmem:[#allocation2 + $0x88] sm:$0xff]   ;;  %v920_v0 = vor.u32 %v918_v58, %v3343_v4  ;;  %v696_v4 = vrot.slane %v694_v48, 7  ;;  %v706_v58 = vshll.u32 %v647_v63, 16  ;;  %533 = vst [vmem:[#allocation2 + $0x40] sm:$0xf] %v496_v39  ;;  %v852_v32 = vor.u32 %v850_v35, %v3443_v13 }
  0x42   : > { %2817 = vmatpush3.bf16.msra.mxu1 %v2970_v38  ;;  %v280_v38 = vand.u32 7, %v3282_v1  ;;  %2780 = vmatprep.subr.bf16.mxu0 %v2977_v42  ;;  %v922_v50 = vshll.u32 %v3464_v27, 16  ;;  %v750_v55 = vld [vmem:[#allocation2 + $0x8c] sm:$0xf]  ;;  %v926_v17 = vshrl.u32 %v3464_v27, 16  ;;  %v497_v26 = vrot.slane %v3470_v43, 4 }
  0x43   : > { %2818 = vmatprep.subr.bf16.mxu1 %v2973_v53  ;;  %v487_v53 = vsel %vm3219_vm7, %v479_v20, %v486_v30  ;;  %v699_v36 = vor.u32 %v697_v49, %v696_v4  ;;  %v701_v45 = vrot.slane %v696_v4, 4  ;;  %v708_v23 = vor.u32 %v706_v58, %v3497_v60  ;;  %v2982_v52 = vld [vmem:[%s3802_s1 + $0x128] sm:$0xff]   ;;  %v546_v20 = vld [vmem:[%s3188_s8 + $0x5c] sm:$0xf]  ;;  %v443_v25 = vld [vmem:[%s3188_s8 + $0x38] sm:$0xf] }
  0x44   : > { %532 = vst [vmem:[#allocation2 + $0x3c] sm:$0xf] %v487_v53  ;;  %v3488_v3 = vrot.slane %v922_v50, 1  ;;  %v766_v28 = vsel %vm3493_vm5, 0, %v750_v55  ;;  %v613_v24 = vshll.u32 %v546_v20, 16  ;;  %v499_v63 = vshrl.u32 %v443_v25, 16 }
  0x45   : > { %2781 = vmatpush3.bf16.msra.mxu0 %v2978_v2  ;;  %v700_v8 = vsel %vm3219_vm7, %v692_v33, %v699_v36  ;;  %v709_v15 = vsel %vm3219_vm7, %v701_v45, %v708_v23  ;;  %v2527_v13 = vcombine.low %v765_v12, %v766_v28  ;;  %v502_v42 = vshll.u32 %v443_v25, 16  ;;  %v2985_v27 = vld [vmem:[%s3802_s1 + $0x1a8] sm:$0xff]   ;;  %v2987_v43 = vld [vmem:[%s3802_s1 + $0x170] sm:$0xff]   ;;  %v648_v36 = vld [vmem:[%s3188_s8 + $0x7c] sm:$0xf] }
  0x46   : > { %2819 = vmatpush3.bf16.msra.mxu1 %v2975_v22  ;;  %v925_v5 = vsel %vm829_vm11, %v920_v0, %v3488_v3  ;;  %v3519_v31 = vld [vmem:[#allocation2 + $0x68] sm:$0xff]   ;;  %737 = vst [vmem:[#allocation2 + $0x90] sm:$0xf] %v700_v8  ;;  %738 = vst [vmem:[#allocation2 + $0x94] sm:$0xf] %v709_v15  ;;  %2782 = vmatprep.subr.bf16.mxu0 %v2981_v44  ;;  %v610_v22 = vshrl.u32 %v546_v20, 16  ;;  %v928_v45 = vor.u32 %v926_v17, %v3488_v3 }
  0x47   : > { %2060 = vmatmul.mubr.bf16.gmra.mrb[4].mxu1 %v925_v5  ;;  %2820 = vmatprep.subr.bf16.mxu1 %v2979_v6  ;;  %v854_v40 = vshll.u32 %v3519_v31, 16  ;;  %v508_v33 = vshrl.u32 %v444_v34, 16  ;;  %v511_v41 = vshll.u32 %v444_v34, 16  ;;  %v501_v49 = vrot.slane %v499_v63, 7  ;;  %v2989_v44 = vld [vmem:[%s3802_s1 + $0x1f0] sm:$0xff]   ;;  %v2993_v20 = vld [vmem:[%s3802_s1 + $0x1f8] sm:$0xff]  }
  0x48   : > { %v955_v29 = vld [vmem:[#allocation2 + $0x40] sm:$0xf]  ;;  %v3544_v30 = vrot.slane %v610_v22, 7  ;;  %vm3556_vm6 = vcmp.eq.s32.totalorder %v273_v10, 0  ;;  %vm3569_vm9 = vcmp.eq.s32.totalorder %v280_v38, 0  ;;  %v710_v4 = vrot.slane %v3497_v60, 4 }
  0x49   : > { %2783 = vmatpush3.bf16.msra.mxu0 %v2982_v52  ;;  %v3538_v16 = vrot.slane %v854_v40, 1  ;;  %v963_v48 = vsel %vm3493_vm5, 0, %v955_v29  ;;  %v3560_v55 = vrot.slane %v508_v33, 7  ;;  %v504_v51 = vor.u32 %v502_v42, %v501_v49  ;;  %vm3585_vm10 = vmpackc.low %vm3556_vm6, %vm3556_vm6  ;;  %v2992_v40 = vld [vmem:[%s3802_s1 + $0x138] sm:$0xff]   ;;  %v2994_v22 = vld [vmem:[#allocation2 + $0x2c] sm:$0xff]  }
  0x4a   : > { %2821 = vmatpush3.bf16.msra.mxu1 %v2980_v7  ;;  %v615_v50 = vor.u32 %v613_v24, %v3544_v30  ;;  %2784 = vmatprep.subr.bf16.mxu0 %v2987_v43  ;;  %v506_v10 = vrot.slane %v501_v49, 4  ;;  %v712_v5 = vshrl.u32 %v648_v36, 16  ;;  %v858_v12 = vshrl.u32 %v3519_v31, 16  ;;  %vm3595_vm12 = vmpackc.low %vm3569_vm9, %vm3569_vm9  ;;  %v2990_v31 = vld [vmem:[%s3802_s1 + $0x1b0] sm:$0xff]   ;;  %v3642_v53 = vld [vmem:[%s3802_s1 + $0x200] sm:$0xff]  }
  0x4b   : > { %v954_v9 = vld [vmem:[#allocation2 + $0x3c] sm:$0xf]  ;;  %2822 = vmatprep.subr.bf16.mxu1 %v2983_v19  ;;  %v857_v47 = vsel %vm829_vm11, %v852_v32, %v3538_v16  ;;  %v513_v2 = vor.u32 %v511_v41, %v3560_v55  ;;  %v505_v38 = vsel %vm3219_vm7, %v497_v26, %v504_v51  ;;  %v715_v7 = vshll.u32 %v648_v36, 16  ;;  %v3630_v42 = vld [vmem:[#allocation2 + $0x34] sm:$0xff]   ;;  %v333_v57 = vld [vmem:[%s3188_s8 + $0x8] sm:$0xf] }
  0x4c   : > { %v962_v21 = vsel %vm3481_vm4, 0, %v954_v9  ;;  %2002 = vmatprep.mubr.bf16.mxu0 %v857_v47  ;;  %v616_v58 = vsel %vm3219_vm7, %v608_v18, %v615_v50  ;;  %534 = vst [vmem:[#allocation2 + $0x44] sm:$0xf] %v505_v38  ;;  %v3599_v8 = vrot.slane %v712_v5, 7  ;;  %v2991_v18 = vld [vmem:[%s3802_s1 + $0x178] sm:$0xff]   ;;  %v860_v25 = vor.u32 %v858_v12, %v3538_v16 }
  0x4d   : > { %v2541_v0 = vcombine.low %v962_v21, %v963_v48  ;;  %2003 = vmatmul.mubr.bf16.gmra.mrb[8].mxu0 %v2527_v13  ;;  %v3565_v35 = vld [vmem:[#allocation2 + $0x90] sm:$0xff]   ;;  %637 = vst [vmem:[#allocation2 + $0x70] sm:$0xf] %v616_v58  ;;  %v514_v3 = vsel %vm3219_vm7, %v506_v10, %v513_v2  ;;  %v1105_v29 = vshll.u32 %v2994_v22, 16  ;;  %v2996_v16 = vld [vmem:[%s3802_s1 + $0x1b8] sm:$0xff]   ;;  %v1110_v49 = vshll.u32 %v3630_v42, 16 }
  0x4e   : > { %2823 = vmatpush3.bf16.msra.mxu1 %v2985_v27  ;;  %v751_v39 = vld [vmem:[#allocation2 + $0x90] sm:$0xf]  ;;  %2785 = vmatpush3.bf16.msra.mxu0 %v2988_v59  ;;  %v930_v1 = vshll.u32 %v3565_v35, 16  ;;  %v752_v6 = vld [vmem:[#allocation2 + $0x94] sm:$0xf]  ;;  %v717_v52 = vor.u32 %v715_v7, %v3599_v8  ;;  %v934_v19 = vshrl.u32 %v3565_v35, 16 }
  0x4f   : > { %2067 = vmatprep.mubr.bf16.mxu1 %v2541_v0  ;;  %535 = vst [vmem:[#allocation2 + $0x48] sm:$0xf] %v514_v3  ;;  %v767_v17 = vsel %vm3585_vm10, 0, %v751_v39  ;;  %2824 = vmatprep.subr.bf16.mxu1 %v2989_v44  ;;  %v768_v32 = vsel %vm3595_vm12, 0, %v752_v6  ;;  %v1103_v27 = vshrl.u32 %v2994_v22, 16  ;;  %v1107_v48 = vrot.slane %v1105_v29, 1 }
  0x50   : > { %v932_v28 = vrot.slane %v930_v1, 1  ;;  %v718_v9 = vsel %vm3219_vm7, %v710_v4, %v717_v52  ;;  %2786 = vmatprep.subr.bf16.mxu0 %v2991_v18  ;;  %v2528_v43 = vcombine.low %v767_v17, %v768_v32  ;;  %v203_v47 = vld [vmem:[#allocation2 + $0x4] sm:$0x1]  ;;  %v331_v50 = vld [vmem:[%s3188_s8] sm:$0xf]  ;;  %v3648_v2 = vrot.slane %v1110_v49, 1 }
  0x51   : > { %739 = vst [vmem:[#allocation2 + $0x98] sm:$0xf] %v718_v9  ;;  %v204_v0 = vsel %vm3201_vm3, 0, %v203_v47  ;;  %v332_v35 = vld [vmem:[%s3188_s8 + $0x4] sm:$0xf]  ;;  %v1108_v58 = vor.u32 %v1107_v48, %v1103_v27  ;;  %v342_v39 = vshrl.u32 %v331_v50, 16 }
  0x52   : > { %v933_v15 = vsel %vm829_vm11, %v928_v45, %v932_v28  ;;  %2825 = vmatpush3.bf16.msra.mxu1 %v2990_v31  ;;  %2787 = vmatpush3.bf16.msra.mxu0 %v2992_v40  ;;  %205 = vst [vmem:[#allocation2 + $0x4] sm:$0x1] %v204_v0  ;;  %v334_v51 = vld [vmem:[%s3188_s8 + $0xc] sm:$0xf]  ;;  %v936_v4 = vor.u32 %v934_v19, %v932_v28  ;;  %v345_v36 = vshll.u32 %v331_v50, 16  ;;  %v350_v45 = vshrl.u32 %v332_v35, 16 }
  0x53   : > { %2068 = vmatmul.mubr.bf16.gmra.mrb[8].mxu1 %v933_v15  ;;  %v956_v24 = vld [vmem:[#allocation2 + $0x44] sm:$0xf]  ;;  %2826 = vmatprep.subr.bf16.mxu1 %v2993_v20  ;;  %v353_v1 = vshll.u32 %v332_v35, 16  ;;  %v1113_v6 = vsel %vm829_vm11, %v1108_v58, %v3648_v2  ;;  %v359_v5 = vshrl.u32 %v333_v57, 16  ;;  %v362_v12 = vshll.u32 %v333_v57, 16  ;;  %v3000_v3 = vld [vmem:[#allocation2 + $0x54] sm:$0xff]  }
  0x54   : > { %v2984_v21 = vld [vmem:[#allocation2 + $0x70] ss:$0 sps:$4 sm:$0x11]   ;;  %v964_v34 = vsel %vm3585_vm10, 0, %v956_v24  ;;  %2872 = vmatprep.subr.bf16.mxu0 %v3642_v53  ;;  %v344_v7 = vrot.slane %v342_v39, 7  ;;  %v352_v28 = vrot.slane %v350_v45, 7 }
  0x55   : > { %v862_v26 = vshll.u32 %v2984_v21, 16  ;;  %v368_v44 = vshrl.u32 %v334_v51, 16  ;;  %v371_v31 = vshll.u32 %v334_v51, 16  ;;  %v361_v17 = vrot.slane %v359_v5, 7  ;;  %v3001_v9 = vld [vmem:[#allocation2 + $0x5c] sm:$0xff]   ;;  %v3669_v51 = vld [vmem:[#allocation2 + $0x64] sm:$0xff]  }
  0x56   : > { %v957_v13 = vld [vmem:[#allocation2 + $0x48] sm:$0xf]  ;;  %2827 = vmatpush3.bf16.msra.mxu1 %v2996_v16  ;;  %v347_v52 = vor.u32 %v345_v36, %v344_v7  ;;  %v348_v18 = vrot.slane %v344_v7, 4  ;;  %v355_v32 = vor.u32 %v353_v1, %v352_v28  ;;  %v357_v40 = vrot.slane %v352_v28, 4  ;;  %v335_v47 = vld [vmem:[%s3188_s8 + $0x10] sm:$0xf] }
  0x57   : > { %v965_v63 = vsel %vm3595_vm12, 0, %v957_v13  ;;  %v864_v33 = vrot.slane %v862_v26, 1  ;;  %v364_v20 = vor.u32 %v362_v12, %v361_v17  ;;  %v366_v21 = vrot.slane %v361_v17, 4  ;;  %v1149_v5 = vld [vmem:[#allocation2 + $0x88] sm:$0xf] }
  0x58   : > { %v2542_v41 = vcombine.low %v964_v34, %v965_v63  ;;  %v2986_v10 = vld [vmem:[#allocation2 + $0x98] ss:$0 sps:$4 sm:$0x11]   ;;  %v370_v22 = vrot.slane %v368_v44, 7  ;;  %v1223_v13 = vshrl.u32 %v3000_v3, 16  ;;  %v1225_v34 = vshll.u32 %v3000_v3, 16 }
  0x59   : > { %v865_v59 = vsel %vm829_vm11, %v860_v25, %v864_v33  ;;  %v938_v38 = vshll.u32 %v2986_v10, 16  ;;  %v424_v24 = vld [vmem:[#allocation2 + $0x4] sm:$0xf]  ;;  %v356_v25 = vsel %vm3219_vm7, %v348_v18, %v355_v32  ;;  %v365_v63 = vsel %vm3219_vm7, %v357_v40, %v364_v20  ;;  %v3660_v33 = vld [vmem:[#allocation2 + $0x3c] sm:$0xff]  }
  0x5a   : > { %2075 = vmatprep.mubr.bf16.mxu1 %v2542_v41  ;;  %2010 = vmatprep.mubr.bf16.mxu0 %v865_v59  ;;  %v425_v26 = vsel %vm3236_vm8, %v347_v52, %v424_v24  ;;  %v373_v27 = vor.u32 %v371_v31, %v370_v22  ;;  %427 = vst [vmem:[#allocation2 + $0x8] sm:$0xf] %v356_v25  ;;  %v1230_v29 = vshll.u32 %v3001_v9, 16  ;;  %v515_v41 = vrot.slane %v3560_v55, 4  ;;  %v3677_v3 = vld [vmem:[#allocation2 + $0x44] sm:$0xff]  }
  0x5b   : > { %2011 = vmatmul.mubr.bf16.gmra.mrb[12].mxu0 %v2528_v43  ;;  %v940_v15 = vrot.slane %v938_v38, 1  ;;  %426 = vst [vmem:[#allocation2 + $0x4] sm:$0xf] %v425_v26  ;;  %428 = vst [vmem:[#allocation2 + $0xc] sm:$0xf] %v365_v63  ;;  %v1227_v43 = vrot.slane %v1225_v34, 1 }
  0x5c   : > { %2116 = vmatprep.mubr.bf16.mxu0 %v1113_v6  ;;  %v1114_v16 = vshrl.u32 %v3630_v42, 16  ;;  %v374_v48 = vsel %vm3219_vm7, %v366_v21, %v373_v27  ;;  %v1232_v49 = vrot.slane %v1230_v29, 1  ;;  %v1118_v0 = vshll.u32 %v3660_v33, 16  ;;  %v1148_v38 = vld [vmem:[#allocation2 + $0x84] sm:$0xf] }
  0x5d   : > { %v941_v19 = vsel %vm829_vm11, %v936_v4, %v940_v15  ;;  %429 = vst [vmem:[#allocation2 + $0x10] sm:$0xf] %v374_v48  ;;  %v1228_v50 = vor.u32 %v1227_v43, %v1223_v13  ;;  %v377_v59 = vshrl.u32 %v335_v47, 16  ;;  %v380_v35 = vshll.u32 %v335_v47, 16  ;;  %v3002_v48 = vld [vmem:[%s3802_s1 + $0x208] sm:$0xff]  }
  0x5e   : > { %2076 = vmatmul.mubr.bf16.gmra.mrb[12].mxu1 %v941_v19  ;;  %v386_v57 = vshrl.u32 %v336_v14, 16  ;;  %v3671_v10 = vrot.slane %v1118_v0, 1  ;;  %v375_v4 = vrot.slane %v370_v22, 4  ;;  %v389_v58 = vshll.u32 %v336_v14, 16  ;;  %v338_v22 = vld [vmem:[%s3188_s8 + $0x1c] sm:$0xf] }
  0x5f   : > { %v1234_v42 = vshrl.u32 %v3001_v9, 16  ;;  %v1233_v39 = vsel %vm829_vm11, %v1228_v50, %v1232_v49  ;;  %v379_v36 = vrot.slane %v377_v59, 7  ;;  %v1238_v1 = vshll.u32 %v3669_v51, 16 }
  0x60   : > { %v388_v45 = vrot.slane %v386_v57, 7  ;;  %2181 = vmatprep.mubr.bf16.mxu1 %v1233_v39  ;;  %v1156_v12 = vsel %vm3361_vm15, 0, %v1148_v38  ;;  %v1157_v17 = vsel %vm3378_vm0, 0, %v1149_v5  ;;  %v1122_v19 = vshrl.u32 %v3660_v33, 16  ;;  %v536_v5 = vld [vmem:[#allocation2 + $0x4c] sm:$0x1] }
  0x61   : > { %v1236_v6 = vor.u32 %v1234_v42, %v1232_v49  ;;  %v382_v28 = vor.u32 %v380_v35, %v379_v36  ;;  %v384_v44 = vrot.slane %v379_v36, 4  ;;  %v1240_v15 = vrot.slane %v1238_v1, 1  ;;  %v1150_v35 = vld [vmem:[#allocation2 + $0x8c] sm:$0xf] }
  0x62   : > { %v2997_v7 = vld [vmem:[#allocation2 + $0x4] sm:$0xff]   ;;  %v391_v31 = vor.u32 %v389_v58, %v388_v45  ;;  %v2554_v21 = vcombine.low %v1156_v12, %v1157_v17  ;;  %v395_v24 = vshrl.u32 %v337_v56, 16  ;;  %v398_v25 = vshll.u32 %v337_v56, 16  ;;  %v1151_v58 = vld [vmem:[#allocation2 + $0x90] sm:$0xf]  ;;  %v3007_v17 = vld [vmem:[%s3802_s1 + $0x218] sm:$0xff]  }
  0x63   : > { %v1027_v52 = vshrl.u32 %v2997_v7, 16  ;;  %v1029_v18 = vshll.u32 %v2997_v7, 16  ;;  %v383_v11 = vsel %vm3219_vm7, %v375_v4, %v382_v28  ;;  %v1241_v9 = vsel %vm829_vm11, %v1236_v6, %v1240_v15  ;;  %v3005_v28 = vld [vmem:[%s3802_s1 + $0x210] sm:$0xff]  }
  0x64   : > { %v392_v32 = vsel %vm3219_vm7, %v384_v44, %v391_v31  ;;  %v2998_v40 = vld [vmem:[#allocation2 + $0xc] sm:$0xff]   ;;  %430 = vst [vmem:[#allocation2 + $0x14] sm:$0xf] %v383_v11  ;;  %v1126_v13 = vshll.u32 %v3677_v3, 16  ;;  %v393_v34 = vrot.slane %v388_v45, 4  ;;  %v404_v63 = vshrl.u32 %v338_v22, 16 }
  0x65   : > { %431 = vst [vmem:[#allocation2 + $0x18] sm:$0xf] %v392_v32  ;;  %v1031_v20 = vrot.slane %v1029_v18, 1  ;;  %v1034_v26 = vshll.u32 %v2998_v40, 16  ;;  %v397_v29 = vrot.slane %v395_v24, 7  ;;  %v407_v43 = vshll.u32 %v338_v22, 16 }
  0x66   : > { %2182 = vmatmul.mubr.bf16.vlgmr.msra.gmra.mrb[16].mxu1 %v3327_v37  ;;  %v1116_v37 = vor.u32 %v1114_v16, %v3648_v2  ;;  %v1038_v2 = vshrl.u32 %v2998_v40, 16  ;;  %v3692_v16 = vld [vmem:[#allocation2 + $0x6c] sm:$0xff]   ;;  %v406_v14 = vrot.slane %v404_v63, 7  ;;  %v1242_v50 = vshrl.u32 %v3669_v51, 16  ;;  %v434_v44 = vld [vmem:[#allocation2 + $0x24] sm:$0x1] }
  0x67   : > { %2189 = vmatprep.mubr.bf16.mxu1 %v1241_v9  ;;  %v1032_v27 = vor.u32 %v1031_v20, %v1027_v52  ;;  %v1036_v47 = vrot.slane %v1034_v26, 1  ;;  %v400_v49 = vor.u32 %v398_v25, %v397_v29  ;;  %v402_v0 = vrot.slane %v397_v29, 4  ;;  %v638_v31 = vld [vmem:[#allocation2 + $0x74] sm:$0x1]  ;;  %v3018_v9 = vld [vmem:[#allocation2 + $0x7c] sm:$0xff]   ;;  %v3019_v20 = vld [vmem:[#allocation2 + $0x84] sm:$0xff]  }
  0x68   : > { %v1121_v33 = vsel %vm829_vm11, %v1116_v37, %v3671_v10  ;;  %v1246_v59 = vshll.u32 %v3692_v16, 16  ;;  %v409_v4 = vor.u32 %v407_v43, %v406_v14  ;;  %v1158_v42 = vsel %vm3481_vm4, 0, %v1150_v35  ;;  %v1152_v11 = vld [vmem:[#allocation2 + $0x94] sm:$0xf]  ;;  %v1153_v37 = vld [vmem:[#allocation2 + $0x98] sm:$0xf] }
  0x69   : > { %v1037_v57 = vsel %vm829_vm11, %v1032_v27, %v1036_v47  ;;  %v617_v39 = vrot.slane %v3544_v30, 4  ;;  %v401_v45 = vsel %vm3219_vm7, %v393_v34, %v400_v49  ;;  %v1244_v1 = vor.u32 %v1242_v50, %v1240_v15  ;;  %v3012_v34 = vld [vmem:[%s3802_s1 + $0x228] sm:$0xff]   ;;  %v740_v50 = vld [vmem:[#allocation2 + $0x9c] sm:$0x1] }
  0x6a   : > { %2117 = vmatmul.mubr.bf16.vlgmr.msra.gmra.mrb[16].mxu0 %v1037_v57  ;;  %v3707_v38 = vrot.slane %v1246_v59, 1  ;;  %v1124_v51 = vor.u32 %v1122_v19, %v3671_v10  ;;  %v1128_v6 = vrot.slane %v1126_v13, 1  ;;  %v410_v61 = vsel %vm3219_vm7, %v402_v0, %v409_v4  ;;  %432 = vst [vmem:[#allocation2 + $0x1c] sm:$0xf] %v401_v45  ;;  %v3020_v57 = vld [vmem:[#allocation2 + $0x8c] sm:$0xff]  }
  0x6b   : > { %2873 = vmatpush3.bf16.msra.mxu0 %v3642_v53  ;;  %2124 = vmatprep.mubr.bf16.mxu0 %v1121_v33  ;;  %v1159_v30 = vsel %vm3493_vm5, 0, %v1151_v58  ;;  %v1040_v12 = vor.u32 %v1038_v2, %v1036_v47  ;;  %433 = vst [vmem:[#allocation2 + $0x20] sm:$0xf] %v410_v61  ;;  %v537_v62 = vsel %vm3201_vm3, %v515_v41, %v536_v5  ;;  %v411_v54 = vrot.slane %v406_v14, 4  ;;  %v3017_v5 = vld [vmem:[%s3802_s1 + $0x238] sm:$0xff]  }
  0x6c   : > { %v3004_v36 = vld [vmem:[#allocation2 + $0x14] sm:$0xff]   ;;  %2874 = vmatprep.subr.bf16.mxu0 %v3002_v48  ;;  %v1249_v53 = vsel %vm829_vm11, %v1244_v1, %v3707_v38  ;;  %v2555_v10 = vcombine.low %v1158_v42, %v1159_v30  ;;  %538 = vst [vmem:[#allocation2 + $0x4c] sm:$0x1] %v537_v62  ;;  %v1130_v52 = vshrl.u32 %v3677_v3, 16  ;;  %v639_v18 = vsel %vm3201_vm3, %v617_v39, %v638_v31  ;;  %v3010_v3 = vld [vmem:[%s3802_s1 + $0x220] sm:$0xff]  }
  0x6d   : > { %v1042_v7 = vshll.u32 %v3004_v36, 16  ;;  %v435_v55 = vsel %vm3201_vm3, %v411_v54, %v434_v44  ;;  %640 = vst [vmem:[#allocation2 + $0x74] sm:$0x1] %v639_v18  ;;  %v1129_v32 = vsel %vm829_vm11, %v1124_v51, %v1128_v6  ;;  %v1046_v40 = vshrl.u32 %v3004_v36, 16  ;;  %v3015_v42 = vld [vmem:[%s3802_s1 + $0x230] sm:$0xff]  }
  0x6e   : > { %2190 = vmatmul.mubr.bf16.gmra.mrb[20].mxu1 %v2554_v21  ;;  %436 = vst [vmem:[#allocation2 + $0x24] sm:$0x1] %v435_v55  ;;  %v1250_v56 = vshrl.u32 %v3692_v16, 16  ;;  %v719_v21 = vrot.slane %v3599_v8, 4  ;;  %v1160_v22 = vsel %vm3585_vm10, 0, %v1152_v11  ;;  %v1301_v24 = vshll.u32 %v3018_v9, 16 }
  0x6f   : > { %2197 = vmatprep.mubr.bf16.mxu1 %v1249_v53  ;;  %v1044_v15 = vrot.slane %v1042_v7, 1  ;;  %2875 = vmatpush3.bf16.msra.mxu0 %v3002_v48  ;;  %v1132_v63 = vor.u32 %v1130_v52, %v1128_v6  ;;  %v1161_v2 = vsel %vm3595_vm12, 0, %v1153_v37  ;;  %v1306_v16 = vshll.u32 %v3019_v20, 16 }
  0x70   : > { %2876 = vmatprep.subr.bf16.mxu0 %v3005_v28  ;;  %v1252_v47 = vor.u32 %v1250_v56, %v3707_v38  ;;  %v1299_v14 = vshrl.u32 %v3018_v9, 16  ;;  %v1303_v48 = vrot.slane %v1301_v24, 1  ;;  %v2556_v35 = vcombine.low %v1160_v22, %v1161_v2  ;;  %v3021_v38 = vld [vmem:[#allocation2 + $0x94] sm:$0xff]   ;;  %v3023_v22 = vld [vmem:[%s3804_s3] sm:$0xff]  }
  0x71   : > { %v1045_v41 = vsel %vm829_vm11, %v1040_v12, %v1044_v15  ;;  %v1048_v25 = vor.u32 %v1046_v40, %v1044_v15  ;;  %v1308_v39 = vrot.slane %v1306_v16, 1  ;;  %v741_v51 = vsel %vm3201_vm3, %v719_v21, %v740_v50 }
  0x72   : > { %2125 = vmatmul.mubr.bf16.gmra.mrb[20].mxu0 %v1045_v41  ;;  %v3009_v19 = vld [vmem:[#allocation2 + $0x1c] sm:$0xff]   ;;  %v1304_v1 = vor.u32 %v1303_v48, %v1299_v14  ;;  %742 = vst [vmem:[#allocation2 + $0x9c] sm:$0x1] %v741_v51  ;;  %v1314_v6 = vshll.u32 %v3020_v57, 16  ;;  %v1310_v30 = vshrl.u32 %v3019_v20, 16  ;;  %v1318_v7 = vshrl.u32 %v3020_v57, 16 }
  0x73   : > { %2877 = vmatpush3.bf16.msra.mxu0 %v3005_v28  ;;  %2132 = vmatprep.mubr.bf16.mxu0 %v1129_v32  ;;  %v1050_v26 = vshll.u32 %v3009_v19, 16  ;;  %v3013_v13 = vld [vmem:[#allocation2 + $0x4c] ss:$0 sps:$4 sm:$0x11]   ;;  %v1054_v43 = vshrl.u32 %v3009_v19, 16  ;;  %v1322_v28 = vshll.u32 %v3021_v38, 16 }
  0x74   : > { %2878 = vmatprep.subr.bf16.mxu0 %v3007_v17  ;;  %v3016_v27 = vld [vmem:[#allocation2 + $0x74] ss:$0 sps:$4 sm:$0x11]   ;;  %v1134_v8 = vshll.u32 %v3013_v13, 16  ;;  %v1309_v12 = vsel %vm829_vm11, %v1304_v1, %v1308_v39  ;;  %v1316_v46 = vrot.slane %v1314_v6, 1  ;;  %v1312_v53 = vor.u32 %v1310_v30, %v1308_v39 }
  0x75   : > { %v1052_v29 = vrot.slane %v1050_v26, 1  ;;  %v3014_v60 = vld [vmem:[#allocation2 + $0x24] ss:$0 sps:$4 sm:$0x11]   ;;  %v1254_v33 = vshll.u32 %v3016_v27, 16  ;;  %v1324_v44 = vrot.slane %v1322_v28, 1 }
  0x76   : > { %2198 = vmatmul.mubr.bf16.gmra.mrb[24].mxu1 %v2555_v10  ;;  %v1136_v0 = vrot.slane %v1134_v8, 1  ;;  %v1058_v59 = vshll.u32 %v3014_v60, 16  ;;  %v1320_v10 = vor.u32 %v1318_v7, %v1316_v46  ;;  %v1317_v54 = vsel %vm829_vm11, %v1312_v53, %v1316_v46 }
  0x77   : > { %2879 = vmatpush3.bf16.msra.mxu0 %v3007_v17  ;;  %v1053_v49 = vsel %vm829_vm11, %v1048_v25, %v1052_v29  ;;  %v1256_v23 = vrot.slane %v1254_v33, 1  ;;  %v1056_v58 = vor.u32 %v1054_v43, %v1052_v29  ;;  %v1326_v31 = vshrl.u32 %v3021_v38, 16 }
  0x78   : > { %2880 = vmatprep.subr.bf16.mxu0 %v3010_v3  ;;  %v1137_v4 = vsel %vm829_vm11, %v1132_v63, %v1136_v0  ;;  %v1060_v36 = vrot.slane %v1058_v59, 1  ;;  %v1325_v17 = vsel %vm829_vm11, %v1320_v10, %v1324_v44  ;;  %vm2343_vm3 = vcmask 523264  }
  0x79   : > { %v1257_v45 = vsel %vm829_vm11, %v1252_v47, %v1256_v23  ;;  %v3022_v62 = vld [vmem:[#allocation2 + $0x9c] ss:$0 sps:$4 sm:$0x11]   ;;  %v1328_v52 = vor.u32 %v1326_v31, %v1324_v44 }
  0x7a   : > { %2133 = vmatmul.mubr.bf16.gmra.mrb[24].mxu0 %v1053_v49  ;;  %2205 = vmatprep.mubr.bf16.mxu1 %v1257_v45  ;;  %v1061_v61 = vsel %vm829_vm11, %v1056_v58, %v1060_v36  ;;  %v1330_v15 = vshll.u32 %v3022_v62, 16 }
  0x7b   : > { %2881 = vmatpush3.bf16.msra.mxu0 %v3010_v3  ;;  %2140 = vmatprep.mubr.bf16.mxu0 %v1137_v4 }
  0x7c   : > { %2882 = vmatprep.subr.bf16.mxu0 %v3012_v34  ;;  %v1332_v18 = vrot.slane %v1330_v15, 1 }
  0x7e   : > { %2206 = vmatmul.mubr.bf16.gmra.mrb[28].mxu1 %v2556_v35  ;;  %v1333_v55 = vsel %vm829_vm11, %v1328_v52, %v1332_v18 }
  0x7f   : > { %2883 = vmatpush3.bf16.msra.mxu0 %v3012_v34  ;;  %2904 = vmatprep.mubr.msk.bf16.mxu1 %vm2343_vm3, %v3023_v22 }
  0x80   : > { %2884 = vmatprep.subr.bf16.mxu0 %v3015_v42 }
  0x82   : > { %2141 = vmatmul.mubr.bf16.gmra.mrb[28].mxu0 %v1061_v61 }
  0x83   : > { %2885 = vmatpush3.bf16.msra.mxu0 %v3015_v42  ;;  %2888 = vmatprep.mubr.bf16.mxu0 %v1309_v12 }
  0x84   : > { %2886 = vmatprep.subr.bf16.mxu0 %v3017_v5 }
  0x87   : > { %2887 = vmatpush3.bf16.msra.mxu0 %v3017_v5 }
  0x8a   : > { %2889 = vmatmul.mubr.bf16.vlgmr.msra.gmra.mrb[32].mxu0 %v1317_v54 }
  0x8b   : > { %2892 = vmatprep.mubr.bf16.mxu0 %v1325_v17 }
  0x92   : > { %2893 = vmatmul.mubr.bf16.gmra.mrb[36].mxu0 %v1333_v55 }
 0x107   : > { %v2708_v11 = vpop.f32.mrb[0].mxu0 }
 0x108   : > { %v2709_v41 = vpop.f32.mrb[1].mxu0 }
 0x109   : > { %v2710_v32 = vadd.f32 %v2709_v41, %v2708_v11  ;;  %v2711_v40 = vpop.f32.mrb[2].mxu0 }
 0x10a   : > { %v2712_v37 = vpop.f32.mrb[3].mxu0 }
 0x10b   : > { %v2713_v3 = vadd.f32 %v2712_v37, %v2711_v40 }
 0x10c   : > { %v2748_v9 = vpop.f32.mrb[0].mxu1 }
 0x10d   : > { %v2749_v19 = vpop.f32.mrb[1].mxu1 }
 0x10e   : > { %v2750_v56 = vadd.f32 %v2749_v19, %v2748_v9  ;;  %v2751_v20 = vpop.f32.mrb[2].mxu1 }
 0x10f   : > { %v2752_v21 = vpop.f32.mrb[3].mxu1 }
 0x110   : > { %v3766_v24 = vadd.f32 %v2750_v56, %v2710_v32  ;;  %v2753_v25 = vadd.f32 %v2752_v21, %v2751_v20 }
 0x112   : > { %v2057_v26 = vadd.f32 %v2753_v25, %v2713_v3  ;;  %v2714_v13 = vpop.f32.mrb[4].mxu0 }
 0x113   : > { %v2715_v34 = vpop.f32.mrb[5].mxu0 }
 0x114   : > { %v2716_v63 = vadd.f32 %v2715_v34, %v2714_v13  ;;  %v2717_v27 = vpop.f32.mrb[6].mxu0 }
 0x115   : > { %v2718_v2 = vpop.f32.mrb[7].mxu0 }
 0x116   : > { %v2719_v29 = vadd.f32 %v2718_v2, %v2717_v27 }
 0x11a   : > { %v2754_v8 = vpop.f32.mrb[4].mxu1 }
 0x11b   : > { %v2755_v43 = vpop.f32.mrb[5].mxu1 }
 0x11c   : > { %v2756_v16 = vadd.f32 %v2755_v43, %v2754_v8  ;;  %v2757_v60 = vpop.f32.mrb[6].mxu1 }
 0x11d   : > { %v2758_v47 = vpop.f32.mrb[7].mxu1 }
 0x11e   : > { %v3769_v33 = vadd.f32 %v2756_v16, %v2716_v63  ;;  %v2759_v14 = vadd.f32 %v2758_v47, %v2757_v60 }
 0x120   : > { %v3771_v48 = vadd.f32 %v2759_v14, %v2719_v29  ;;  %v2720_v49 = vpop.f32.mrb[8].mxu0 }
 0x121   : > { %v2721_v0 = vpop.f32.mrb[9].mxu0 }
 0x122   : > { %v2722_v50 = vadd.f32 %v2721_v0, %v2720_v49  ;;  %v2723_v59 = vpop.f32.mrb[10].mxu0 }
 0x123   : > { %v2724_v23 = vpop.f32.mrb[11].mxu0 }
 0x124   : > { %v2725_v35 = vadd.f32 %v2724_v23, %v2723_v59 }
 0x126   : > { %v2760_v57 = vpop.f32.mrb[8].mxu1 }
 0x127   : > { %v2761_v4 = vpop.f32.mrb[9].mxu1 }
 0x128   : > { %v2762_v58 = vadd.f32 %v2761_v4, %v2760_v57  ;;  %v2763_v42 = vpop.f32.mrb[10].mxu1 }
 0x129   : > { %v2764_v39 = vpop.f32.mrb[11].mxu1 }
 0x12a   : > { %v2070_v36 = vadd.f32 %v2762_v58, %v2722_v50  ;;  %v2765_v45 = vadd.f32 %v2764_v39, %v2763_v42 }
 0x12c   : > { %v2073_v1 = vadd.f32 %v2765_v45, %v2725_v35 }
 0x12e   : > { %v2726_v38 = vpop.f32.mrb[12].mxu0 }
 0x12f   : > { %v2727_v51 = vpop.f32.mrb[13].mxu0 }
 0x130   : > { %v2728_v6 = vadd.f32 %v2727_v51, %v2726_v38  ;;  %v2729_v61 = vpop.f32.mrb[14].mxu0 }
 0x131   : > { %v2730_v30 = vpop.f32.mrb[15].mxu0  ;;  %v2766_v12 = vpop.f32.mrb[12].mxu1 }
 0x132   : > { %v2731_v5 = vadd.f32 %v2730_v30, %v2729_v61  ;;  %v2767_v7 = vpop.f32.mrb[13].mxu1 }
 0x133   : > { %v2768_v28 = vadd.f32 %v2767_v7, %v2766_v12  ;;  %v2769_v46 = vpop.f32.mrb[14].mxu1 }
 0x134   : > { %v2770_v53 = vpop.f32.mrb[15].mxu1 }
 0x135   : > { %v2078_v10 = vadd.f32 %v2768_v28, %v2728_v6  ;;  %v2771_v44 = vadd.f32 %v2770_v53, %v2769_v46 }
 0x137   : > { %v2081_v62 = vadd.f32 %v2771_v44, %v2731_v5 }
 0x139   : > { %v2828_v54 = vpop.f32.mrb[16].mxu1 }
 0x13a   : > { %v2829_v31 = vpop.f32.mrb[17].mxu1 }
 0x13b   : > { %v2830_v15 = vadd.f32 %v2829_v31, %v2828_v54  ;;  %v2831_v17 = vpop.f32.mrb[18].mxu1 }
 0x13c   : > { %v2832_v52 = vpop.f32.mrb[19].mxu1 }
 0x13d   : > { %v2833_v18 = vadd.f32 %v2832_v52, %v2831_v17  ;;  %v2788_v41 = vpop.f32.mrb[16].mxu0 }
 0x13e   : > { %v2789_v37 = vpop.f32.mrb[17].mxu0 }
 0x13f   : > { %v2790_v3 = vadd.f32 %v2789_v37, %v2788_v41  ;;  %v2791_v19 = vpop.f32.mrb[18].mxu0 }
 0x140   : > { %v2792_v20 = vpop.f32.mrb[19].mxu0 }
 0x141   : > { %v2834_v55 = vpop.f32.mrb[20].mxu1  ;;  %v2119_v21 = vadd.f32 %v2790_v3, %v3766_v24  ;;  %v2793_v22 = vadd.f32 %v2792_v20, %v2791_v19 }
 0x142   : > { %v2835_v11 = vpop.f32.mrb[21].mxu1 }
 0x143   : > { %v2836_v32 = vadd.f32 %v2835_v11, %v2834_v55  ;;  %v2837_v40 = vpop.f32.mrb[22].mxu1  ;;  %v2122_v25 = vadd.f32 %v2793_v22, %v2057_v26  ;;  %v2184_v34 = vadd.f32 %v2830_v15, %v2119_v21  ;;  %v2640_v55 = vld [vmem:[%s3803_s2 + $0x1] ss:$0 sm:$0xff] }
 0x144   : > { %v2838_v9 = vpop.f32.mrb[23].mxu1 }
 0x145   : > { %v2839_v56 = vadd.f32 %v2838_v9, %v2837_v40  ;;  %v2794_v27 = vpop.f32.mrb[20].mxu0  ;;  %v2187_v8 = vadd.f32 %v2833_v18, %v2122_v25 }
 0x146   : > { %v2795_v43 = vpop.f32.mrb[21].mxu0 }
 0x147   : > { %v2796_v60 = vadd.f32 %v2795_v43, %v2794_v27  ;;  %v2797_v47 = vpop.f32.mrb[22].mxu0 }
 0x148   : > { %v2798_v49 = vpop.f32.mrb[23].mxu0 }
 0x149   : > { %v2840_v13 = vpop.f32.mrb[24].mxu1  ;;  %v2127_v0 = vadd.f32 %v2796_v60, %v3769_v33  ;;  %v2799_v50 = vadd.f32 %v2798_v49, %v2797_v47 }
 0x14a   : > { %v2841_v63 = vpop.f32.mrb[25].mxu1 }
 0x14b   : > { %v2842_v2 = vadd.f32 %v2841_v63, %v2840_v13  ;;  %v2843_v29 = vpop.f32.mrb[26].mxu1  ;;  %v2130_v24 = vadd.f32 %v2799_v50, %v3771_v48  ;;  %v2192_v59 = vadd.f32 %v2836_v32, %v2127_v0 }
 0x14c   : > { %v2844_v16 = vpop.f32.mrb[27].mxu1 }
 0x14d   : > { %v2845_v14 = vadd.f32 %v2844_v16, %v2843_v29  ;;  %v2800_v26 = vpop.f32.mrb[24].mxu0  ;;  %v2195_v23 = vadd.f32 %v2839_v56, %v2130_v24 }
 0x14e   : > { %v2801_v35 = vpop.f32.mrb[25].mxu0 }
 0x14f   : > { %v2802_v57 = vadd.f32 %v2801_v35, %v2800_v26  ;;  %v2803_v4 = vpop.f32.mrb[26].mxu0 }
 0x150   : > { %v2804_v58 = vpop.f32.mrb[27].mxu0 }
 0x151   : > { %v2135_v42 = vadd.f32 %v2802_v57, %v2070_v36  ;;  %v2805_v39 = vadd.f32 %v2804_v58, %v2803_v4  ;;  %v2846_v45 = vpop.f32.mrb[28].mxu1  ;;  %v2639_v36 = vld [vmem:[%s3803_s2] ss:$0 sm:$0xff] }
 0x152   : > { %v2847_v38 = vpop.f32.mrb[29].mxu1 }
 0x153   : > { %v2138_v51 = vadd.f32 %v2805_v39, %v2073_v1  ;;  %v2848_v6 = vadd.f32 %v2847_v38, %v2846_v45  ;;  %v2849_v61 = vpop.f32.mrb[30].mxu1  ;;  %v2200_v30 = vadd.f32 %v2842_v2, %v2135_v42  ;;  %v3024_v38 = vld [vmem:[%s3804_s3 + $0x8] sm:$0xff]  }
 0x154   : > { %v2850_v5 = vpop.f32.mrb[31].mxu1 }
 0x155   : > { %v2806_v33 = vpop.f32.mrb[28].mxu0  ;;  %v2851_v12 = vadd.f32 %v2850_v5, %v2849_v61  ;;  %v2203_v7 = vadd.f32 %v2845_v14, %v2138_v51  ;;  %v3025_v51 = vld [vmem:[%s3804_s3 + $0x10] sm:$0xff]  }
 0x156   : > { %v2807_v48 = vpop.f32.mrb[29].mxu0 }
 0x157   : > { %v2808_v28 = vadd.f32 %v2807_v48, %v2806_v33  ;;  %v2809_v46 = vpop.f32.mrb[30].mxu0 }
 0x158   : > { %v2810_v53 = vpop.f32.mrb[31].mxu0 }
 0x159   : > { %v2143_v44 = vadd.f32 %v2808_v28, %v2078_v10  ;;  %v2811_v54 = vadd.f32 %v2810_v53, %v2809_v46 }
 0x15b   : > { %v2146_v31 = vadd.f32 %v2811_v54, %v2081_v62  ;;  %v2208_v15 = vadd.f32 %v2848_v6, %v2143_v44  ;;  %v3026_v6 = vld [vmem:[%s3804_s3 + $0x18] sm:$0xff]  }
 0x15d   : > { %v2890_v1 = vpop.f32.mrb[32].mxu0  ;;  %v2211_v17 = vadd.f32 %v2851_v12, %v2146_v31 }
 0x15e   : > { %v2257_v52 = vadd.f32 %v2890_v1, %v2192_v59  ;;  %v2248_v18 = vpop.f32.mrb[33].mxu0 }
 0x15f   : > { %v2249_v11 = vadd.f32 %v2248_v18, %v2184_v34  ;;  %v2891_v41 = vpop.f32.mrb[34].mxu0 }
 0x160   : > { %v2285_v32 = vmul.f32 %v2639_v36, %v2257_v52  ;;  %v2260_v40 = vadd.f32 %v2891_v41, %v2195_v23  ;;  %v2251_v10 = vpop.f32.mrb[35].mxu0 }
 0x161   : > { %v2283_v37 = vmul.f32 %v2639_v36, %v2249_v11  ;;  %v2252_v62 = vadd.f32 %v2251_v10, %v2187_v8 }
 0x162   : > { %v2297_v9 = vadd.f32 %v2640_v55, %v2285_v32  ;;  %v2286_v3 = vmul.f32 %v2639_v36, %v2260_v40 }
 0x163   : > { %v2295_v19 = vadd.f32 %v2640_v55, %v2283_v37  ;;  %v2284_v56 = vmul.f32 %v2639_v36, %v2252_v62 }
 0x164   : > { %v2298_v20 = vadd.f32 %v2640_v55, %v2286_v3  ;;  %v2305_v25 = vmax.f32 %v2297_v9, 0.0 }
 0x165   : > { %v2296_v21 = vadd.f32 %v2640_v55, %v2284_v56  ;;  %v2894_v22 = vpop.f32.mrb[36].mxu0  ;;  %v2303_v2 = vmax.f32 %v2295_v19, 0.0 }
 0x166   : > { %v2306_v13 = vmax.f32 %v2298_v20, 0.0  ;;  %v2273_v63 = vadd.f32 %v2894_v22, %v2208_v15  ;;  %v2264_v27 = vpop.f32.mrb[37].mxu0 }
 0x167   : > { %v2304_v29 = vmax.f32 %v2296_v21, 0.0  ;;  %v2265_v34 = vadd.f32 %v2264_v27, %v2200_v30  ;;  %v2895_v43 = vpop.f32.mrb[38].mxu0 }
 0x168   : > { %v2289_v16 = vmul.f32 %v2639_v36, %v2273_v63  ;;  %v2276_v60 = vadd.f32 %v2895_v43, %v2211_v17  ;;  %v2267_v47 = vpop.f32.mrb[39].mxu0  ;;  %v2312_v14 = vpack.c.bf16 %v2306_v13, %v2305_v25 }
 0x169   : > { %v2287_v8 = vmul.f32 %v2639_v36, %v2265_v34  ;;  %v2268_v49 = vadd.f32 %v2267_v47, %v2203_v7  ;;  %v2311_v0 = vpack.c.bf16 %v2304_v29, %v2303_v2 }
 0x16a   : > { %v2301_v50 = vadd.f32 %v2640_v55, %v2289_v16  ;;  %v2290_v24 = vmul.f32 %v2639_v36, %v2276_v60 }
 0x16b   : > { %v2299_v59 = vadd.f32 %v2640_v55, %v2287_v8  ;;  %v2288_v26 = vmul.f32 %v2639_v36, %v2268_v49  ;;  %2896 = vmatprep.subr.bf16.mxu1 %v2311_v0 }
 0x16c   : > { %v2302_v23 = vadd.f32 %v2640_v55, %v2290_v24  ;;  %2897 = vmatpush3.bf16.msra.mxu1 %v2311_v0  ;;  %v2309_v57 = vmax.f32 %v2301_v50, 0.0 }
 0x16d   : > { %v2300_v35 = vadd.f32 %v2640_v55, %v2288_v26  ;;  %2898 = vmatprep.subr.bf16.mxu1 %v2312_v14  ;;  %v2307_v58 = vmax.f32 %v2299_v59, 0.0 }
 0x16e   : > { %v2310_v4 = vmax.f32 %v2302_v23, 0.0 }
 0x16f   : > { %v2308_v42 = vmax.f32 %v2300_v35, 0.0 }
 0x170   : > { %2899 = vmatpush3.bf16.msra.mxu1 %v2312_v14  ;;  %v2314_v39 = vpack.c.bf16 %v2310_v4, %v2309_v57 }
 0x171   : > { %v2313_v45 = vpack.c.bf16 %v2308_v42, %v2307_v58 }
 0x173   : > { %2900 = vmatprep.subr.bf16.mxu1 %v2313_v45 }
 0x174   : > { %2901 = vmatpush3.bf16.msra.mxu1 %v2313_v45 }
 0x175   : > { %2902 = vmatprep.subr.bf16.mxu1 %v2314_v39 }
 0x178   : > { %2903 = vmatpush3.bf16.msra.mxu1 %v2314_v39 }
 0x17b   : > { %2905 = vmatmul.mubr.msk.bf16.vlgmr.msra.gmra.mrb[32].mxu1 %vm2343_vm3, %v3024_v38 }
 0x17c   : > { %2908 = vmatprep.mubr.msk.bf16.mxu1 %vm2343_vm3, %v3025_v51 }
 0x183   : > { %2909 = vmatmul.mubr.msk.bf16.gmra.mrb[36].mxu1 %vm2343_vm3, %v3026_v6 }
 0x24e   : > { %v2906_v61 = vpop.f32.mrb[32].mxu1 }
 0x24f   : > { %v2390_v30 = vpop.f32.mrb[33].mxu1 }
 0x250   : > { %v2907_v5 = vpop.f32.mrb[34].mxu1 }
 0x251   : > { %v2677_v33 = vpack.c.bf16 %v2907_v5, %v2906_v61  ;;  %v2393_v12 = vpop.f32.mrb[35].mxu1 }
 0x252   : > { %v2672_v7 = vpack.c.bf16 %v2393_v12, %v2390_v30 }
 0x253   : > { %2689 = vst [vmem:[%s197_s12 + $0x8] sm:$0xff] %v2677_v33  }
 0x254   : > { %2673 = vst [vmem:[%s197_s12] sm:$0xff] %v2672_v7  }
 0x256   : > { %v2910_v48 = vpop.f32.mrb[36].mxu1 }
 0x257   : > { %v2406_v28 = vpop.f32.mrb[37].mxu1 }
 0x258   : > { %v2911_v46 = vpop.f32.mrb[38].mxu1 }
 0x259   : > { %v2687_v53 = vpack.c.bf16 %v2911_v46, %v2910_v48  ;;  %v2409_v44 = vpop.f32.mrb[39].mxu1 }
 0x25a   : > { %v2682_v54 = vpack.c.bf16 %v2409_v44, %v2406_v28 }
 0x25b   : > { %2691 = vst [vmem:[%s197_s12 + $0x18] sm:$0xff] %v2687_v53  }
 0x25c   : > { %2690 = vst [vmem:[%s197_s12 + $0x10] sm:$0xff] %v2682_v54  }
 0x25d PF: > { %s14_s15 = sadd.s32 1, %s3033_s15  }
 0x25e   : > { %p11_p4 = scmp.ge.s32.totalorder %s14_s15, 4  }
 0x260   :  { %13 = sbr.rel (!%p11_p4) target bundleno = 1 (0x1), region = 69 }

</bundles_post_ra>
